<compile_context>
chip_gen: v5e
topology: v5e:2x2
jax: 0.10.0
libtpu: 0.0.40
codegen_flags: <defaults>
</compile_context>

<pallas_src>
import jax
import jax.numpy as jnp
from jax.experimental import pallas as pl
from jax.experimental.pallas import tpu as pltpu

LANE = 128
SUBLANE = 8
# Cap on the M tile: worst-case double-buffered A block (1024 x 4608 bf16)
# plus weights/outputs stays well under the 32 MiB scoped-VMEM default on
# v5e/v6e/v7x, and gives >=2 grid steps (megacore) once M grows.
TM_CAP = 1024


def _round_up(x, m):
    return -(-x // m) * m


# ---------------------------------------------------------------------------
# Pallas kernel: out = relu(A @ W + b); bf16 MXU inputs, f32 accumulation.
# ---------------------------------------------------------------------------
def _matmul_bias_relu_kernel(a_ref, w_ref, b_ref, o_ref):
    acc = jnp.dot(a_ref[...], w_ref[...], preferred_element_type=jnp.float32)
    o_ref[...] = jnp.maximum(acc + b_ref[...], 0.0).astype(o_ref.dtype)


def matmul_bias_relu(a, w_padded, b_padded, out_dtype):
    """relu(a @ w + b).

    a:        (M, K)  activations (cast to bf16 here if not already).
    w_padded: (K, Np) bf16 weights, Np a multiple of 128 (pre-padded at init).
    b_padded: (1, Np) f32 bias (pre-padded at init).
    Returns (M, Np) in out_dtype; caller slices the real N columns.
    """
    M, K = a.shape
    Kw, Np = w_padded.shape
    assert K == Kw and Np % LANE == 0

    a = a.astype(jnp.bfloat16)

    # Choose TM so the grid covers M exactly (no dropped / uninitialized rows).
    m8 = _round_up(M, SUBLANE)
    n_blocks = -(-m8 // TM_CAP)
    tm = _round_up(-(-m8 // n_blocks), SUBLANE)
    mp = tm * n_blocks
    if mp > M:
        a = jnp.pad(a, ((0, mp - M), (0, 0)))

    out = pl.pallas_call(
        _matmul_bias_relu_kernel,
        out_shape=jax.ShapeDtypeStruct((mp, Np), out_dtype),
        grid_spec=pltpu.PrefetchScalarGridSpec(
            num_scalar_prefetch=0,
            grid=(n_blocks,),
            in_specs=[
                # Full-K blocks: full-extent dims are exempt from the 128 rule.
                pl.BlockSpec((tm, K), lambda i: (i, 0)),
                pl.BlockSpec((K, Np), lambda i: (0, 0)),
                pl.BlockSpec((1, Np), lambda i: (0, 0)),
            ],
            out_specs=pl.BlockSpec((tm, Np), lambda i: (i, 0)),
        ),
        compiler_params=pltpu.CompilerParams(
            dimension_semantics=("parallel",)),
    )(a, w_padded, b_padded)

    return out[:M] if mp > M else out


# ---------------------------------------------------------------------------
# Conv lowering: im2col (JAX glue) + Pallas fused GEMM (hot path).
# ---------------------------------------------------------------------------
def _im2col(x_nhwc, ksize=3, stride=2, pad=1):
    """(N, H, W, C) -> ((N*Ho*Wo, ksize*ksize*C), Ho, Wo); order (kh, kw, c)."""
    N, H, W, C = x_nhwc.shape
    xp = jnp.pad(x_nhwc, ((0, 0), (pad, pad), (pad, pad), (0, 0)))
    Ho = (H + 2 * pad - ksize) // stride + 1
    Wo = (W + 2 * pad - ksize) // stride + 1
    cols = []
    for kh in range(ksize):
        for kw in range(ksize):
            cols.append(
                xp[:, kh:kh + stride * Ho:stride, kw:kw + stride * Wo:stride, :])
    patches = jnp.stack(cols, axis=3)          # (N, Ho, Wo, 9, C)
    return patches.reshape(N * Ho * Wo, ksize * ksize * C), Ho, Wo


def conv2d_s2_relu(x_nhwc, w_mat, b_pad, cout):
    """Conv2d(Cin, cout, 3, stride=2, padding=1) + ReLU; bf16 NHWC in/out."""
    N = x_nhwc.shape[0]
    a, Ho, Wo = _im2col(x_nhwc)
    out = matmul_bias_relu(a, w_mat, b_pad, jnp.bfloat16)   # (N*Ho*Wo, Np)
    return out[:, :cout].reshape(N, Ho, Wo, cout)


# ---------------------------------------------------------------------------
# Params: weight relayout / padding / bf16 cast hoisted here (loop invariant).
# ---------------------------------------------------------------------------
def init_encoder_params(key, latent_dim, conv_dims):
    params = {"conv": [], "fc": None}
    ref = {"conv": [], "fc": None}     # f32 originals for the JAX reference
    in_ch = 3
    for out_ch in conv_dims:
        key, kw, kb = jax.random.split(key, 3)
        scale = 1.0 / jnp.sqrt(in_ch * 9.0)
        w = jax.random.uniform(kw, (out_ch, in_ch, 3, 3), jnp.float32,
                               -scale, scale)
        b = jax.random.uniform(kb, (out_ch,), jnp.float32, -scale, scale)
        ref["conv"].append((w, b))
        k = 9 * in_ch
        n_pad = _round_up(out_ch, LANE)
        # OIHW -> (KH, KW, Cin, Cout) -> (K, Cout), pad N to 128 lanes, bf16.
        w_mat = jnp.transpose(w, (2, 3, 1, 0)).reshape(k, out_ch)
        w_mat = jnp.pad(w_mat, ((0, 0), (0, n_pad - out_ch))).astype(jnp.bfloat16)
        b_pad = jnp.pad(b, (0, n_pad - out_ch)).reshape(1, n_pad)
        params["conv"].append({"w": w_mat, "b": b_pad})
        in_ch = out_ch

    key, kw, kb = jax.random.split(key, 3)
    fan_in = 4608
    scale = 1.0 / jnp.sqrt(float(fan_in))
    fc_w = jax.random.uniform(kw, (latent_dim, fan_in), jnp.float32,
                              -scale, scale)
    fc_b = jax.random.uniform(kb, (latent_dim,), jnp.float32, -scale, scale)
    ref["fc"] = (fc_w, fc_b)
    n_pad = _round_up(latent_dim, LANE)
    fc_w_mat = jnp.pad(fc_w.T, ((0, 0), (0, n_pad - latent_dim))
                       ).astype(jnp.bfloat16)
    fc_b_pad = jnp.pad(fc_b, (0, n_pad - latent_dim)).reshape(1, n_pad)
    params["fc"] = {"w": fc_w_mat, "b": fc_b_pad}
    return params, ref


# ---------------------------------------------------------------------------
# Forward pass (matches PyTorch Encoder.forward semantics).
# ---------------------------------------------------------------------------
def make_encoder_forward(conv_dims, latent_dim):
    @jax.jit
    def forward(params, x_nchw):
        # NCHW -> NHWC, bf16 for the conv stack (f32 accumulation in-kernel).
        x = jnp.transpose(x_nchw, (0, 2, 3, 1)).astype(jnp.bfloat16)
        for layer, cout in zip(params["conv"], conv_dims):
            x = conv2d_s2_relu(x, layer["w"], layer["b"], cout)
        # Match PyTorch x.view(N, -1) on NCHW: flatten in (C, H, W) order.
        n = x.shape[0]
        x_flat = jnp.transpose(x, (0, 3, 1, 2)).reshape(n, -1)   # (N, 4608)
        out = matmul_bias_relu(x_flat, params["fc"]["w"], params["fc"]["b"],
                               jnp.float32)
        return out[:, :latent_dim]
    return forward


def reference_forward(ref_params, x_nchw):
    x = x_nchw
    for (w, b) in ref_params["conv"]:
        x = jax.lax.conv_general_dilated(
            x, w, window_strides=(2, 2), padding=((1, 1), (1, 1)),
            dimension_numbers=("NCHW", "OIHW", "NCHW"))
        x = jax.nn.relu(x + b.reshape(1, -1, 1, 1))
    x = x.reshape(x.shape[0], -1)
    fc_w, fc_b = ref_params["fc"]
    return jax.nn.relu(x @ fc_w.T + fc_b)


if __name__ == "__main__":
    # conv_dims=[32,64,128], 48x48 input => final map 6x6x128 = 4608 = fc1 in.
    latent_dim = 32
    conv_dims = [32, 64, 128]
    batch = 2

    key = jax.random.PRNGKey(0)
    key, kx = jax.random.split(key)
    x = jax.random.normal(kx, (batch, 3, 48, 48), jnp.float32)   # NCHW input

    params, ref_params = init_encoder_params(key, latent_dim, conv_dims)
    forward = make_encoder_forward(conv_dims, latent_dim)

    out = jax.block_until_ready(forward(params, x))
    assert out.shape == (batch, latent_dim)
    assert bool(jnp.all(out >= 0.0))                  # ReLU output

    # Numerical check vs pure-JAX f32 reference (bf16 MXU inputs => tolerance).
    ref = jax.block_until_ready(reference_forward(ref_params, x))
    assert bool(jnp.allclose(out, ref.astype(jnp.float32),
                             rtol=1e-1, atol=5e-2)), "mismatch vs reference"

    print("KERNEL_OK")
</pallas_src>

<mosaic_0001>
module attributes {stable_mosaic.version = 11 : i64} {
  func.func @_matmul_bias_relu_kernel(%arg0: i32, %arg1: memref<576x27xbf16, #tpu.memory_space<vmem>>, %arg2: memref<27x128xbf16, #tpu.memory_space<vmem>>, %arg3: memref<1x128xf32, #tpu.memory_space<vmem>>, %arg4: memref<576x128xbf16, #tpu.memory_space<vmem>>) attributes {dimension_semantics = [#tpu.dimension_semantics<parallel>], iteration_bounds = array<i64: 2>, scalar_prefetch = 0 : i64, scratch_operands = 0 : i64, tpu.core_type = #tpu.core_type<tc>, window_params = [{transform_indices = @transform_0, window_bounds = array<i64: 576, 27>}, {pipeline_mode = #tpu.pipeline_mode<synchronous>, transform_indices = @transform_1, window_bounds = array<i64: 27, 128>}, {pipeline_mode = #tpu.pipeline_mode<synchronous>, transform_indices = @transform_2, window_bounds = array<i64: 1, 128>}, {transform_indices = @transform_3, window_bounds = array<i64: 576, 128>}]} {
    %c0 = arith.constant 0 : index
    %c0_0 = arith.constant 0 : index
    %0 = vector.load %arg1[%c0, %c0_0] : memref<576x27xbf16, #tpu.memory_space<vmem>>, vector<576x27xbf16>
    %c0_1 = arith.constant 0 : index
    %c0_2 = arith.constant 0 : index
    %1 = vector.load %arg2[%c0_1, %c0_2] : memref<27x128xbf16, #tpu.memory_space<vmem>>, vector<27x128xbf16>
    %cst = arith.constant dense<0.000000e+00> : vector<576x128xf32>
    %2 = tpu.matmul %0, %1, %cst {dimension_numbers = #tpu.dot_dimension_numbers<[1], [0], [0], [1], [0, 0, 1, 1], [], []>} : vector<576x27xbf16>, vector<27x128xbf16>, vector<576x128xf32> -> vector<576x128xf32>
    %c0_3 = arith.constant 0 : index
    %c0_4 = arith.constant 0 : index
    %3 = vector.load %arg3[%c0_3, %c0_4] : memref<1x128xf32, #tpu.memory_space<vmem>>, vector<1x128xf32>
    %4 = vector.broadcast %3 : vector<1x128xf32> to vector<576x128xf32>
    %5 = arith.addf %2, %4 : vector<576x128xf32>
    %cst_5 = arith.constant 0.000000e+00 : f32
    %6 = vector.broadcast %cst_5 : f32 to vector<576x128xf32>
    %7 = arith.maximumf %5, %6 : vector<576x128xf32>
    %8 = arith.truncf %7 : vector<576x128xf32> to vector<576x128xbf16>
    %c0_6 = arith.constant 0 : index
    %c0_7 = arith.constant 0 : index
    %9 = vector.load %arg4[%c0_6, %c0_7] : memref<576x128xbf16, #tpu.memory_space<vmem>>, vector<576x128xbf16>
    tpu.vector_store %arg4[%c0_6, %c0_7], %8 {strides = array<i32>} : memref<576x128xbf16, #tpu.memory_space<vmem>>, vector<576x128xbf16>,
    return
  }
  func.func @transform_0(%arg0: i32) -> (i32, i32) {
    %c0_i32 = arith.constant 0 : i32
    %c0_i32_0 = arith.constant 0 : i32
    return %arg0, %c0_i32 : i32, i32
  }
  func.func @transform_1(%arg0: i32) -> (i32, i32) {
    %c0_i32 = arith.constant 0 : i32
    %c0_i32_0 = arith.constant 0 : i32
    %c0_i32_1 = arith.constant 0 : i32
    return %c0_i32, %c0_i32_0 : i32, i32
  }
  func.func @transform_2(%arg0: i32) -> (i32, i32) {
    %c0_i32 = arith.constant 0 : i32
    %c0_i32_0 = arith.constant 0 : i32
    %c0_i32_1 = arith.constant 0 : i32
    return %c0_i32, %c0_i32_0 : i32, i32
  }
  func.func @transform_3(%arg0: i32) -> (i32, i32) {
    %c0_i32 = arith.constant 0 : i32
    %c0_i32_0 = arith.constant 0 : i32
    return %arg0, %c0_i32 : i32, i32
  }
}

module attributes {stable_mosaic.version = 11 : i64} {
  func.func @_matmul_bias_relu_kernel(%arg0: i32, %arg1: memref<288x288xbf16, #tpu.memory_space<vmem>>, %arg2: memref<288x128xbf16, #tpu.memory_space<vmem>>, %arg3: memref<1x128xf32, #tpu.memory_space<vmem>>, %arg4: memref<288x128xbf16, #tpu.memory_space<vmem>>) attributes {dimension_semantics = [#tpu.dimension_semantics<parallel>], iteration_bounds = array<i64: 1>, scalar_prefetch = 0 : i64, scratch_operands = 0 : i64, tpu.core_type = #tpu.core_type<tc>, window_params = [{transform_indices = @transform_0, window_bounds = array<i64: 288, 288>}, {pipeline_mode = #tpu.pipeline_mode<synchronous>, transform_indices = @transform_1, window_bounds = array<i64: 288, 128>}, {pipeline_mode = #tpu.pipeline_mode<synchronous>, transform_indices = @transform_2, window_bounds = array<i64: 1, 128>}, {transform_indices = @transform_3, window_bounds = array<i64: 288, 128>}]} {
    %c0 = arith.constant 0 : index
    %c0_0 = arith.constant 0 : index
    %0 = vector.load %arg1[%c0, %c0_0] : memref<288x288xbf16, #tpu.memory_space<vmem>>, vector<288x288xbf16>
    %c0_1 = arith.constant 0 : index
    %c0_2 = arith.constant 0 : index
    %1 = vector.load %arg2[%c0_1, %c0_2] : memref<288x128xbf16, #tpu.memory_space<vmem>>, vector<288x128xbf16>
    %cst = arith.constant dense<0.000000e+00> : vector<288x128xf32>
    %2 = tpu.matmul %0, %1, %cst {dimension_numbers = #tpu.dot_dimension_numbers<[1], [0], [0], [1], [0, 0, 1, 1], [], []>} : vector<288x288xbf16>, vector<288x128xbf16>, vector<288x128xf32> -> vector<288x128xf32>
    %c0_3 = arith.constant 0 : index
    %c0_4 = arith.constant 0 : index
    %3 = vector.load %arg3[%c0_3, %c0_4] : memref<1x128xf32, #tpu.memory_space<vmem>>, vector<1x128xf32>
    %4 = vector.broadcast %3 : vector<1x128xf32> to vector<288x128xf32>
    %5 = arith.addf %2, %4 : vector<288x128xf32>
    %cst_5 = arith.constant 0.000000e+00 : f32
    %6 = vector.broadcast %cst_5 : f32 to vector<288x128xf32>
    %7 = arith.maximumf %5, %6 : vector<288x128xf32>
    %8 = arith.truncf %7 : vector<288x128xf32> to vector<288x128xbf16>
    %c0_6 = arith.constant 0 : index
    %c0_7 = arith.constant 0 : index
    %9 = vector.load %arg4[%c0_6, %c0_7] : memref<288x128xbf16, #tpu.memory_space<vmem>>, vector<288x128xbf16>
    tpu.vector_store %arg4[%c0_6, %c0_7], %8 {strides = array<i32>} : memref<288x128xbf16, #tpu.memory_space<vmem>>, vector<288x128xbf16>,
    return
  }
  func.func @transform_0(%arg0: i32) -> (i32, i32) {
    %c0_i32 = arith.constant 0 : i32
    %c0_i32_0 = arith.constant 0 : i32
    return %arg0, %c0_i32 : i32, i32
  }
  func.func @transform_1(%arg0: i32) -> (i32, i32) {
    %c0_i32 = arith.constant 0 : i32
    %c0_i32_0 = arith.constant 0 : i32
    %c0_i32_1 = arith.constant 0 : i32
    return %c0_i32, %c0_i32_0 : i32, i32
  }
  func.func @transform_2(%arg0: i32) -> (i32, i32) {
    %c0_i32 = arith.constant 0 : i32
    %c0_i32_0 = arith.constant 0 : i32
    %c0_i32_1 = arith.constant 0 : i32
    return %c0_i32, %c0_i32_0 : i32, i32
  }
  func.func @transform_3(%arg0: i32) -> (i32, i32) {
    %c0_i32 = arith.constant 0 : i32
    %c0_i32_0 = arith.constant 0 : i32
    return %arg0, %c0_i32 : i32, i32
  }
}

module attributes {stable_mosaic.version = 11 : i64} {
  func.func @_matmul_bias_relu_kernel(%arg0: i32, %arg1: memref<72x576xbf16, #tpu.memory_space<vmem>>, %arg2: memref<576x128xbf16, #tpu.memory_space<vmem>>, %arg3: memref<1x128xf32, #tpu.memory_space<vmem>>, %arg4: memref<72x128xbf16, #tpu.memory_space<vmem>>) attributes {dimension_semantics = [#tpu.dimension_semantics<parallel>], iteration_bounds = array<i64: 1>, scalar_prefetch = 0 : i64, scratch_operands = 0 : i64, tpu.core_type = #tpu.core_type<tc>, window_params = [{transform_indices = @transform_0, window_bounds = array<i64: 72, 576>}, {pipeline_mode = #tpu.pipeline_mode<synchronous>, transform_indices = @transform_1, window_bounds = array<i64: 576, 128>}, {pipeline_mode = #tpu.pipeline_mode<synchronous>, transform_indices = @transform_2, window_bounds = array<i64: 1, 128>}, {transform_indices = @transform_3, window_bounds = array<i64: 72, 128>}]} {
    %c0 = arith.constant 0 : index
    %c0_0 = arith.constant 0 : index
    %0 = vector.load %arg1[%c0, %c0_0] : memref<72x576xbf16, #tpu.memory_space<vmem>>, vector<72x576xbf16>
    %c0_1 = arith.constant 0 : index
    %c0_2 = arith.constant 0 : index
    %1 = vector.load %arg2[%c0_1, %c0_2] : memref<576x128xbf16, #tpu.memory_space<vmem>>, vector<576x128xbf16>
    %cst = arith.constant dense<0.000000e+00> : vector<72x128xf32>
    %2 = tpu.matmul %0, %1, %cst {dimension_numbers = #tpu.dot_dimension_numbers<[1], [0], [0], [1], [0, 0, 1, 1], [], []>} : vector<72x576xbf16>, vector<576x128xbf16>, vector<72x128xf32> -> vector<72x128xf32>
    %c0_3 = arith.constant 0 : index
    %c0_4 = arith.constant 0 : index
    %3 = vector.load %arg3[%c0_3, %c0_4] : memref<1x128xf32, #tpu.memory_space<vmem>>, vector<1x128xf32>
    %4 = vector.broadcast %3 : vector<1x128xf32> to vector<72x128xf32>
    %5 = arith.addf %2, %4 : vector<72x128xf32>
    %cst_5 = arith.constant 0.000000e+00 : f32
    %6 = vector.broadcast %cst_5 : f32 to vector<72x128xf32>
    %7 = arith.maximumf %5, %6 : vector<72x128xf32>
    %8 = arith.truncf %7 : vector<72x128xf32> to vector<72x128xbf16>
    %c0_6 = arith.constant 0 : index
    %c0_7 = arith.constant 0 : index
    %9 = vector.load %arg4[%c0_6, %c0_7] : memref<72x128xbf16, #tpu.memory_space<vmem>>, vector<72x128xbf16>
    tpu.vector_store %arg4[%c0_6, %c0_7], %8 {strides = array<i32>} : memref<72x128xbf16, #tpu.memory_space<vmem>>, vector<72x128xbf16>,
    return
  }
  func.func @transform_0(%arg0: i32) -> (i32, i32) {
    %c0_i32 = arith.constant 0 : i32
    %c0_i32_0 = arith.constant 0 : i32
    return %arg0, %c0_i32 : i32, i32
  }
  func.func @transform_1(%arg0: i32) -> (i32, i32) {
    %c0_i32 = arith.constant 0 : i32
    %c0_i32_0 = arith.constant 0 : i32
    %c0_i32_1 = arith.constant 0 : i32
    return %c0_i32, %c0_i32_0 : i32, i32
  }
  func.func @transform_2(%arg0: i32) -> (i32, i32) {
    %c0_i32 = arith.constant 0 : i32
    %c0_i32_0 = arith.constant 0 : i32
    %c0_i32_1 = arith.constant 0 : i32
    return %c0_i32, %c0_i32_0 : i32, i32
  }
  func.func @transform_3(%arg0: i32) -> (i32, i32) {
    %c0_i32 = arith.constant 0 : i32
    %c0_i32_0 = arith.constant 0 : i32
    return %arg0, %c0_i32 : i32, i32
  }
}

module attributes {stable_mosaic.version = 11 : i64} {
  func.func @_matmul_bias_relu_kernel(%arg0: i32, %arg1: memref<8x4608xbf16, #tpu.memory_space<vmem>>, %arg2: memref<4608x128xbf16, #tpu.memory_space<vmem>>, %arg3: memref<1x128xf32, #tpu.memory_space<vmem>>, %arg4: memref<8x128xf32, #tpu.memory_space<vmem>>) attributes {dimension_semantics = [#tpu.dimension_semantics<parallel>], iteration_bounds = array<i64: 1>, scalar_prefetch = 0 : i64, scratch_operands = 0 : i64, tpu.core_type = #tpu.core_type<tc>, window_params = [{transform_indices = @transform_0, window_bounds = array<i64: 8, 4608>}, {pipeline_mode = #tpu.pipeline_mode<synchronous>, transform_indices = @transform_1, window_bounds = array<i64: 4608, 128>}, {pipeline_mode = #tpu.pipeline_mode<synchronous>, transform_indices = @transform_2, window_bounds = array<i64: 1, 128>}, {transform_indices = @transform_3, window_bounds = array<i64: 8, 128>}]} {
    %c0 = arith.constant 0 : index
    %c0_0 = arith.constant 0 : index
    %0 = vector.load %arg1[%c0, %c0_0] : memref<8x4608xbf16, #tpu.memory_space<vmem>>, vector<8x4608xbf16>
    %c0_1 = arith.constant 0 : index
    %c0_2 = arith.constant 0 : index
    %1 = vector.load %arg2[%c0_1, %c0_2] : memref<4608x128xbf16, #tpu.memory_space<vmem>>, vector<4608x128xbf16>
    %cst = arith.constant dense<0.000000e+00> : vector<8x128xf32>
    %2 = tpu.matmul %0, %1, %cst {dimension_numbers = #tpu.dot_dimension_numbers<[1], [0], [0], [1], [0, 0, 1, 1], [], []>} : vector<8x4608xbf16>, vector<4608x128xbf16>, vector<8x128xf32> -> vector<8x128xf32>
    %c0_3 = arith.constant 0 : index
    %c0_4 = arith.constant 0 : index
    %3 = vector.load %arg3[%c0_3, %c0_4] : memref<1x128xf32, #tpu.memory_space<vmem>>, vector<1x128xf32>
    %4 = vector.broadcast %3 : vector<1x128xf32> to vector<8x128xf32>
    %5 = arith.addf %2, %4 : vector<8x128xf32>
    %cst_5 = arith.constant 0.000000e+00 : f32
    %6 = vector.broadcast %cst_5 : f32 to vector<8x128xf32>
    %7 = arith.maximumf %5, %6 : vector<8x128xf32>
    %c0_6 = arith.constant 0 : index
    %c0_7 = arith.constant 0 : index
    %8 = vector.load %arg4[%c0_6, %c0_7] : memref<8x128xf32, #tpu.memory_space<vmem>>, vector<8x128xf32>
    tpu.vector_store %arg4[%c0_6, %c0_7], %7 {strides = array<i32>} : memref<8x128xf32, #tpu.memory_space<vmem>>, vector<8x128xf32>,
    return
  }
  func.func @transform_0(%arg0: i32) -> (i32, i32) {
    %c0_i32 = arith.constant 0 : i32
    %c0_i32_0 = arith.constant 0 : i32
    return %arg0, %c0_i32 : i32, i32
  }
  func.func @transform_1(%arg0: i32) -> (i32, i32) {
    %c0_i32 = arith.constant 0 : i32
    %c0_i32_0 = arith.constant 0 : i32
    %c0_i32_1 = arith.constant 0 : i32
    return %c0_i32, %c0_i32_0 : i32, i32
  }
  func.func @transform_2(%arg0: i32) -> (i32, i32) {
    %c0_i32 = arith.constant 0 : i32
    %c0_i32_0 = arith.constant 0 : i32
    %c0_i32_1 = arith.constant 0 : i32
    return %c0_i32, %c0_i32_0 : i32, i32
  }
  func.func @transform_3(%arg0: i32) -> (i32, i32) {
    %c0_i32 = arith.constant 0 : i32
    %c0_i32_0 = arith.constant 0 : i32
    return %arg0, %c0_i32 : i32, i32
  }
}

</mosaic_0001>

<bundles_post_ra>
// kernel: forward.4
= control target key start
LH: loop header
LB: loop body
LE: loop exit
PB: predicated region body
PF: predicated region fallthrough
CT: control target
= control target key end

     0   :  { %s1518_s12 = smov 0   ;;  %s1740_s0 = inlined_call_operand.vmem [shape: bf16[1152,27], index: 0, kind: input, shape index: {}]   ;;  %s1741_s1 = inlined_call_operand.vmem [shape: bf16[27,128], index: 1, kind: input, shape index: {}]   ;;  %s1742_s2 = inlined_call_operand.vmem [shape: f32[1,128], index: 2, kind: input, shape index: {}]   ;;  %s1743_s3 = inlined_call_operand.vmem [shape: bf16[1152,128], index: 3, kind: output, shape index: {}]  }
   0x1 LB: > { %s1023_s13 = sadd.s32 4294967295, %s1495_s12   ;;  %p1027_p0 = scmp.ge.s32.totalorder %s1495_s12, 1  ;;  %s1495_s12 = sphi %s1518_s12, %s13_s12  }
   0x2   : > { %p138_p1 = scmp.lt.s32.totalorder %s1495_s12, 3 }
   0x4   : > { %p139_p2 = pnand %p1027_p0, %p138_p1 }
   0x5   : > { %s162_s18 = smul.u32 (!%p139_p2), 72, %s1023_s13 }
   0x6   : > { %142 = sbr.rel (%p139_p2) target bundleno = 301 (0x12d), region = 32 }
   0x7   : > { %p163_p3 = scmp.lt.s32.totalorder (!%p139_p2), %s162_s18, 143 }
   0xb   : > { %v1180_v0 = vld [vmem:[%s1741_s1 + $0x8] sm:$0xf]  ;;  %v1257_v1 = vld [vmem:[%s1741_s1 + $0x8] sm:$0x30]  ;;  %vm555_vm0 = vcmask 1044480   ;;  %vm556_vm1 = vcmask 1045504  }
   0xc   : > { %v1181_v2 = vor.u32 %v1257_v1, %v1180_v0  ;;  %v1497_v3 = vmov 65535   ;;  %s1745_s18 = smov (!%p163_p3, %s162_s18), 143  ;;  %v1256_v7 = vld [vmem:[%s1741_s1] sm:$0xff]  ;;  %vm446_vm2 = vcmask 220160  }
   0xd   : > { %v557_v4 = vsel %vm555_vm0, 4294967295, %v1497_v3  ;;  %s1028_s21 = sshll.u32 %s1745_s18, 2  ;;  %v1616_v46 = vld [vmem:[%s1742_s2] ss:$0 sm:$0xff] }
   0xe   : > { %v558_v5 = vsel %vm556_vm1, %v557_v4, 0  ;;  %s1543_s24 = scalar_lea.vmem %s1740_s0, %s1028_s21  ;;  %s1631_s29 = scalar_lea.vmem %s1743_s3, %s1028_s21 }
   0xf   : > { %v560_v6 = vand.u32 %v1181_v2, %v558_v5  ;;  %v1220_v8 = vld [vmem:[%s1543_s24] sm:$0xff]  ;;  %v1229_v9 = vld [vmem:[%s1543_s24 + $0x48] sm:$0xff]  ;;  %v1238_v10 = vld [vmem:[%s1543_s24 + $0x90] sm:$0xff] }
  0x10   : > { %v1247_v11 = vld [vmem:[%s1543_s24 + $0xd8] sm:$0xff]  ;;  %v1221_v12 = vld [vmem:[%s1543_s24 + $0x8] sm:$0xff]  ;;  %v1230_v13 = vld [vmem:[%s1543_s24 + $0x50] sm:$0xff] }
  0x11   : > { %568 = vmatpush.bf16.msra.mxu0 %v560_v6  ;;  %1473 = vmatpush.bf16.msra.mxu1 %v560_v6  ;;  %v1239_v14 = vld [vmem:[%s1543_s24 + $0x98] sm:$0xff]  ;;  %v1248_v15 = vld [vmem:[%s1543_s24 + $0xe0] sm:$0xff]  ;;  %v1222_v16 = vld [vmem:[%s1543_s24 + $0x10] sm:$0xff] }
  0x12   : > { %1474 = vmatpush.bf16.msra.mxu2 %v560_v6  ;;  %1475 = vmatpush.bf16.msra.mxu3 %v560_v6  ;;  %v1231_v17 = vld [vmem:[%s1543_s24 + $0x58] sm:$0xff]  ;;  %v1240_v18 = vld [vmem:[%s1543_s24 + $0xa0] sm:$0xff]  ;;  %v1249_v19 = vld [vmem:[%s1543_s24 + $0xe8] sm:$0xff] }
  0x13   : > { %v1223_v20 = vld [vmem:[%s1543_s24 + $0x18] sm:$0xff]  ;;  %v1232_v21 = vld [vmem:[%s1543_s24 + $0x60] sm:$0xff]  ;;  %v1241_v22 = vld [vmem:[%s1543_s24 + $0xa8] sm:$0xff] }
  0x14   : > { %v1250_v23 = vld [vmem:[%s1543_s24 + $0xf0] sm:$0xff]  ;;  %v1224_v24 = vld [vmem:[%s1543_s24 + $0x20] sm:$0xff]  ;;  %v1233_v25 = vld [vmem:[%s1543_s24 + $0x68] sm:$0xff] }
  0x15   : > { %569 = vmatpush.bf16.msra.mxu0 %v1256_v7  ;;  %1476 = vmatpush.bf16.msra.mxu1 %v1256_v7  ;;  %v1242_v26 = vld [vmem:[%s1543_s24 + $0xb0] sm:$0xff]  ;;  %v1251_v27 = vld [vmem:[%s1543_s24 + $0xf8] sm:$0xff]  ;;  %v1225_v28 = vld [vmem:[%s1543_s24 + $0x28] sm:$0xff] }
  0x16   : > { %1477 = vmatpush.bf16.msra.mxu2 %v1256_v7  ;;  %1478 = vmatpush.bf16.msra.mxu3 %v1256_v7  ;;  %v1234_v29 = vld [vmem:[%s1543_s24 + $0x70] sm:$0xff]  ;;  %v1243_v30 = vld [vmem:[%s1543_s24 + $0xb8] sm:$0xff]  ;;  %v1252_v31 = vld [vmem:[%s1543_s24 + $0x100] sm:$0xff] }
  0x17   : > { %v1226_v32 = vld [vmem:[%s1543_s24 + $0x30] sm:$0xff]  ;;  %v1235_v33 = vld [vmem:[%s1543_s24 + $0x78] sm:$0xff]  ;;  %v1244_v34 = vld [vmem:[%s1543_s24 + $0xc0] sm:$0xff] }
  0x18   : > { %1182 = vmatmul.msk.bf16.vlgmr.msra.gmra.mxu0 %vm446_vm2, %v1220_v8  ;;  %1191 = vmatmul.msk.bf16.vlgmr.msra.gmra.mxu1 %vm446_vm2, %v1229_v9  ;;  %v1253_v35 = vld [vmem:[%s1543_s24 + $0x108] sm:$0xff]  ;;  %v1227_v36 = vld [vmem:[%s1543_s24 + $0x38] sm:$0xff]  ;;  %v1236_v37 = vld [vmem:[%s1543_s24 + $0x80] sm:$0xff] }
  0x19   : > { %1200 = vmatmul.msk.bf16.vlgmr.msra.gmra.mxu2 %vm446_vm2, %v1238_v10  ;;  %1209 = vmatmul.msk.bf16.vlgmr.msra.gmra.mxu3 %vm446_vm2, %v1247_v11  ;;  %v1245_v38 = vld [vmem:[%s1543_s24 + $0xc8] sm:$0xff]  ;;  %v1254_v39 = vld [vmem:[%s1543_s24 + $0x110] sm:$0xff]  ;;  %v1228_v40 = vld [vmem:[%s1543_s24 + $0x40] sm:$0xff] }
  0x1a   : > { %v1237_v41 = vld [vmem:[%s1543_s24 + $0x88] sm:$0xff]  ;;  %v1246_v44 = vld [vmem:[%s1543_s24 + $0xd0] sm:$0xff]  ;;  %v1255_v45 = vld [vmem:[%s1543_s24 + $0x118] sm:$0xff] }
  0x28   : > { %1183 = vmatmul.msk.bf16.gmra.mxu0 %vm446_vm2, %v1221_v12  ;;  %1192 = vmatmul.msk.bf16.gmra.mxu1 %vm446_vm2, %v1230_v13 }
  0x29   : > { %1201 = vmatmul.msk.bf16.gmra.mxu2 %vm446_vm2, %v1239_v14  ;;  %1210 = vmatmul.msk.bf16.gmra.mxu3 %vm446_vm2, %v1248_v15 }
  0x38   : > { %1184 = vmatmul.msk.bf16.gmra.mxu0 %vm446_vm2, %v1222_v16  ;;  %1193 = vmatmul.msk.bf16.gmra.mxu1 %vm446_vm2, %v1231_v17 }
  0x39   : > { %1202 = vmatmul.msk.bf16.gmra.mxu2 %vm446_vm2, %v1240_v18  ;;  %1211 = vmatmul.msk.bf16.gmra.mxu3 %vm446_vm2, %v1249_v19 }
  0x48   : > { %1185 = vmatmul.msk.bf16.gmra.mxu0 %vm446_vm2, %v1223_v20  ;;  %1194 = vmatmul.msk.bf16.gmra.mxu1 %vm446_vm2, %v1232_v21 }
  0x49   : > { %1203 = vmatmul.msk.bf16.gmra.mxu2 %vm446_vm2, %v1241_v22  ;;  %1212 = vmatmul.msk.bf16.gmra.mxu3 %vm446_vm2, %v1250_v23 }
  0x58   : > { %1186 = vmatmul.msk.bf16.gmra.mxu0 %vm446_vm2, %v1224_v24  ;;  %1195 = vmatmul.msk.bf16.gmra.mxu1 %vm446_vm2, %v1233_v25 }
  0x59   : > { %1204 = vmatmul.msk.bf16.gmra.mxu2 %vm446_vm2, %v1242_v26  ;;  %1213 = vmatmul.msk.bf16.gmra.mxu3 %vm446_vm2, %v1251_v27 }
  0x68   : > { %1187 = vmatmul.msk.bf16.gmra.mxu0 %vm446_vm2, %v1225_v28  ;;  %1196 = vmatmul.msk.bf16.gmra.mxu1 %vm446_vm2, %v1234_v29 }
  0x69   : > { %1205 = vmatmul.msk.bf16.gmra.mxu2 %vm446_vm2, %v1243_v30  ;;  %1214 = vmatmul.msk.bf16.gmra.mxu3 %vm446_vm2, %v1252_v31 }
  0x78   : > { %1188 = vmatmul.msk.bf16.gmra.mxu0 %vm446_vm2, %v1226_v32  ;;  %1197 = vmatmul.msk.bf16.gmra.mxu1 %vm446_vm2, %v1235_v33 }
  0x79   : > { %1206 = vmatmul.msk.bf16.gmra.mxu2 %vm446_vm2, %v1244_v34  ;;  %1215 = vmatmul.msk.bf16.gmra.mxu3 %vm446_vm2, %v1253_v35 }
  0x88   : > { %1189 = vmatmul.msk.bf16.gmra.mxu0 %vm446_vm2, %v1227_v36  ;;  %1198 = vmatmul.msk.bf16.gmra.mxu1 %vm446_vm2, %v1236_v37 }
  0x89   : > { %1207 = vmatmul.msk.bf16.gmra.mxu2 %vm446_vm2, %v1245_v38  ;;  %1216 = vmatmul.msk.bf16.gmra.mxu3 %vm446_vm2, %v1254_v39 }
  0x95   : > { %v571_v42 = vpop.f32.mrf.mxu0  ;;  %v616_v43 = vpop.f32.mrf.mxu1 }
  0x96   : > { %v572_v47 = vadd.f32 %v1616_v46, %v571_v42  ;;  %v617_v48 = vadd.f32 %v1616_v46, %v616_v43 }
  0x98   : > { %1190 = vmatmul.msk.bf16.gmra.mxu0 %vm446_vm2, %v1228_v40  ;;  %1199 = vmatmul.msk.bf16.gmra.mxu1 %vm446_vm2, %v1237_v41  ;;  %v751_v55 = vmax.f32 %v572_v47, 0.0  ;;  %v769_v56 = vmax.f32 %v617_v48, 0.0 }
  0x99   : > { %1208 = vmatmul.msk.bf16.gmra.mxu2 %vm446_vm2, %v1246_v44  ;;  %1217 = vmatmul.msk.bf16.gmra.mxu3 %vm446_vm2, %v1255_v45 }
  0x9c   : > { %v661_v49 = vpop.f32.mrf.mxu2  ;;  %v706_v50 = vpop.f32.mrf.mxu3 }
  0x9d   : > { %v573_v51 = vpop.f32.mrf.mxu0  ;;  %v618_v52 = vpop.f32.mrf.mxu1  ;;  %v662_v61 = vadd.f32 %v1616_v46, %v661_v49  ;;  %v707_v62 = vadd.f32 %v1616_v46, %v706_v50 }
  0x9e   : > { %v574_v53 = vadd.f32 %v1616_v46, %v573_v51  ;;  %v619_v54 = vadd.f32 %v1616_v46, %v618_v52 }
  0x9f   : > { %v787_v5 = vmax.f32 %v662_v61, 0.0  ;;  %v805_v6 = vmax.f32 %v707_v62, 0.0 }
  0xa0   : > { %v752_v57 = vmax.f32 %v574_v53, 0.0  ;;  %v770_v58 = vmax.f32 %v619_v54, 0.0 }
  0xa2   : > { %v1261_v59 = vpack.c.bf16 %v752_v57, %v751_v55  ;;  %v1306_v60 = vpack.c.bf16 %v770_v58, %v769_v56 }
  0xa4   : > { %1262 = vst [vmem:[%s1631_s29] sm:$0xff] %v1261_v59   ;;  %v663_v63 = vpop.f32.mrf.mxu2  ;;  %v708_v0 = vpop.f32.mrf.mxu3 }
  0xa5   : > { %1446 = vst [vmem:[%s1631_s29 + $0x48] sm:$0xff] %v1306_v60   ;;  %v664_v1 = vadd.f32 %v1616_v46, %v663_v63  ;;  %v709_v2 = vadd.f32 %v1616_v46, %v708_v0  ;;  %v576_v3 = vpop.f32.mrf.mxu0  ;;  %v621_v4 = vpop.f32.mrf.mxu1 }
  0xa6   : > { %v577_v11 = vadd.f32 %v1616_v46, %v576_v3  ;;  %v622_v12 = vadd.f32 %v1616_v46, %v621_v4 }
  0xa7   : > { %v788_v7 = vmax.f32 %v664_v1, 0.0  ;;  %v806_v8 = vmax.f32 %v709_v2, 0.0 }
  0xa8   : > { %v753_v19 = vmax.f32 %v577_v11, 0.0  ;;  %v771_v20 = vmax.f32 %v622_v12, 0.0 }
  0xa9   : > { %v1351_v9 = vpack.c.bf16 %v788_v7, %v787_v5  ;;  %v1396_v10 = vpack.c.bf16 %v806_v8, %v805_v6 }
  0xab   : > { %1455 = vst [vmem:[%s1631_s29 + $0x90] sm:$0xff] %v1351_v9  }
  0xac   : > { %1464 = vst [vmem:[%s1631_s29 + $0xd8] sm:$0xff] %v1396_v10   ;;  %v666_v13 = vpop.f32.mrf.mxu2  ;;  %v711_v14 = vpop.f32.mrf.mxu3 }
  0xad   : > { %v578_v15 = vpop.f32.mrf.mxu0  ;;  %v623_v16 = vpop.f32.mrf.mxu1  ;;  %v667_v25 = vadd.f32 %v1616_v46, %v666_v13  ;;  %v712_v26 = vadd.f32 %v1616_v46, %v711_v14 }
  0xae   : > { %v579_v17 = vadd.f32 %v1616_v46, %v578_v15  ;;  %v624_v18 = vadd.f32 %v1616_v46, %v623_v16 }
  0xaf   : > { %v789_v33 = vmax.f32 %v667_v25, 0.0  ;;  %v807_v34 = vmax.f32 %v712_v26, 0.0 }
  0xb0   : > { %v754_v21 = vmax.f32 %v579_v17, 0.0  ;;  %v772_v22 = vmax.f32 %v624_v18, 0.0 }
  0xb2   : > { %v1266_v23 = vpack.c.bf16 %v754_v21, %v753_v19  ;;  %v1311_v24 = vpack.c.bf16 %v772_v22, %v771_v20 }
  0xb4   : > { %1438 = vst [vmem:[%s1631_s29 + $0x8] sm:$0xff] %v1266_v23   ;;  %v668_v27 = vpop.f32.mrf.mxu2  ;;  %v713_v28 = vpop.f32.mrf.mxu3 }
  0xb5   : > { %1447 = vst [vmem:[%s1631_s29 + $0x50] sm:$0xff] %v1311_v24   ;;  %v669_v29 = vadd.f32 %v1616_v46, %v668_v27  ;;  %v714_v30 = vadd.f32 %v1616_v46, %v713_v28  ;;  %v581_v31 = vpop.f32.mrf.mxu0  ;;  %v626_v32 = vpop.f32.mrf.mxu1 }
  0xb6   : > { %v582_v39 = vadd.f32 %v1616_v46, %v581_v31  ;;  %v627_v40 = vadd.f32 %v1616_v46, %v626_v32 }
  0xb7   : > { %v790_v35 = vmax.f32 %v669_v29, 0.0  ;;  %v808_v36 = vmax.f32 %v714_v30, 0.0 }
  0xb8   : > { %v755_v48 = vmax.f32 %v582_v39, 0.0  ;;  %v773_v49 = vmax.f32 %v627_v40, 0.0 }
  0xb9   : > { %v1356_v37 = vpack.c.bf16 %v790_v35, %v789_v33  ;;  %v1401_v38 = vpack.c.bf16 %v808_v36, %v807_v34 }
  0xbb   : > { %1456 = vst [vmem:[%s1631_s29 + $0x98] sm:$0xff] %v1356_v37  }
  0xbc   : > { %1465 = vst [vmem:[%s1631_s29 + $0xe0] sm:$0xff] %v1401_v38   ;;  %v671_v41 = vpop.f32.mrf.mxu2  ;;  %v716_v42 = vpop.f32.mrf.mxu3 }
  0xbd   : > { %v583_v43 = vpop.f32.mrf.mxu0  ;;  %v628_v44 = vpop.f32.mrf.mxu1  ;;  %v672_v54 = vadd.f32 %v1616_v46, %v671_v41  ;;  %v717_v55 = vadd.f32 %v1616_v46, %v716_v42 }
  0xbe   : > { %v584_v45 = vadd.f32 %v1616_v46, %v583_v43  ;;  %v629_v47 = vadd.f32 %v1616_v46, %v628_v44 }
  0xbf   : > { %v791_v62 = vmax.f32 %v672_v54, 0.0  ;;  %v809_v63 = vmax.f32 %v717_v55, 0.0 }
  0xc0   : > { %v756_v50 = vmax.f32 %v584_v45, 0.0  ;;  %v774_v51 = vmax.f32 %v629_v47, 0.0 }
  0xc2   : > { %v1271_v52 = vpack.c.bf16 %v756_v50, %v755_v48  ;;  %v1316_v53 = vpack.c.bf16 %v774_v51, %v773_v49 }
  0xc4   : > { %1439 = vst [vmem:[%s1631_s29 + $0x10] sm:$0xff] %v1271_v52   ;;  %v673_v56 = vpop.f32.mrf.mxu2  ;;  %v718_v57 = vpop.f32.mrf.mxu3 }
  0xc5   : > { %1448 = vst [vmem:[%s1631_s29 + $0x58] sm:$0xff] %v1316_v53   ;;  %v674_v58 = vadd.f32 %v1616_v46, %v673_v56  ;;  %v719_v59 = vadd.f32 %v1616_v46, %v718_v57  ;;  %v586_v60 = vpop.f32.mrf.mxu0  ;;  %v631_v61 = vpop.f32.mrf.mxu1 }
  0xc6   : > { %v587_v4 = vadd.f32 %v1616_v46, %v586_v60  ;;  %v632_v5 = vadd.f32 %v1616_v46, %v631_v61 }
  0xc7   : > { %v792_v0 = vmax.f32 %v674_v58, 0.0  ;;  %v810_v1 = vmax.f32 %v719_v59, 0.0 }
  0xc8   : > { %v757_v12 = vmax.f32 %v587_v4, 0.0  ;;  %v775_v13 = vmax.f32 %v632_v5, 0.0 }
  0xc9   : > { %v1361_v2 = vpack.c.bf16 %v792_v0, %v791_v62  ;;  %v1406_v3 = vpack.c.bf16 %v810_v1, %v809_v63 }
  0xcb   : > { %1457 = vst [vmem:[%s1631_s29 + $0xa0] sm:$0xff] %v1361_v2  }
  0xcc   : > { %1466 = vst [vmem:[%s1631_s29 + $0xe8] sm:$0xff] %v1406_v3   ;;  %v676_v6 = vpop.f32.mrf.mxu2  ;;  %v721_v7 = vpop.f32.mrf.mxu3 }
  0xcd   : > { %v588_v8 = vpop.f32.mrf.mxu0  ;;  %v633_v9 = vpop.f32.mrf.mxu1  ;;  %v677_v18 = vadd.f32 %v1616_v46, %v676_v6  ;;  %v722_v19 = vadd.f32 %v1616_v46, %v721_v7 }
  0xce   : > { %v589_v10 = vadd.f32 %v1616_v46, %v588_v8  ;;  %v634_v11 = vadd.f32 %v1616_v46, %v633_v9 }
  0xcf   : > { %v793_v26 = vmax.f32 %v677_v18, 0.0  ;;  %v811_v27 = vmax.f32 %v722_v19, 0.0 }
  0xd0   : > { %v758_v14 = vmax.f32 %v589_v10, 0.0  ;;  %v776_v15 = vmax.f32 %v634_v11, 0.0 }
  0xd2   : > { %v1276_v16 = vpack.c.bf16 %v758_v14, %v757_v12  ;;  %v1321_v17 = vpack.c.bf16 %v776_v15, %v775_v13 }
  0xd4   : > { %1440 = vst [vmem:[%s1631_s29 + $0x18] sm:$0xff] %v1276_v16   ;;  %v678_v20 = vpop.f32.mrf.mxu2  ;;  %v723_v21 = vpop.f32.mrf.mxu3 }
  0xd5   : > { %1449 = vst [vmem:[%s1631_s29 + $0x60] sm:$0xff] %v1321_v17   ;;  %v679_v22 = vadd.f32 %v1616_v46, %v678_v20  ;;  %v724_v23 = vadd.f32 %v1616_v46, %v723_v21  ;;  %v591_v24 = vpop.f32.mrf.mxu0  ;;  %v636_v25 = vpop.f32.mrf.mxu1 }
  0xd6   : > { %v592_v32 = vadd.f32 %v1616_v46, %v591_v24  ;;  %v637_v33 = vadd.f32 %v1616_v46, %v636_v25 }
  0xd7   : > { %v794_v28 = vmax.f32 %v679_v22, 0.0  ;;  %v812_v29 = vmax.f32 %v724_v23, 0.0 }
  0xd8   : > { %v759_v40 = vmax.f32 %v592_v32, 0.0  ;;  %v777_v41 = vmax.f32 %v637_v33, 0.0 }
  0xd9   : > { %v1366_v30 = vpack.c.bf16 %v794_v28, %v793_v26  ;;  %v1411_v31 = vpack.c.bf16 %v812_v29, %v811_v27 }
  0xdb   : > { %1458 = vst [vmem:[%s1631_s29 + $0xa8] sm:$0xff] %v1366_v30  }
  0xdc   : > { %1467 = vst [vmem:[%s1631_s29 + $0xf0] sm:$0xff] %v1411_v31   ;;  %v681_v34 = vpop.f32.mrf.mxu2  ;;  %v726_v35 = vpop.f32.mrf.mxu3 }
  0xdd   : > { %v593_v36 = vpop.f32.mrf.mxu0  ;;  %v638_v37 = vpop.f32.mrf.mxu1  ;;  %v682_v47 = vadd.f32 %v1616_v46, %v681_v34  ;;  %v727_v48 = vadd.f32 %v1616_v46, %v726_v35 }
  0xde   : > { %v594_v38 = vadd.f32 %v1616_v46, %v593_v36  ;;  %v639_v39 = vadd.f32 %v1616_v46, %v638_v37 }
  0xdf   : > { %v795_v55 = vmax.f32 %v682_v47, 0.0  ;;  %v813_v56 = vmax.f32 %v727_v48, 0.0 }
  0xe0   : > { %v760_v42 = vmax.f32 %v594_v38, 0.0  ;;  %v778_v43 = vmax.f32 %v639_v39, 0.0 }
  0xe2   : > { %v1281_v44 = vpack.c.bf16 %v760_v42, %v759_v40  ;;  %v1326_v45 = vpack.c.bf16 %v778_v43, %v777_v41 }
  0xe4   : > { %1441 = vst [vmem:[%s1631_s29 + $0x20] sm:$0xff] %v1281_v44   ;;  %v683_v49 = vpop.f32.mrf.mxu2  ;;  %v728_v50 = vpop.f32.mrf.mxu3 }
  0xe5   : > { %1450 = vst [vmem:[%s1631_s29 + $0x68] sm:$0xff] %v1326_v45   ;;  %v684_v51 = vadd.f32 %v1616_v46, %v683_v49  ;;  %v729_v52 = vadd.f32 %v1616_v46, %v728_v50  ;;  %v596_v53 = vpop.f32.mrf.mxu0  ;;  %v641_v54 = vpop.f32.mrf.mxu1 }
  0xe6   : > { %v597_v61 = vadd.f32 %v1616_v46, %v596_v53  ;;  %v642_v62 = vadd.f32 %v1616_v46, %v641_v54 }
  0xe7   : > { %v796_v57 = vmax.f32 %v684_v51, 0.0  ;;  %v814_v58 = vmax.f32 %v729_v52, 0.0 }
  0xe8   : > { %v761_v5 = vmax.f32 %v597_v61, 0.0  ;;  %v779_v6 = vmax.f32 %v642_v62, 0.0 }
  0xe9   : > { %v1371_v59 = vpack.c.bf16 %v796_v57, %v795_v55  ;;  %v1416_v60 = vpack.c.bf16 %v814_v58, %v813_v56 }
  0xeb   : > { %1459 = vst [vmem:[%s1631_s29 + $0xb0] sm:$0xff] %v1371_v59  }
  0xec   : > { %1468 = vst [vmem:[%s1631_s29 + $0xf8] sm:$0xff] %v1416_v60   ;;  %v686_v63 = vpop.f32.mrf.mxu2  ;;  %v731_v0 = vpop.f32.mrf.mxu3 }
  0xed   : > { %v598_v1 = vpop.f32.mrf.mxu0  ;;  %v643_v2 = vpop.f32.mrf.mxu1  ;;  %v687_v11 = vadd.f32 %v1616_v46, %v686_v63  ;;  %v732_v12 = vadd.f32 %v1616_v46, %v731_v0 }
  0xee   : > { %v599_v3 = vadd.f32 %v1616_v46, %v598_v1  ;;  %v644_v4 = vadd.f32 %v1616_v46, %v643_v2 }
  0xef   : > { %v797_v19 = vmax.f32 %v687_v11, 0.0  ;;  %v815_v20 = vmax.f32 %v732_v12, 0.0 }
  0xf0   : > { %v762_v7 = vmax.f32 %v599_v3, 0.0  ;;  %v780_v8 = vmax.f32 %v644_v4, 0.0 }
  0xf2   : > { %v1286_v9 = vpack.c.bf16 %v762_v7, %v761_v5  ;;  %v1331_v10 = vpack.c.bf16 %v780_v8, %v779_v6 }
  0xf4   : > { %1442 = vst [vmem:[%s1631_s29 + $0x28] sm:$0xff] %v1286_v9   ;;  %v688_v13 = vpop.f32.mrf.mxu2  ;;  %v733_v14 = vpop.f32.mrf.mxu3 }
  0xf5   : > { %1451 = vst [vmem:[%s1631_s29 + $0x70] sm:$0xff] %v1331_v10   ;;  %v689_v15 = vadd.f32 %v1616_v46, %v688_v13  ;;  %v734_v16 = vadd.f32 %v1616_v46, %v733_v14  ;;  %v601_v17 = vpop.f32.mrf.mxu0  ;;  %v646_v18 = vpop.f32.mrf.mxu1 }
  0xf6   : > { %v602_v25 = vadd.f32 %v1616_v46, %v601_v17  ;;  %v647_v26 = vadd.f32 %v1616_v46, %v646_v18 }
  0xf7   : > { %v798_v21 = vmax.f32 %v689_v15, 0.0  ;;  %v816_v22 = vmax.f32 %v734_v16, 0.0 }
  0xf8   : > { %v763_v33 = vmax.f32 %v602_v25, 0.0  ;;  %v781_v34 = vmax.f32 %v647_v26, 0.0 }
  0xf9   : > { %v1376_v23 = vpack.c.bf16 %v798_v21, %v797_v19  ;;  %v1421_v24 = vpack.c.bf16 %v816_v22, %v815_v20 }
  0xfb   : > { %1460 = vst [vmem:[%s1631_s29 + $0xb8] sm:$0xff] %v1376_v23  }
  0xfc   : > { %1469 = vst [vmem:[%s1631_s29 + $0x100] sm:$0xff] %v1421_v24   ;;  %v691_v27 = vpop.f32.mrf.mxu2  ;;  %v736_v28 = vpop.f32.mrf.mxu3 }
  0xfd   : > { %v603_v29 = vpop.f32.mrf.mxu0  ;;  %v648_v30 = vpop.f32.mrf.mxu1  ;;  %v692_v39 = vadd.f32 %v1616_v46, %v691_v27  ;;  %v737_v40 = vadd.f32 %v1616_v46, %v736_v28 }
  0xfe   : > { %v604_v31 = vadd.f32 %v1616_v46, %v603_v29  ;;  %v649_v32 = vadd.f32 %v1616_v46, %v648_v30 }
  0xff   : > { %v799_v48 = vmax.f32 %v692_v39, 0.0  ;;  %v817_v49 = vmax.f32 %v737_v40, 0.0 }
 0x100   : > { %v764_v35 = vmax.f32 %v604_v31, 0.0  ;;  %v782_v36 = vmax.f32 %v649_v32, 0.0 }
 0x102   : > { %v1291_v37 = vpack.c.bf16 %v764_v35, %v763_v33  ;;  %v1336_v38 = vpack.c.bf16 %v782_v36, %v781_v34 }
 0x104   : > { %1443 = vst [vmem:[%s1631_s29 + $0x30] sm:$0xff] %v1291_v37   ;;  %v693_v41 = vpop.f32.mrf.mxu2  ;;  %v738_v42 = vpop.f32.mrf.mxu3 }
 0x105   : > { %1452 = vst [vmem:[%s1631_s29 + $0x78] sm:$0xff] %v1336_v38   ;;  %v694_v43 = vadd.f32 %v1616_v46, %v693_v41  ;;  %v739_v44 = vadd.f32 %v1616_v46, %v738_v42  ;;  %v606_v45 = vpop.f32.mrf.mxu0  ;;  %v651_v47 = vpop.f32.mrf.mxu1 }
 0x106   : > { %v607_v54 = vadd.f32 %v1616_v46, %v606_v45  ;;  %v652_v55 = vadd.f32 %v1616_v46, %v651_v47 }
 0x107   : > { %v800_v50 = vmax.f32 %v694_v43, 0.0  ;;  %v818_v51 = vmax.f32 %v739_v44, 0.0 }
 0x108   : > { %v765_v62 = vmax.f32 %v607_v54, 0.0  ;;  %v783_v63 = vmax.f32 %v652_v55, 0.0 }
 0x109   : > { %v1381_v52 = vpack.c.bf16 %v800_v50, %v799_v48  ;;  %v1426_v53 = vpack.c.bf16 %v818_v51, %v817_v49 }
 0x10b   : > { %1461 = vst [vmem:[%s1631_s29 + $0xc0] sm:$0xff] %v1381_v52  }
 0x10c   : > { %1470 = vst [vmem:[%s1631_s29 + $0x108] sm:$0xff] %v1426_v53   ;;  %v696_v56 = vpop.f32.mrf.mxu2  ;;  %v741_v57 = vpop.f32.mrf.mxu3 }
 0x10d   : > { %v608_v58 = vpop.f32.mrf.mxu0  ;;  %v653_v59 = vpop.f32.mrf.mxu1  ;;  %v697_v4 = vadd.f32 %v1616_v46, %v696_v56  ;;  %v742_v5 = vadd.f32 %v1616_v46, %v741_v57 }
 0x10e   : > { %v609_v60 = vadd.f32 %v1616_v46, %v608_v58  ;;  %v654_v61 = vadd.f32 %v1616_v46, %v653_v59 }
 0x10f   : > { %v801_v12 = vmax.f32 %v697_v4, 0.0  ;;  %v819_v13 = vmax.f32 %v742_v5, 0.0 }
 0x110   : > { %v766_v0 = vmax.f32 %v609_v60, 0.0  ;;  %v784_v1 = vmax.f32 %v654_v61, 0.0 }
 0x112   : > { %v1296_v2 = vpack.c.bf16 %v766_v0, %v765_v62  ;;  %v1341_v3 = vpack.c.bf16 %v784_v1, %v783_v63 }
 0x114   : > { %1444 = vst [vmem:[%s1631_s29 + $0x38] sm:$0xff] %v1296_v2   ;;  %v698_v6 = vpop.f32.mrf.mxu2  ;;  %v743_v7 = vpop.f32.mrf.mxu3 }
 0x115   : > { %1453 = vst [vmem:[%s1631_s29 + $0x80] sm:$0xff] %v1341_v3   ;;  %v699_v8 = vadd.f32 %v1616_v46, %v698_v6  ;;  %v744_v9 = vadd.f32 %v1616_v46, %v743_v7  ;;  %v611_v10 = vpop.f32.mrf.mxu0  ;;  %v656_v11 = vpop.f32.mrf.mxu1 }
 0x116   : > { %v612_v18 = vadd.f32 %v1616_v46, %v611_v10  ;;  %v657_v19 = vadd.f32 %v1616_v46, %v656_v11 }
 0x117   : > { %v802_v14 = vmax.f32 %v699_v8, 0.0  ;;  %v820_v15 = vmax.f32 %v744_v9, 0.0 }
 0x118   : > { %v767_v26 = vmax.f32 %v612_v18, 0.0  ;;  %v785_v27 = vmax.f32 %v657_v19, 0.0 }
 0x119   : > { %v1386_v16 = vpack.c.bf16 %v802_v14, %v801_v12  ;;  %v1431_v17 = vpack.c.bf16 %v820_v15, %v819_v13 }
 0x11b   : > { %1462 = vst [vmem:[%s1631_s29 + $0xc8] sm:$0xff] %v1386_v16  }
 0x11c   : > { %1471 = vst [vmem:[%s1631_s29 + $0x110] sm:$0xff] %v1431_v17   ;;  %v701_v20 = vpop.f32.mrf.mxu2  ;;  %v746_v21 = vpop.f32.mrf.mxu3 }
 0x11d   : > { %v613_v22 = vpop.f32.mrf.mxu0  ;;  %v658_v23 = vpop.f32.mrf.mxu1  ;;  %v702_v32 = vadd.f32 %v1616_v46, %v701_v20  ;;  %v747_v33 = vadd.f32 %v1616_v46, %v746_v21 }
 0x11e   : > { %v614_v24 = vadd.f32 %v1616_v46, %v613_v22  ;;  %v659_v25 = vadd.f32 %v1616_v46, %v658_v23 }
 0x11f   : > { %v803_v38 = vmax.f32 %v702_v32, 0.0  ;;  %v821_v39 = vmax.f32 %v747_v33, 0.0 }
 0x120   : > { %v768_v28 = vmax.f32 %v614_v24, 0.0  ;;  %v786_v29 = vmax.f32 %v659_v25, 0.0 }
 0x122   : > { %v1301_v30 = vpack.c.bf16 %v768_v28, %v767_v26  ;;  %v1346_v31 = vpack.c.bf16 %v786_v29, %v785_v27 }
 0x124   : > { %1445 = vst [vmem:[%s1631_s29 + $0x40] sm:$0xff] %v1301_v30   ;;  %v703_v34 = vpop.f32.mrf.mxu2  ;;  %v748_v35 = vpop.f32.mrf.mxu3 }
 0x125   : > { %1454 = vst [vmem:[%s1631_s29 + $0x88] sm:$0xff] %v1346_v31   ;;  %v704_v36 = vadd.f32 %v1616_v46, %v703_v34  ;;  %v749_v37 = vadd.f32 %v1616_v46, %v748_v35 }
 0x127   : > { %v804_v40 = vmax.f32 %v704_v36, 0.0  ;;  %v822_v41 = vmax.f32 %v749_v37, 0.0 }
 0x129   : > { %v1391_v42 = vpack.c.bf16 %v804_v40, %v803_v38  ;;  %v1436_v43 = vpack.c.bf16 %v822_v41, %v821_v39 }
 0x12b   : > { %1463 = vst [vmem:[%s1631_s29 + $0xd0] sm:$0xff] %v1391_v42  }
 0x12c   : > { %1472 = vst [vmem:[%s1631_s29 + $0x118] sm:$0xff] %v1436_v43  }
 0x12d PF: > { %s13_s12 = sadd.s32 1, %s1495_s12  }
 0x12e   : > { %p10_p4 = scmp.ge.s32.totalorder %s13_s12, 4  }
 0x130   :  { %12 = sbr.rel (!%p10_p4) target bundleno = 1 (0x1), region = 62 }

// kernel: forward.5
= control target key start
LH: loop header
LB: loop body
LE: loop exit
PB: predicated region body
PF: predicated region fallthrough
CT: control target
= control target key end

     0   :  { %vm505_vm0 = vcmask 261120   ;;  %s2037_s1 = inlined_call_operand.vmem [shape: bf16[288,128], index: 1, kind: input, shape index: {}]   ;;  %s2038_s0 = inlined_call_operand.vmem [shape: bf16[288,288], index: 0, kind: input, shape index: {}]   ;;  %s2039_s2 = inlined_call_operand.vmem [shape: f32[1,128], index: 2, kind: input, shape index: {}]   ;;  %s2040_s3 = inlined_call_operand.vmem [shape: bf16[288,128], index: 3, kind: output, shape index: {}]  }
   0x1   :  { %v1336_v0 = vld [vmem:[%s2037_s1 + $0x38] sm:$0xff]  ;;  %v1502_v2 = vld [vmem:[%s2037_s1 + $0x88] sm:$0xff]  ;;  %v1335_v3 = vld [vmem:[%s2037_s1 + $0x30] sm:$0xff] }
   0x2   :  { %v1344_v1 = vld [vmem:[%s2037_s1 + $0x78] sm:$0xff]  ;;  %560 = vmatpush.bf16.msra.mxu0 %v1336_v0  ;;  %1454 = vmatpush.bf16.msra.mxu3 %v1336_v0  ;;  %v1343_v4 = vld [vmem:[%s2037_s1 + $0x70] sm:$0xff]  ;;  %v1514_v5 = vld [vmem:[%s2037_s1 + $0x80] sm:$0xff] }
   0x3   :  { %659 = vmatpush.bf16.msra.mxu1 %v1344_v1  ;;  %764 = vmatpush.bf16.msra.mxu2 %v1502_v2  ;;  %v979_v6 = vld [vmem:[%s2038_s0 + $0x8] sm:$0xf]  ;;  %v1277_v7 = vld [vmem:[%s2038_s0 + $0x10] sm:$0xf0]  ;;  %v1333_v11 = vld [vmem:[%s2037_s1 + $0x20] sm:$0xff] }
   0x4   :  { %v980_v8 = vor.u32 %v1277_v7, %v979_v6  ;;  %v1334_v9 = vld [vmem:[%s2037_s1 + $0x28] sm:$0xff]  ;;  %v1341_v12 = vld [vmem:[%s2037_s1 + $0x60] sm:$0xff]  ;;  %v1332_v13 = vld [vmem:[%s2037_s1 + $0x18] sm:$0xff] }
   0x5   :  { %v1342_v10 = vld [vmem:[%s2037_s1 + $0x68] sm:$0xff]  ;;  %v1340_v14 = vld [vmem:[%s2037_s1 + $0x58] sm:$0xff]  ;;  %v1331_v15 = vld [vmem:[%s2037_s1 + $0x10] sm:$0xff] }
   0x6   :  { %561 = vmatpush.bf16.msra.mxu0 %v1335_v3  ;;  %1455 = vmatpush.bf16.msra.mxu3 %v1335_v3  ;;  %v1339_v16 = vld [vmem:[%s2037_s1 + $0x50] sm:$0xff]  ;;  %v991_v17 = vld [vmem:[%s2038_s0 + $0x20] sm:$0xf]  ;;  %v1280_v18 = vld [vmem:[%s2038_s0 + $0x28] sm:$0xf0] }
   0x7   :  { %660 = vmatpush.bf16.msra.mxu1 %v1343_v4  ;;  %765 = vmatpush.bf16.msra.mxu2 %v1514_v5  ;;  %v992_v19 = vor.u32 %v1280_v18, %v991_v17  ;;  %v1330_v20 = vld [vmem:[%s2037_s1 + $0x8] sm:$0xff]  ;;  %v1329_v22 = vld [vmem:[%s2037_s1] sm:$0xff]  ;;  %v1139_v26 = vld [vmem:[%s2038_s0 + $0x150] sm:$0xf] }
   0x8   :  { %v1338_v21 = vld [vmem:[%s2037_s1 + $0x48] sm:$0xff]  ;;  %v1337_v23 = vld [vmem:[%s2037_s1 + $0x40] sm:$0xff]  ;;  %v1318_v27 = vld [vmem:[%s2038_s0 + $0x158] sm:$0xf0] }
   0x9   :  { %v971_v24 = vld [vmem:[%s2038_s0] sm:$0xf]  ;;  %v1276_v25 = vld [vmem:[%s2038_s0 + $0x8] sm:$0xf0]  ;;  %v1275_v28 = vld [vmem:[%s2038_s0 + $0x4] sm:$0xf]  ;;  %v1140_v31 = vor.u32 %v1318_v27, %v1139_v26 }
   0xa   :  { %1257 = vmatmul.msk.bf16.vlgmr.msra.gmra.mxu2 %vm505_vm0, %v980_v8  ;;  %562 = vmatpush.bf16.msra.mxu0 %v1334_v9  ;;  %v973_v29 = vld [vmem:[%s2038_s0 + $0xc] sm:$0xf0]  ;;  %v972_v30 = vor.u32 %v1276_v25, %v971_v24  ;;  %v1003_v33 = vld [vmem:[%s2038_s0 + $0x38] sm:$0xf]  ;;  %v1283_v34 = vld [vmem:[%s2038_s0 + $0x40] sm:$0xf0] }
   0xb   :  { %1456 = vmatpush.bf16.msra.mxu3 %v1334_v9  ;;  %661 = vmatpush.bf16.msra.mxu1 %v1342_v10  ;;  %v976_v32 = vor.u32 %v1275_v28, %v973_v29  ;;  %v1004_v35 = vor.u32 %v1283_v34, %v1003_v33  ;;  %v983_v36 = vld [vmem:[%s2038_s0 + $0x18] sm:$0xf]  ;;  %v1279_v37 = vld [vmem:[%s2038_s0 + $0x20] sm:$0xf0]  ;;  %v1151_v38 = vld [vmem:[%s2038_s0 + $0x168] sm:$0xf] }
   0xc   :  { %v1321_v39 = vld [vmem:[%s2038_s0 + $0x170] sm:$0xf0]  ;;  %v1278_v40 = vld [vmem:[%s2038_s0 + $0x1c] sm:$0xf]  ;;  %v985_v41 = vld [vmem:[%s2038_s0 + $0x24] sm:$0xf0]  ;;  %v984_v42 = vor.u32 %v1279_v37, %v983_v36 }
   0xd   :  { %v1152_v43 = vor.u32 %v1321_v39, %v1151_v38  ;;  %v988_v44 = vor.u32 %v1278_v40, %v985_v41  ;;  %v1015_v45 = vld [vmem:[%s2038_s0 + $0x50] sm:$0xf]  ;;  %v1286_v46 = vld [vmem:[%s2038_s0 + $0x58] sm:$0xf0]  ;;  %v1163_v50 = vld [vmem:[%s2038_s0 + $0x180] sm:$0xf] }
   0xe   :  { %563 = vmatpush.bf16.msra.mxu0 %v1333_v11  ;;  %v1016_v47 = vor.u32 %v1286_v46, %v1015_v45  ;;  %v995_v48 = vld [vmem:[%s2038_s0 + $0x30] sm:$0xf]  ;;  %v1282_v49 = vld [vmem:[%s2038_s0 + $0x38] sm:$0xf0]  ;;  %v1324_v51 = vld [vmem:[%s2038_s0 + $0x188] sm:$0xf0] }
   0xf   :  { %1457 = vmatpush.bf16.msra.mxu3 %v1333_v11  ;;  %662 = vmatpush.bf16.msra.mxu1 %v1341_v12  ;;  %v1281_v52 = vld [vmem:[%s2038_s0 + $0x34] sm:$0xf]  ;;  %v997_v53 = vld [vmem:[%s2038_s0 + $0x3c] sm:$0xf0]  ;;  %v996_v54 = vor.u32 %v1282_v49, %v995_v48  ;;  %v1164_v55 = vor.u32 %v1324_v51, %v1163_v50  ;;  %v1027_v57 = vld [vmem:[%s2038_s0 + $0x68] sm:$0xf] }
  0x10   :  { %v1000_v56 = vor.u32 %v1281_v52, %v997_v53  ;;  %v1289_v58 = vld [vmem:[%s2038_s0 + $0x70] sm:$0xf0]  ;;  %v1007_v60 = vld [vmem:[%s2038_s0 + $0x48] sm:$0xf]  ;;  %v1175_v62 = vld [vmem:[%s2038_s0 + $0x198] sm:$0xf] }
  0x11   :  { %v1028_v59 = vor.u32 %v1289_v58, %v1027_v57  ;;  %v1285_v61 = vld [vmem:[%s2038_s0 + $0x50] sm:$0xf0]  ;;  %v1327_v63 = vld [vmem:[%s2038_s0 + $0x1a0] sm:$0xf0]  ;;  %v1284_v0 = vld [vmem:[%s2038_s0 + $0x4c] sm:$0xf] }
  0x12   :  { %564 = vmatpush.bf16.msra.mxu0 %v1332_v13  ;;  %v1176_v3 = vor.u32 %v1327_v63, %v1175_v62  ;;  %v1292_v6 = vld [vmem:[%s2038_s0 + $0x88] sm:$0xf0]  ;;  %v1019_v8 = vld [vmem:[%s2038_s0 + $0x60] sm:$0xf]  ;;  %v1021_v11 = vld [vmem:[%s2038_s0 + $0x6c] sm:$0xf0] }
  0x13   :  { %1458 = vmatpush.bf16.msra.mxu3 %v1332_v13  ;;  %663 = vmatpush.bf16.msra.mxu1 %v1340_v14  ;;  %v1288_v9 = vld [vmem:[%s2038_s0 + $0x68] sm:$0xf0]  ;;  %v1141_v13 = vld [vmem:[%s2038_s0 + $0x15c] sm:$0xf0]  ;;  %v1051_v17 = vld [vmem:[%s2038_s0 + $0x98] sm:$0xf] }
  0x14   :  { %v1295_v18 = vld [vmem:[%s2038_s0 + $0xa0] sm:$0xf0]  ;;  %v1320_v24 = vld [vmem:[%s2038_s0 + $0x16c] sm:$0xf]  ;;  %v1153_v25 = vld [vmem:[%s2038_s0 + $0x174] sm:$0xf0] }
  0x15   :  { %v1156_v28 = vor.u32 %v1320_v24, %v1153_v25  ;;  %v1063_v29 = vld [vmem:[%s2038_s0 + $0xb0] sm:$0xf]  ;;  %v1294_v33 = vld [vmem:[%s2038_s0 + $0x98] sm:$0xf0]  ;;  %v1293_v34 = vld [vmem:[%s2038_s0 + $0x94] sm:$0xf] }
  0x16   :  { %565 = vmatpush.bf16.msra.mxu0 %v1331_v15  ;;  %v1323_v36 = vld [vmem:[%s2038_s0 + $0x184] sm:$0xf]  ;;  %v1165_v37 = vld [vmem:[%s2038_s0 + $0x18c] sm:$0xf0]  ;;  %v1075_v41 = vld [vmem:[%s2038_s0 + $0xc8] sm:$0xf] }
  0x17   :  { %1459 = vmatpush.bf16.msra.mxu3 %v1331_v15  ;;  %664 = vmatpush.bf16.msra.mxu1 %v1339_v16  ;;  %v1168_v40 = vor.u32 %v1323_v36, %v1165_v37  ;;  %v1297_v45 = vld [vmem:[%s2038_s0 + $0xb0] sm:$0xf0]  ;;  %v1296_v46 = vld [vmem:[%s2038_s0 + $0xac] sm:$0xf]  ;;  %v1326_v48 = vld [vmem:[%s2038_s0 + $0x19c] sm:$0xf] }
  0x18   :  { %v1177_v49 = vld [vmem:[%s2038_s0 + $0x1a4] sm:$0xf0]  ;;  %v1067_v58 = vld [vmem:[%s2038_s0 + $0xc0] sm:$0xf]  ;;  %v1159_v62 = vld [vmem:[%s2038_s0 + $0x170] sm:$0xf] }
  0x19   :  { %v1180_v53 = vor.u32 %v1326_v48, %v1177_v49  ;;  %v1322_v63 = vld [vmem:[%s2038_s0 + $0x178] sm:$0xf0]  ;;  %v1171_v24 = vld [vmem:[%s2038_s0 + $0x188] sm:$0xf]  ;;  %v1325_v25 = vld [vmem:[%s2038_s0 + $0x190] sm:$0xf0] }
  0x1a   :  { %1258 = vmatmul.msk.bf16.gmra.mxu2 %vm505_vm0, %v992_v19  ;;  %566 = vmatpush.bf16.msra.mxu0 %v1330_v20  ;;  %v1052_v19 = vor.u32 %v1295_v18, %v1051_v17  ;;  %v1111_v37 = vld [vmem:[%s2038_s0 + $0x110] sm:$0xf]  ;;  %v1306_v49 = vld [vmem:[%s2038_s0 + $0xf8] sm:$0xf0] }
  0x1b   :  { %1460 = vmatpush.bf16.msra.mxu3 %v1330_v20  ;;  %665 = vmatpush.bf16.msra.mxu1 %v1338_v21  ;;  %v1031_v20 = vld [vmem:[%s2038_s0 + $0x78] sm:$0xf]  ;;  %v1091_v48 = vld [vmem:[%s2038_s0 + $0xf0] sm:$0xf] }
  0x1e   :  { %567 = vmatpush.bf16.msra.mxu0 %v1329_v22 }
  0x1f   :  { %1461 = vmatpush.bf16.msra.mxu3 %v1329_v22  ;;  %666 = vmatpush.bf16.msra.mxu1 %v1337_v23  ;;  %v1290_v22 = vld [vmem:[%s2038_s0 + $0x7c] sm:$0xf] }
  0x21   :  { %568 = vmatmul.bf16.vlgmr.msra.gmra.mxu0 %v972_v30  ;;  %v1298_v30 = vld [vmem:[%s2038_s0 + $0xb8] sm:$0xf0] }
  0x22   :  { %638 = vmatmul.bf16.vlgmr.msra.gmra.mxu3 %v1140_v31  ;;  %667 = vmatmul.bf16.vlgmr.msra.gmra.mxu1 %v976_v32  ;;  %v1064_v31 = vor.u32 %v1298_v30, %v1063_v29  ;;  %v1043_v32 = vld [vmem:[%s2038_s0 + $0x90] sm:$0xf] }
  0x23   :  { %1462 = vmatpush.bf16.msrb.mxu3 %v1344_v1  ;;  %v1009_v1 = vld [vmem:[%s2038_s0 + $0x54] sm:$0xf0]  ;;  %v1044_v38 = vor.u32 %v1294_v33, %v1043_v32  ;;  %v1172_v33 = vor.u32 %v1325_v25, %v1171_v24 }
  0x27   :  { %1463 = vmatpush.bf16.msrb.mxu3 %v1343_v4  ;;  %v1012_v4 = vor.u32 %v1284_v0, %v1009_v1  ;;  %v1790_v1 = vld [vmem:[%s2039_s2] ss:$0 sm:$0xff] }
  0x2a   :  { %1259 = vmatmul.msk.bf16.gmra.mxu2 %vm505_vm0, %v1004_v35  ;;  %v1045_v35 = vld [vmem:[%s2038_s0 + $0x9c] sm:$0xf0] }
  0x2b   :  { %1464 = vmatpush.bf16.msrb.mxu3 %v1342_v10  ;;  %v1287_v10 = vld [vmem:[%s2038_s0 + $0x64] sm:$0xf]  ;;  %v1048_v39 = vor.u32 %v1293_v34, %v1045_v35 }
  0x2c   :  { %v1024_v15 = vor.u32 %v1287_v10, %v1021_v11 }
  0x2f   :  { %1465 = vmatpush.bf16.msrb.mxu3 %v1341_v12  ;;  %v1317_v12 = vld [vmem:[%s2038_s0 + $0x154] sm:$0xf] }
  0x31   :  { %573 = vmatmul.bf16.gmra.mxu0 %v984_v42  ;;  %v1301_v42 = vld [vmem:[%s2038_s0 + $0xd0] sm:$0xf0] }
  0x32   :  { %643 = vmatmul.bf16.gmra.mxu3 %v1152_v43  ;;  %672 = vmatmul.bf16.gmra.mxu1 %v988_v44  ;;  %v1076_v43 = vor.u32 %v1301_v42, %v1075_v41  ;;  %v1055_v44 = vld [vmem:[%s2038_s0 + $0xa8] sm:$0xf] }
  0x33   :  { %1466 = vmatpush.bf16.msrb.mxu3 %v1340_v14  ;;  %v1020_v14 = vor.u32 %v1288_v9, %v1019_v8  ;;  %v1056_v51 = vor.u32 %v1297_v45, %v1055_v44  ;;  %v1099_v8 = vld [vmem:[%s2038_s0 + $0xf8] sm:$0xf]  ;;  %v1307_v9 = vld [vmem:[%s2038_s0 + $0x100] sm:$0xf0] }
  0x37   :  { %1467 = vmatpush.bf16.msrb.mxu3 %v1339_v16  ;;  %v1144_v16 = vor.u32 %v1317_v12, %v1141_v13 }
  0x3a   :  { %1260 = vmatmul.msk.bf16.gmra.mxu2 %vm505_vm0, %v1016_v47  ;;  %v1057_v47 = vld [vmem:[%s2038_s0 + $0xb4] sm:$0xf0] }
  0x3b   :  { %1468 = vmatpush.bf16.msrb.mxu3 %v1338_v21  ;;  %v1291_v21 = vld [vmem:[%s2038_s0 + $0x80] sm:$0xf0]  ;;  %v1060_v52 = vor.u32 %v1296_v46, %v1057_v47 }
  0x3c   :  { %v1032_v26 = vor.u32 %v1291_v21, %v1031_v20  ;;  %v1303_v20 = vld [vmem:[%s2038_s0 + $0xe0] sm:$0xf0]  ;;  %v1302_v21 = vld [vmem:[%s2038_s0 + $0xdc] sm:$0xf] }
  0x3f   :  { %1469 = vmatpush.bf16.msrb.mxu3 %v1337_v23  ;;  %v1033_v23 = vld [vmem:[%s2038_s0 + $0x84] sm:$0xf0] }
  0x40   :  { %v1036_v27 = vor.u32 %v1290_v22, %v1033_v23  ;;  %v1081_v23 = vld [vmem:[%s2038_s0 + $0xe4] sm:$0xf0] }
  0x41   :  { %578 = vmatmul.bf16.gmra.mxu0 %v996_v54  ;;  %v1087_v54 = vld [vmem:[%s2038_s0 + $0xe0] sm:$0xf]  ;;  %v1084_v32 = vor.u32 %v1302_v21, %v1081_v23 }
  0x42   :  { %648 = vmatmul.bf16.gmra.mxu3 %v1164_v55  ;;  %677 = vmatmul.bf16.gmra.mxu1 %v1000_v56  ;;  %v1304_v55 = vld [vmem:[%s2038_s0 + $0xe8] sm:$0xf0] }
  0x43   :  { %1470 = vmatpush.bf16.msra.mxu3 %v1502_v2  ;;  %v1008_v2 = vor.u32 %v1285_v61, %v1007_v60  ;;  %v1088_v57 = vor.u32 %v1304_v55, %v1087_v54  ;;  %v1299_v60 = vld [vmem:[%s2038_s0 + $0xc4] sm:$0xf]  ;;  %v1069_v61 = vld [vmem:[%s2038_s0 + $0xcc] sm:$0xf0]  ;;  %v1328_v54 = vld [vmem:[%s2038_s0 + $0x1a8] sm:$0xf0] }
  0x47   :  { %1471 = vmatpush.bf16.msra.mxu3 %v1514_v5  ;;  %v1039_v5 = vld [vmem:[%s2038_s0 + $0x80] sm:$0xf] }
  0x48   :  { %v1040_v7 = vor.u32 %v1292_v6, %v1039_v5  ;;  %v1160_v5 = vor.u32 %v1322_v63, %v1159_v62 }
  0x4a   :  { %1261 = vmatmul.msk.bf16.gmra.mxu2 %vm505_vm0, %v1028_v59  ;;  %v1300_v59 = vld [vmem:[%s2038_s0 + $0xc8] sm:$0xf0] }
  0x51   :  { %583 = vmatmul.bf16.gmra.mxu0 %v1008_v2  ;;  %v1068_v2 = vor.u32 %v1300_v59, %v1067_v58  ;;  %v1092_v59 = vor.u32 %v1306_v49, %v1091_v48 }
  0x52   :  { %653 = vmatmul.bf16.gmra.mxu3 %v1176_v3  ;;  %682 = vmatmul.bf16.gmra.mxu1 %v1012_v4  ;;  %v1072_v4 = vor.u32 %v1299_v60, %v1069_v61 }
  0x5a   :  { %1262 = vmatmul.msk.bf16.gmra.mxu2 %vm505_vm0, %v1040_v7 }
  0x61   :  { %588 = vmatmul.bf16.gmra.mxu0 %v1020_v14  ;;  %v1100_v14 = vor.u32 %v1307_v9, %v1099_v8 }
  0x62   :  { %687 = vmatmul.bf16.gmra.mxu1 %v1024_v15  ;;  %737 = vmatmul.bf16.vlgmr.msrb.gmra.mxu3 %v1144_v16 }
  0x6a   :  { %1263 = vmatmul.msk.bf16.gmra.mxu2 %vm505_vm0, %v1052_v19  ;;  %v1079_v19 = vld [vmem:[%s2038_s0 + $0xd8] sm:$0xf] }
  0x6b   :  { %v1080_v30 = vor.u32 %v1303_v20, %v1079_v19  ;;  %v1105_v19 = vld [vmem:[%s2038_s0 + $0x114] sm:$0xf0] }
  0x71   :  { %593 = vmatmul.bf16.gmra.mxu0 %v1032_v26 }
  0x72   :  { %692 = vmatmul.bf16.gmra.mxu1 %v1036_v27  ;;  %742 = vmatmul.bf16.gmra.mxu3 %v1156_v28 }
  0x7a   :  { %1264 = vmatmul.msk.bf16.gmra.mxu2 %vm505_vm0, %v1064_v31 }
  0x81   :  { %598 = vmatmul.bf16.gmra.mxu0 %v1044_v38  ;;  %v1310_v38 = vld [vmem:[%s2038_s0 + $0x118] sm:$0xf0] }
  0x82   :  { %697 = vmatmul.bf16.gmra.mxu1 %v1048_v39  ;;  %747 = vmatmul.bf16.gmra.mxu3 %v1168_v40 }
  0x8a   :  { %1265 = vmatmul.msk.bf16.gmra.mxu2 %vm505_vm0, %v1076_v43  ;;  %v1112_v43 = vor.u32 %v1310_v38, %v1111_v37 }
  0x8d   :  { %v767_v50 = vpop.f32.mrf.mxu2 }
  0x91   :  { %603 = vmatmul.bf16.gmra.mxu0 %v1056_v51 }
  0x92   :  { %702 = vmatmul.bf16.gmra.mxu1 %v1060_v52  ;;  %752 = vmatmul.bf16.gmra.mxu3 %v1180_v53  ;;  %v1093_v52 = vld [vmem:[%s2038_s0 + $0xfc] sm:$0xf0] }
  0x93   :  { %v1183_v53 = vld [vmem:[%s2038_s0 + $0x1a0] sm:$0xf] }
  0x94   :  { %v1184_v62 = vor.u32 %v1328_v54, %v1183_v53 }
  0x95   :  { %v769_v56 = vpop.f32.mrf.mxu2 }
  0x9a   :  { %1266 = vmatmul.msk.bf16.gmra.mxu2 %vm505_vm0, %v1088_v57 }
  0x9d   :  { %v772_v0 = vpop.f32.mrf.mxu2 }
  0x9e   :  { %v569_v3 = vpop.f32.mrf.mxu0 }
  0x9f   :  { %v668_v6 = vpop.f32.mrf.mxu1  ;;  %v570_v7 = vadd.f32 %v1790_v1, %v569_v3  ;;  %v1123_v3 = vld [vmem:[%s2038_s0 + $0x128] sm:$0xf] }
  0xa1   :  { %608 = vmatmul.bf16.gmra.mxu0 %v1068_v2  ;;  %v669_v10 = vadd.f32 %v668_v6, %v570_v7 }
  0xa2   :  { %707 = vmatmul.bf16.gmra.mxu1 %v1072_v4  ;;  %1272 = vmatmul.msk.bf16.vlgmr.msra.gmra.mxu3 %vm505_vm0, %v1160_v5  ;;  %v1313_v4 = vld [vmem:[%s2038_s0 + $0x130] sm:$0xf0] }
  0xa3   :  { %v768_v17 = vadd.f32 %v767_v50, %v669_v10  ;;  %v1305_v50 = vld [vmem:[%s2038_s0 + $0xf4] sm:$0xf]  ;;  %v1124_v9 = vor.u32 %v1313_v4, %v1123_v3 }
  0xa4   :  { %v1096_v61 = vor.u32 %v1305_v50, %v1093_v52 }
  0xa5   :  { %v1800_v11 = vpop.f32.mrf.mxu3  ;;  %v774_v12 = vpop.f32.mrf.mxu2  ;;  %v857_v26 = vmax.f32 %v768_v17, 0.0 }
  0xa6   :  { %v571_v13 = vpop.f32.mrf.mxu0 }
  0xa7   :  { %v572_v15 = vadd.f32 %v1790_v1, %v571_v13  ;;  %v670_v16 = vpop.f32.mrf.mxu1 }
  0xa9   :  { %v671_v18 = vadd.f32 %v670_v16, %v572_v15  ;;  %v1103_v15 = vld [vmem:[%s2038_s0 + $0x108] sm:$0xf]  ;;  %v1309_v16 = vld [vmem:[%s2038_s0 + $0x110] sm:$0xf0] }
  0xaa   :  { %1267 = vmatmul.msk.bf16.gmra.mxu2 %vm505_vm0, %v1100_v14  ;;  %v1104_v24 = vor.u32 %v1309_v16, %v1103_v15 }
  0xab   :  { %v770_v22 = vadd.f32 %v769_v56, %v671_v18  ;;  %v1308_v18 = vld [vmem:[%s2038_s0 + $0x10c] sm:$0xf] }
  0xad   :  { %v858_v27 = vmax.f32 %v770_v22, 0.0  ;;  %v1822_v28 = vpop.f32.mrf.mxu3  ;;  %v777_v29 = vpop.f32.mrf.mxu2 }
  0xae   :  { %v574_v31 = vpop.f32.mrf.mxu0  ;;  %v642_v15 = vadd.f32 %v1790_v1, %v1822_v28 }
  0xaf   :  { %v1350_v34 = vpack.c.bf16 %v858_v27, %v857_v26  ;;  %v673_v35 = vpop.f32.mrf.mxu1  ;;  %v575_v36 = vadd.f32 %v1790_v1, %v574_v31  ;;  %v1108_v26 = vor.u32 %v1308_v18, %v1105_v19  ;;  %v1135_v31 = vld [vmem:[%s2038_s0 + $0x140] sm:$0xf] }
  0xb1   :  { %1351 = vst [vmem:[%s2040_s3] sm:$0xff] %v1350_v34   ;;  %613 = vmatmul.bf16.gmra.mxu0 %v1080_v30  ;;  %v674_v39 = vadd.f32 %v673_v35, %v575_v36 }
  0xb2   :  { %712 = vmatmul.bf16.gmra.mxu1 %v1084_v32  ;;  %1273 = vmatmul.msk.bf16.gmra.mxu3 %vm505_vm0, %v1172_v33  ;;  %v1316_v32 = vld [vmem:[%s2038_s0 + $0x148] sm:$0xf0] }
  0xb3   :  { %v773_v46 = vadd.f32 %v772_v0, %v674_v39  ;;  %v1136_v37 = vor.u32 %v1316_v32, %v1135_v31 }
  0xb5   :  { %v1835_v40 = vpop.f32.mrf.mxu3  ;;  %v779_v41 = vpop.f32.mrf.mxu2  ;;  %v859_v55 = vmax.f32 %v773_v46, 0.0  ;;  %v1311_v46 = vld [vmem:[%s2038_s0 + $0x124] sm:$0xf] }
  0xb6   :  { %v576_v42 = vpop.f32.mrf.mxu0 }
  0xb7   :  { %v577_v44 = vadd.f32 %v1790_v1, %v576_v42  ;;  %v675_v45 = vpop.f32.mrf.mxu1 }
  0xb9   :  { %v676_v47 = vadd.f32 %v675_v45, %v577_v44  ;;  %v1312_v44 = vld [vmem:[%s2038_s0 + $0x128] sm:$0xf0] }
  0xba   :  { %1268 = vmatmul.msk.bf16.gmra.mxu2 %vm505_vm0, %v1112_v43  ;;  %v1115_v43 = vld [vmem:[%s2038_s0 + $0x120] sm:$0xf] }
  0xbb   :  { %v775_v51 = vadd.f32 %v774_v12, %v676_v47  ;;  %v1117_v47 = vld [vmem:[%s2038_s0 + $0x12c] sm:$0xf0]  ;;  %v1116_v52 = vor.u32 %v1312_v44, %v1115_v43 }
  0xbc   :  { %v1120_v54 = vor.u32 %v1311_v46, %v1117_v47 }
  0xbd   :  { %v860_v56 = vmax.f32 %v775_v51, 0.0  ;;  %v1857_v57 = vpop.f32.mrf.mxu3  ;;  %v782_v58 = vpop.f32.mrf.mxu2 }
  0xbe   :  { %v579_v60 = vpop.f32.mrf.mxu0 }
  0xbf   :  { %v1355_v63 = vpack.c.bf16 %v860_v56, %v859_v55  ;;  %v678_v0 = vpop.f32.mrf.mxu1  ;;  %v580_v2 = vadd.f32 %v1790_v1, %v579_v60  ;;  %v1319_v60 = vld [vmem:[%s2038_s0 + $0x160] sm:$0xf0] }
  0xc1   :  { %1437 = vst [vmem:[%s2040_s3 + $0x8] sm:$0xff] %v1355_v63   ;;  %618 = vmatmul.bf16.gmra.mxu0 %v1092_v59  ;;  %v679_v5 = vadd.f32 %v678_v0, %v580_v2  ;;  %v1147_v59 = vld [vmem:[%s2038_s0 + $0x158] sm:$0xf] }
  0xc2   :  { %717 = vmatmul.bf16.gmra.mxu1 %v1096_v61  ;;  %1274 = vmatmul.msk.bf16.gmra.mxu3 %vm505_vm0, %v1184_v62  ;;  %v640_v61 = vadd.f32 %v1790_v1, %v1800_v11  ;;  %v1148_v4 = vor.u32 %v1319_v60, %v1147_v59  ;;  %v1315_v11 = vld [vmem:[%s2038_s0 + $0x140] sm:$0xf0] }
  0xc3   :  { %v778_v13 = vadd.f32 %v777_v29, %v679_v5 }
  0xc5   :  { %v1870_v6 = vpop.f32.mrf.mxu3  ;;  %v784_v7 = vpop.f32.mrf.mxu2  ;;  %v861_v20 = vmax.f32 %v778_v13, 0.0  ;;  %v1314_v13 = vld [vmem:[%s2038_s0 + $0x13c] sm:$0xf] }
  0xc6   :  { %v581_v8 = vpop.f32.mrf.mxu0 }
  0xc7   :  { %v582_v10 = vadd.f32 %v1790_v1, %v581_v8  ;;  %v680_v12 = vpop.f32.mrf.mxu1 }
  0xc9   :  { %v681_v14 = vadd.f32 %v680_v12, %v582_v10  ;;  %v1127_v10 = vld [vmem:[%s2038_s0 + $0x138] sm:$0xf] }
  0xca   :  { %1269 = vmatmul.msk.bf16.gmra.mxu2 %vm505_vm0, %v1124_v9 }
  0xcb   :  { %v780_v17 = vadd.f32 %v779_v41, %v681_v14  ;;  %v1129_v14 = vld [vmem:[%s2038_s0 + $0x144] sm:$0xf0] }
  0xcd   :  { %v862_v21 = vmax.f32 %v780_v17, 0.0  ;;  %v1886_v22 = vpop.f32.mrf.mxu3  ;;  %v787_v23 = vpop.f32.mrf.mxu2 }
  0xce   :  { %v584_v25 = vpop.f32.mrf.mxu0 }
  0xcf   :  { %v1360_v27 = vpack.c.bf16 %v862_v21, %v861_v20  ;;  %v683_v29 = vpop.f32.mrf.mxu1  ;;  %v585_v30 = vadd.f32 %v1790_v1, %v584_v25  ;;  %v1128_v20 = vor.u32 %v1315_v11, %v1127_v10 }
  0xd1   :  { %1438 = vst [vmem:[%s2040_s3 + $0x10] sm:$0xff] %v1360_v27   ;;  %623 = vmatmul.bf16.gmra.mxu0 %v1104_v24  ;;  %v684_v33 = vadd.f32 %v683_v29, %v585_v30  ;;  %v1132_v24 = vor.u32 %v1314_v13, %v1129_v14 }
  0xd2   :  { %722 = vmatmul.bf16.gmra.mxu1 %v1108_v26 }
  0xd3   :  { %v783_v41 = vadd.f32 %v782_v58, %v684_v33 }
  0xd5   :  { %v1898_v34 = vpop.f32.mrf.mxu3  ;;  %v789_v35 = vpop.f32.mrf.mxu2  ;;  %v863_v48 = vmax.f32 %v783_v41, 0.0 }
  0xd6   :  { %v586_v36 = vpop.f32.mrf.mxu0 }
  0xd7   :  { %v587_v38 = vadd.f32 %v1790_v1, %v586_v36  ;;  %v685_v39 = vpop.f32.mrf.mxu1 }
  0xd9   :  { %v686_v42 = vadd.f32 %v685_v39, %v587_v38 }
  0xda   :  { %1270 = vmatmul.msk.bf16.gmra.mxu2 %vm505_vm0, %v1136_v37 }
  0xdb   :  { %v785_v45 = vadd.f32 %v784_v7, %v686_v42 }
  0xdd   :  { %v864_v49 = vmax.f32 %v785_v45, 0.0  ;;  %v1914_v50 = vpop.f32.mrf.mxu3  ;;  %v792_v51 = vpop.f32.mrf.mxu2 }
  0xde   :  { %v589_v53 = vpop.f32.mrf.mxu0 }
  0xdf   :  { %v1365_v55 = vpack.c.bf16 %v864_v49, %v863_v48  ;;  %v688_v56 = vpop.f32.mrf.mxu1  ;;  %v590_v58 = vadd.f32 %v1790_v1, %v589_v53 }
  0xe1   :  { %1439 = vst [vmem:[%s2040_s3 + $0x18] sm:$0xff] %v1365_v55   ;;  %628 = vmatmul.bf16.gmra.mxu0 %v1116_v52  ;;  %v689_v62 = vadd.f32 %v688_v56, %v590_v58 }
  0xe2   :  { %727 = vmatmul.bf16.gmra.mxu1 %v1120_v54 }
  0xe3   :  { %v788_v8 = vadd.f32 %v787_v23, %v689_v62 }
  0xe5   :  { %v738_v63 = vpop.f32.mrf.mxu3  ;;  %v794_v0 = vpop.f32.mrf.mxu2  ;;  %v865_v16 = vmax.f32 %v788_v8, 0.0 }
  0xe6   :  { %v1928_v2 = vadd.f32 %v738_v63, %v640_v61  ;;  %v591_v3 = vpop.f32.mrf.mxu0 }
  0xe7   :  { %v592_v5 = vadd.f32 %v1790_v1, %v591_v3  ;;  %v690_v7 = vpop.f32.mrf.mxu1 }
  0xe9   :  { %v691_v9 = vadd.f32 %v690_v7, %v592_v5 }
  0xea   :  { %1271 = vmatmul.msk.bf16.gmra.mxu2 %vm505_vm0, %v1148_v4 }
  0xeb   :  { %v790_v12 = vadd.f32 %v789_v35, %v691_v9 }
  0xed   :  { %v866_v17 = vmax.f32 %v790_v12, 0.0  ;;  %v740_v18 = vpop.f32.mrf.mxu3  ;;  %v797_v19 = vpop.f32.mrf.mxu2 }
  0xee   :  { %v1946_v21 = vadd.f32 %v740_v18, %v642_v15  ;;  %v594_v23 = vpop.f32.mrf.mxu0 }
  0xef   :  { %v1370_v25 = vpack.c.bf16 %v866_v17, %v865_v16  ;;  %v693_v26 = vpop.f32.mrf.mxu1  ;;  %v595_v27 = vadd.f32 %v1790_v1, %v594_v23 }
  0xf1   :  { %1440 = vst [vmem:[%s2040_s3 + $0x20] sm:$0xff] %v1370_v25   ;;  %633 = vmatmul.bf16.gmra.mxu0 %v1128_v20  ;;  %v694_v28 = vadd.f32 %v693_v26, %v595_v27 }
  0xf2   :  { %732 = vmatmul.bf16.gmra.mxu1 %v1132_v24 }
  0xf3   :  { %v793_v35 = vadd.f32 %v792_v51, %v694_v28 }
  0xf5   :  { %v1952_v29 = vpop.f32.mrf.mxu3  ;;  %v799_v30 = vpop.f32.mrf.mxu2  ;;  %v867_v38 = vmax.f32 %v793_v35, 0.0  ;;  %v647_v35 = vadd.f32 %v1790_v1, %v1857_v57 }
  0xf6   :  { %v596_v31 = vpop.f32.mrf.mxu0 }
  0xf7   :  { %v597_v32 = vadd.f32 %v1790_v1, %v596_v31  ;;  %v695_v33 = vpop.f32.mrf.mxu1  ;;  %v645_v31 = vadd.f32 %v1790_v1, %v1835_v40 }
  0xf9   :  { %v696_v36 = vadd.f32 %v695_v33, %v597_v32 }
  0xfb   :  { %v795_v37 = vadd.f32 %v794_v0, %v696_v36  ;;  %v744_v36 = vadd.f32 %v1952_v29, %v645_v31 }
  0xfd   :  { %v868_v39 = vmax.f32 %v795_v37, 0.0  ;;  %v745_v41 = vpop.f32.mrf.mxu3  ;;  %v802_v42 = vpop.f32.mrf.mxu2 }
  0xfe   :  { %v599_v43 = vpop.f32.mrf.mxu0 }
  0xff   :  { %v1375_v44 = vpack.c.bf16 %v868_v39, %v867_v38  ;;  %v698_v45 = vpop.f32.mrf.mxu1  ;;  %v600_v46 = vadd.f32 %v1790_v1, %v599_v43  ;;  %v746_v38 = vadd.f32 %v745_v41, %v647_v35 }
 0x101   :  { %1441 = vst [vmem:[%s2040_s3 + $0x28] sm:$0xff] %v1375_v44   ;;  %v699_v47 = vadd.f32 %v698_v45, %v600_v46 }
 0x103   :  { %v798_v54 = vadd.f32 %v797_v19, %v699_v47 }
 0x105   :  { %v1959_v48 = vpop.f32.mrf.mxu3  ;;  %v804_v49 = vpop.f32.mrf.mxu2  ;;  %v869_v58 = vmax.f32 %v798_v54, 0.0 }
 0x106   :  { %v601_v51 = vpop.f32.mrf.mxu0 }
 0x107   :  { %v602_v52 = vadd.f32 %v1790_v1, %v601_v51  ;;  %v700_v53 = vpop.f32.mrf.mxu1 }
 0x109   :  { %v701_v55 = vadd.f32 %v700_v53, %v602_v52 }
 0x10b   :  { %v800_v56 = vadd.f32 %v799_v30, %v701_v55 }
 0x10d   :  { %v870_v59 = vmax.f32 %v800_v56, 0.0  ;;  %v1962_v60 = vpop.f32.mrf.mxu3  ;;  %v807_v61 = vpop.f32.mrf.mxu2 }
 0x10e   :  { %v604_v62 = vpop.f32.mrf.mxu0 }
 0x10f   :  { %v1380_v63 = vpack.c.bf16 %v870_v59, %v869_v58  ;;  %v703_v0 = vpop.f32.mrf.mxu1  ;;  %v605_v3 = vadd.f32 %v1790_v1, %v604_v62  ;;  %v650_v59 = vadd.f32 %v1790_v1, %v1870_v6 }
 0x111   :  { %1442 = vst [vmem:[%s2040_s3 + $0x30] sm:$0xff] %v1380_v63   ;;  %v704_v4 = vadd.f32 %v703_v0, %v605_v3  ;;  %v652_v63 = vadd.f32 %v1790_v1, %v1886_v22  ;;  %v749_v0 = vadd.f32 %v1959_v48, %v650_v59 }
 0x113   :  { %v803_v11 = vadd.f32 %v802_v42, %v704_v4  ;;  %v751_v4 = vadd.f32 %v1962_v60, %v652_v63 }
 0x115   :  { %v1968_v5 = vpop.f32.mrf.mxu3  ;;  %v809_v7 = vpop.f32.mrf.mxu2  ;;  %v871_v14 = vmax.f32 %v803_v11, 0.0 }
 0x116   :  { %v606_v8 = vpop.f32.mrf.mxu0 }
 0x117   :  { %v607_v9 = vadd.f32 %v1790_v1, %v606_v8  ;;  %v705_v10 = vpop.f32.mrf.mxu1 }
 0x119   :  { %v706_v12 = vadd.f32 %v705_v10, %v607_v9 }
 0x11b   :  { %v805_v13 = vadd.f32 %v804_v49, %v706_v12 }
 0x11d   :  { %v872_v15 = vmax.f32 %v805_v13, 0.0  ;;  %v1971_v16 = vpop.f32.mrf.mxu3  ;;  %v812_v17 = vpop.f32.mrf.mxu2 }
 0x11e   :  { %v609_v18 = vpop.f32.mrf.mxu0 }
 0x11f   :  { %v1385_v19 = vpack.c.bf16 %v872_v15, %v871_v14  ;;  %v708_v20 = vpop.f32.mrf.mxu1  ;;  %v610_v23 = vadd.f32 %v1790_v1, %v609_v18 }
 0x121   :  { %1443 = vst [vmem:[%s2040_s3 + $0x38] sm:$0xff] %v1385_v19   ;;  %v709_v24 = vadd.f32 %v708_v20, %v610_v23 }
 0x123   :  { %v808_v32 = vadd.f32 %v807_v61, %v709_v24 }
 0x125   :  { %v814_v25 = vpop.f32.mrf.mxu2  ;;  %v842_v26 = vpop.f32.mrf.mxu3  ;;  %v873_v42 = vmax.f32 %v808_v32, 0.0 }
 0x126   :  { %v611_v27 = vpop.f32.mrf.mxu0  ;;  %v843_v39 = vadd.f32 %v842_v26, %v744_v36 }
 0x127   :  { %v612_v28 = vadd.f32 %v1790_v1, %v611_v27  ;;  %v710_v30 = vpop.f32.mrf.mxu1 }
 0x128   :  { %v887_v52 = vmax.f32 %v843_v39, 0.0 }
 0x129   :  { %v711_v33 = vadd.f32 %v710_v30, %v612_v28  ;;  %v657_v28 = vadd.f32 %v1790_v1, %v1914_v50 }
 0x12b   :  { %v810_v37 = vadd.f32 %v809_v7, %v711_v33  ;;  %v756_v32 = vadd.f32 %v1971_v16, %v657_v28 }
 0x12d   :  { %v874_v43 = vmax.f32 %v810_v37, 0.0  ;;  %v817_v44 = vpop.f32.mrf.mxu2  ;;  %v844_v45 = vpop.f32.mrf.mxu3 }
 0x12e   :  { %v845_v46 = vadd.f32 %v844_v45, %v746_v38  ;;  %v614_v47 = vpop.f32.mrf.mxu0 }
 0x12f   :  { %v1390_v49 = vpack.c.bf16 %v874_v43, %v873_v42  ;;  %v713_v51 = vpop.f32.mrf.mxu1  ;;  %v615_v57 = vadd.f32 %v1790_v1, %v614_v47 }
 0x130   :  { %v888_v40 = vmax.f32 %v845_v46, 0.0 }
 0x131   :  { %1444 = vst [vmem:[%s2040_s3 + $0x40] sm:$0xff] %v1390_v49   ;;  %v714_v41 = vadd.f32 %v713_v51, %v615_v57 }
 0x132   :  { %v1425_v29 = vpack.c.bf16 %v888_v40, %v887_v52 }
 0x133   :  { %v813_v61 = vadd.f32 %v812_v17, %v714_v41 }
 0x134   :  { %1451 = vst [vmem:[%s2040_s3 + $0x78] sm:$0xff] %v1425_v29  }
 0x135   :  { %v819_v53 = vpop.f32.mrf.mxu2  ;;  %v847_v54 = vpop.f32.mrf.mxu3  ;;  %v875_v8 = vmax.f32 %v813_v61, 0.0 }
 0x136   :  { %v616_v55 = vpop.f32.mrf.mxu0  ;;  %v848_v7 = vadd.f32 %v847_v54, %v749_v0 }
 0x137   :  { %v617_v56 = vadd.f32 %v1790_v1, %v616_v55  ;;  %v715_v58 = vpop.f32.mrf.mxu1 }
 0x138   :  { %v889_v6 = vmax.f32 %v848_v7, 0.0 }
 0x139   :  { %v716_v62 = vadd.f32 %v715_v58, %v617_v56 }
 0x13b   :  { %v815_v3 = vadd.f32 %v814_v25, %v716_v62  ;;  %v655_v25 = vadd.f32 %v1790_v1, %v1898_v34 }
 0x13d   :  { %v876_v9 = vmax.f32 %v815_v3, 0.0  ;;  %v822_v10 = vpop.f32.mrf.mxu2  ;;  %v849_v11 = vpop.f32.mrf.mxu3  ;;  %v754_v30 = vadd.f32 %v1968_v5, %v655_v25 }
 0x13e   :  { %v850_v12 = vadd.f32 %v849_v11, %v751_v4  ;;  %v619_v13 = vpop.f32.mrf.mxu0 }
 0x13f   :  { %v1395_v14 = vpack.c.bf16 %v876_v9, %v875_v8  ;;  %v718_v15 = vpop.f32.mrf.mxu1  ;;  %v620_v22 = vadd.f32 %v1790_v1, %v619_v13 }
 0x140   :  { %v890_v17 = vmax.f32 %v850_v12, 0.0 }
 0x141   :  { %1445 = vst [vmem:[%s2040_s3 + $0x48] sm:$0xff] %v1395_v14   ;;  %v719_v60 = vadd.f32 %v718_v15, %v620_v22 }
 0x142   :  { %v1430_v48 = vpack.c.bf16 %v890_v17, %v889_v6 }
 0x143   :  { %v818_v26 = vadd.f32 %v817_v44, %v719_v60 }
 0x144   :  { %1452 = vst [vmem:[%s2040_s3 + $0x80] sm:$0xff] %v1430_v48  }
 0x145   :  { %v824_v18 = vpop.f32.mrf.mxu2  ;;  %v852_v19 = vpop.f32.mrf.mxu3  ;;  %v877_v35 = vmax.f32 %v818_v26, 0.0 }
 0x146   :  { %v621_v20 = vpop.f32.mrf.mxu0  ;;  %v853_v33 = vadd.f32 %v852_v19, %v754_v30 }
 0x147   :  { %v622_v23 = vadd.f32 %v1790_v1, %v621_v20  ;;  %v720_v24 = vpop.f32.mrf.mxu1 }
 0x148   :  { %v891_v34 = vmax.f32 %v853_v33, 0.0 }
 0x149   :  { %v721_v27 = vadd.f32 %v720_v24, %v622_v23 }
 0x14b   :  { %v820_v31 = vadd.f32 %v819_v53, %v721_v27 }
 0x14d   :  { %v878_v36 = vmax.f32 %v820_v31, 0.0  ;;  %v827_v37 = vpop.f32.mrf.mxu2  ;;  %v854_v38 = vpop.f32.mrf.mxu3 }
 0x14e   :  { %v855_v39 = vadd.f32 %v854_v38, %v756_v32  ;;  %v624_v42 = vpop.f32.mrf.mxu0 }
 0x14f   :  { %v1400_v43 = vpack.c.bf16 %v878_v36, %v877_v35  ;;  %v723_v45 = vpop.f32.mrf.mxu1  ;;  %v625_v50 = vadd.f32 %v1790_v1, %v624_v42 }
 0x150   :  { %v892_v44 = vmax.f32 %v855_v39, 0.0 }
 0x151   :  { %1446 = vst [vmem:[%s2040_s3 + $0x50] sm:$0xff] %v1400_v43   ;;  %v724_v16 = vadd.f32 %v723_v45, %v625_v50 }
 0x152   :  { %v1435_v5 = vpack.c.bf16 %v892_v44, %v891_v34 }
 0x153   :  { %v823_v52 = vadd.f32 %v822_v10, %v724_v16 }
 0x154   :  { %1453 = vst [vmem:[%s2040_s3 + $0x88] sm:$0xff] %v1435_v5  }
 0x155   :  { %v829_v46 = vpop.f32.mrf.mxu2  ;;  %v879_v29 = vmax.f32 %v823_v52, 0.0 }
 0x156   :  { %v626_v47 = vpop.f32.mrf.mxu0 }
 0x157   :  { %v627_v49 = vadd.f32 %v1790_v1, %v626_v47  ;;  %v725_v51 = vpop.f32.mrf.mxu1 }
 0x159   :  { %v726_v40 = vadd.f32 %v725_v51, %v627_v49 }
 0x15b   :  { %v825_v57 = vadd.f32 %v824_v18, %v726_v40 }
 0x15d   :  { %v880_v41 = vmax.f32 %v825_v57, 0.0  ;;  %v832_v53 = vpop.f32.mrf.mxu2 }
 0x15e   :  { %v629_v54 = vpop.f32.mrf.mxu0 }
 0x15f   :  { %v1405_v55 = vpack.c.bf16 %v880_v41, %v879_v29  ;;  %v728_v56 = vpop.f32.mrf.mxu1  ;;  %v630_v58 = vadd.f32 %v1790_v1, %v629_v54 }
 0x161   :  { %1447 = vst [vmem:[%s2040_s3 + $0x58] sm:$0xff] %v1405_v55   ;;  %v729_v59 = vadd.f32 %v728_v56, %v630_v58 }
 0x163   :  { %v828_v3 = vadd.f32 %v827_v37, %v729_v59 }
 0x165   :  { %v834_v61 = vpop.f32.mrf.mxu2  ;;  %v881_v8 = vmax.f32 %v828_v3, 0.0 }
 0x166   :  { %v631_v62 = vpop.f32.mrf.mxu0 }
 0x167   :  { %v632_v63 = vadd.f32 %v1790_v1, %v631_v62  ;;  %v730_v0 = vpop.f32.mrf.mxu1 }
 0x169   :  { %v731_v4 = vadd.f32 %v730_v0, %v632_v63 }
 0x16b   :  { %v830_v7 = vadd.f32 %v829_v46, %v731_v4 }
 0x16d   :  { %v882_v9 = vmax.f32 %v830_v7, 0.0  ;;  %v837_v10 = vpop.f32.mrf.mxu2 }
 0x16e   :  { %v634_v11 = vpop.f32.mrf.mxu0  ;;  %v838_v15 = vadd.f32 %v837_v10, %v1928_v2 }
 0x16f   :  { %v1410_v12 = vpack.c.bf16 %v882_v9, %v881_v8  ;;  %v733_v13 = vpop.f32.mrf.mxu1  ;;  %v635_v14 = vadd.f32 %v1790_v1, %v634_v11 }
 0x170   :  { %v885_v18 = vmax.f32 %v838_v15, 0.0 }
 0x171   :  { %1448 = vst [vmem:[%s2040_s3 + $0x60] sm:$0xff] %v1410_v12   ;;  %v734_v6 = vadd.f32 %v733_v13, %v635_v14 }
 0x173   :  { %v833_v23 = vadd.f32 %v832_v53, %v734_v6 }
 0x175   :  { %v839_v17 = vpop.f32.mrf.mxu2  ;;  %v883_v27 = vmax.f32 %v833_v23, 0.0 }
 0x176   :  { %v840_v22 = vadd.f32 %v839_v17, %v1946_v21  ;;  %v636_v48 = vpop.f32.mrf.mxu0 }
 0x177   :  { %v637_v60 = vadd.f32 %v1790_v1, %v636_v48  ;;  %v735_v20 = vpop.f32.mrf.mxu1 }
 0x178   :  { %v886_v19 = vmax.f32 %v840_v22, 0.0 }
 0x179   :  { %v736_v24 = vadd.f32 %v735_v20, %v637_v60 }
 0x17a   :  { %v1420_v25 = vpack.c.bf16 %v886_v19, %v885_v18 }
 0x17b   :  { %v835_v26 = vadd.f32 %v834_v61, %v736_v24 }
 0x17c   :  { %1450 = vst [vmem:[%s2040_s3 + $0x70] sm:$0xff] %v1420_v25  }
 0x17d   :  { %v884_v2 = vmax.f32 %v835_v26, 0.0 }
 0x17f   :  { %v1415_v28 = vpack.c.bf16 %v884_v2, %v883_v27 }
 0x181   :  { %1449 = vst [vmem:[%s2040_s3 + $0x68] sm:$0xff] %v1415_v28  }

// kernel: forward.6
= control target key start
LH: loop header
LB: loop body
LE: loop exit
PB: predicated region body
PF: predicated region fallthrough
CT: control target
= control target key end

     0   :  { %vm451_vm0 = vcmask 523264   ;;  %s1292_s1 = inlined_call_operand.vmem [shape: bf16[576,128], index: 1, kind: input, shape index: {}]   ;;  %s1293_s2 = inlined_call_operand.vmem [shape: f32[1,128], index: 2, kind: input, shape index: {}]   ;;  %s1294_s0 = inlined_call_operand.vmem [shape: bf16[72,576], index: 0, kind: input, shape index: {}]   ;;  %s1295_s3 = inlined_call_operand.vmem [shape: bf16[72,128], index: 3, kind: output, shape index: {}]  }
   0x1   :  { %v919_v0 = vld [vmem:[%s1292_s1 + $0x38] sm:$0xff]  ;;  %v918_v1 = vld [vmem:[%s1292_s1 + $0x30] sm:$0xff]  ;;  %v917_v4 = vld [vmem:[%s1292_s1 + $0x28] sm:$0xff] }
   0x2   :  { %467 = vmatpush.bf16.msra.mxu0 %v919_v0  ;;  %971 = vmatpush.bf16.msra.mxu1 %v919_v0  ;;  %v943_v2 = vld [vmem:[%s1292_s1 + $0xf8] sm:$0xff]  ;;  %v942_v3 = vld [vmem:[%s1292_s1 + $0xf0] sm:$0xff]  ;;  %v941_v5 = vld [vmem:[%s1292_s1 + $0xe8] sm:$0xff] }
   0x3   :  { %972 = vmatpush.bf16.msra.mxu2 %v919_v0  ;;  %566 = vmatpush.bf16.msra.mxu3 %v943_v2  ;;  %v916_v6 = vld [vmem:[%s1292_s1 + $0x20] sm:$0xff]  ;;  %v915_v8 = vld [vmem:[%s1292_s1 + $0x18] sm:$0xff]  ;;  %v914_v10 = vld [vmem:[%s1292_s1 + $0x10] sm:$0xff] }
   0x4   :  { %v940_v7 = vld [vmem:[%s1292_s1 + $0xe0] sm:$0xff]  ;;  %v939_v9 = vld [vmem:[%s1292_s1 + $0xd8] sm:$0xff]  ;;  %v938_v11 = vld [vmem:[%s1292_s1 + $0xd0] sm:$0xff] }
   0x5   :  { %v913_v12 = vld [vmem:[%s1292_s1 + $0x8] sm:$0xff]  ;;  %v1050_v13 = vld [vmem:[%s1294_s0 + $0xa0] sm:$0xff]  ;;  %v894_v17 = vld [vmem:[%s1294_s0 + $0x10] sm:$0xf0] }
   0x6   :  { %468 = vmatpush.bf16.msra.mxu0 %v918_v1  ;;  %973 = vmatpush.bf16.msra.mxu1 %v918_v1  ;;  %v937_v14 = vld [vmem:[%s1292_s1 + $0xc8] sm:$0xff]  ;;  %v912_v15 = vld [vmem:[%s1292_s1] sm:$0xff]  ;;  %v705_v18 = vld [vmem:[%s1294_s0 + $0x50] sm:$0xf]  ;;  %v185_v20 = vunpack.c.l.b16 %v1050_v13 }
   0x7   :  { %974 = vmatpush.bf16.msra.mxu2 %v918_v1  ;;  %567 = vmatpush.bf16.msra.mxu3 %v942_v3  ;;  %v665_v16 = vld [vmem:[%s1294_s0] sm:$0xf]  ;;  %v904_v19 = vld [vmem:[%s1294_s0 + $0x60] sm:$0xf0]  ;;  %v927_v21 = vld [vmem:[%s1292_s1 + $0x78] sm:$0xff] }
   0x8   :  { %v935_v22 = vld [vmem:[%s1292_s1 + $0xb8] sm:$0xff]  ;;  %v666_v24 = vor.u32 %v894_v17, %v665_v16  ;;  %v706_v25 = vor.u32 %v904_v19, %v705_v18  ;;  %v210_v26 = vpack.c.b16 %v185_v20, %v185_v20  ;;  %v936_v27 = vld [vmem:[%s1292_s1 + $0xc0] sm:$0xff]  ;;  %v893_v28 = vld [vmem:[%s1294_s0 + $0xc] sm:$0xf] }
   0x9   :  { %v947_v23 = vld [vmem:[%s1292_s1 + $0x118] sm:$0xff]  ;;  %v675_v29 = vld [vmem:[%s1294_s0 + $0x1c] sm:$0xf0]  ;;  %v926_v30 = vld [vmem:[%s1292_s1 + $0x70] sm:$0xff] }
   0xa   :  { %469 = vmatpush.bf16.msra.mxu0 %v917_v4  ;;  %975 = vmatpush.bf16.msra.mxu1 %v917_v4  ;;  %v934_v31 = vld [vmem:[%s1292_s1 + $0xb0] sm:$0xff]  ;;  %v678_v33 = vor.u32 %v893_v28, %v675_v29  ;;  %v925_v34 = vld [vmem:[%s1292_s1 + $0x68] sm:$0xff]  ;;  %v924_v37 = vld [vmem:[%s1292_s1 + $0x60] sm:$0xff] }
   0xb   :  { %976 = vmatpush.bf16.msra.mxu2 %v917_v4  ;;  %568 = vmatpush.bf16.msra.mxu3 %v941_v5  ;;  %v946_v32 = vld [vmem:[%s1292_s1 + $0x110] sm:$0xff]  ;;  %v933_v35 = vld [vmem:[%s1292_s1 + $0xa8] sm:$0xff]  ;;  %v932_v38 = vld [vmem:[%s1292_s1 + $0xa0] sm:$0xff] }
   0xc   :  { %v945_v36 = vld [vmem:[%s1292_s1 + $0x108] sm:$0xff]  ;;  %v944_v39 = vld [vmem:[%s1292_s1 + $0x100] sm:$0xff]  ;;  %v899_v41 = vld [vmem:[%s1294_s0 + $0x38] sm:$0xf0] }
   0xd   :  { %v685_v40 = vld [vmem:[%s1294_s0 + $0x28] sm:$0xf]  ;;  %v725_v42 = vld [vmem:[%s1294_s0 + $0x78] sm:$0xf]  ;;  %v909_v43 = vld [vmem:[%s1294_s0 + $0x88] sm:$0xf0] }
   0xe   :  { %470 = vmatpush.bf16.msra.mxu0 %v916_v6  ;;  %977 = vmatpush.bf16.msra.mxu1 %v916_v6  ;;  %v923_v44 = vld [vmem:[%s1292_s1 + $0x58] sm:$0xff]  ;;  %v686_v46 = vor.u32 %v899_v41, %v685_v40  ;;  %v726_v47 = vor.u32 %v909_v43, %v725_v42  ;;  %v898_v48 = vld [vmem:[%s1294_s0 + $0x34] sm:$0xf]  ;;  %v695_v49 = vld [vmem:[%s1294_s0 + $0x44] sm:$0xf0]  ;;  %v186_v41 = vunpack.c.h.b16 %v1050_v13 }
   0xf   :  { %978 = vmatpush.bf16.msra.mxu2 %v916_v6  ;;  %569 = vmatpush.bf16.msra.mxu3 %v940_v7  ;;  %v931_v45 = vld [vmem:[%s1292_s1 + $0x98] sm:$0xff]  ;;  %v922_v50 = vld [vmem:[%s1292_s1 + $0x50] sm:$0xff]  ;;  %v698_v52 = vor.u32 %v898_v48, %v695_v49  ;;  %v921_v53 = vld [vmem:[%s1292_s1 + $0x48] sm:$0xff] }
  0x10   :  { %v930_v51 = vld [vmem:[%s1292_s1 + $0x90] sm:$0xff]  ;;  %v929_v54 = vld [vmem:[%s1292_s1 + $0x88] sm:$0xff]  ;;  %v920_v55 = vld [vmem:[%s1292_s1 + $0x40] sm:$0xff] }
  0x11   :  { %v928_v56 = vld [vmem:[%s1292_s1 + $0x80] sm:$0xff]  ;;  %v673_v57 = vld [vmem:[%s1294_s0 + $0x8] sm:$0xf]  ;;  %v895_v58 = vld [vmem:[%s1294_s0 + $0x18] sm:$0xf0] }
  0x12   :  { %471 = vmatpush.bf16.msra.mxu0 %v915_v8  ;;  %979 = vmatpush.bf16.msra.mxu1 %v915_v8  ;;  %v892_v59 = vld [vmem:[%s1294_s0 + $0x4] sm:$0xf]  ;;  %v667_v60 = vld [vmem:[%s1294_s0 + $0x14] sm:$0xf0]  ;;  %v681_v61 = vld [vmem:[%s1294_s0 + $0x10] sm:$0xf]  ;;  %v674_v63 = vor.u32 %v895_v58, %v673_v57 }
  0x13   :  { %980 = vmatpush.bf16.msra.mxu2 %v915_v8  ;;  %570 = vmatpush.bf16.msra.mxu3 %v939_v9  ;;  %v896_v62 = vld [vmem:[%s1294_s0 + $0x20] sm:$0xf0]  ;;  %v670_v0 = vor.u32 %v892_v59, %v667_v60  ;;  %v903_v2 = vld [vmem:[%s1294_s0 + $0x5c] sm:$0xf]  ;;  %v715_v3 = vld [vmem:[%s1294_s0 + $0x6c] sm:$0xf0] }
  0x14   :  { %v682_v1 = vor.u32 %v896_v62, %v681_v61  ;;  %v718_v4 = vor.u32 %v903_v2, %v715_v3  ;;  %v693_v5 = vld [vmem:[%s1294_s0 + $0x30] sm:$0xf]  ;;  %v900_v6 = vld [vmem:[%s1294_s0 + $0x40] sm:$0xf0]  ;;  %v897_v7 = vld [vmem:[%s1294_s0 + $0x2c] sm:$0xf] }
  0x15   :  { %v687_v8 = vld [vmem:[%s1294_s0 + $0x3c] sm:$0xf0]  ;;  %v701_v9 = vld [vmem:[%s1294_s0 + $0x38] sm:$0xf]  ;;  %v905_v19 = vld [vmem:[%s1294_s0 + $0x68] sm:$0xf0] }
  0x16   :  { %472 = vmatpush.bf16.msra.mxu0 %v914_v10  ;;  %981 = vmatpush.bf16.msra.mxu1 %v914_v10  ;;  %v735_v16 = vld [vmem:[%s1294_s0 + $0x94] sm:$0xf0]  ;;  %v902_v20 = vld [vmem:[%s1294_s0 + $0x54] sm:$0xf]  ;;  %v1263_v58 = vld [vmem:[%s1293_s2] ss:$0 sm:$0xff] }
  0x17   :  { %982 = vmatpush.bf16.msra.mxu2 %v914_v10  ;;  %571 = vmatpush.bf16.msra.mxu3 %v938_v11  ;;  %v901_v10 = vld [vmem:[%s1294_s0 + $0x48] sm:$0xf0]  ;;  %v694_v11 = vor.u32 %v900_v6, %v693_v5  ;;  %v713_v18 = vld [vmem:[%s1294_s0 + $0x58] sm:$0xf] }
  0x1a   :  { %473 = vmatpush.bf16.msra.mxu0 %v913_v12  ;;  %983 = vmatpush.bf16.msra.mxu1 %v913_v12 }
  0x1b   :  { %984 = vmatpush.bf16.msra.mxu2 %v913_v12  ;;  %572 = vmatpush.bf16.msra.mxu3 %v937_v14  ;;  %v690_v12 = vor.u32 %v897_v7, %v687_v8  ;;  %v702_v14 = vor.u32 %v901_v10, %v701_v9 }
  0x1e   :  { %474 = vmatpush.bf16.msra.mxu0 %v912_v15  ;;  %985 = vmatpush.bf16.msra.mxu1 %v912_v15 }
  0x1f   :  { %986 = vmatpush.bf16.msra.mxu2 %v912_v15  ;;  %573 = vmatpush.bf16.msra.mxu3 %v936_v27  ;;  %v908_v15 = vld [vmem:[%s1294_s0 + $0x84] sm:$0xf] }
  0x20   :  { %v738_v17 = vor.u32 %v908_v15, %v735_v16 }
  0x21   :  { %475 = vmatmul.bf16.vlgmr.msra.gmra.mxu0 %v666_v24  ;;  %485 = vmatmul.bf16.vlgmr.msra.gmra.mxu1 %v706_v25  ;;  %v40_v24 = vld [vmem:[%s1294_s0 + $0xa8] sm:$0xff]  ;;  %v714_v25 = vor.u32 %v905_v19, %v713_v18 }
  0x22   :  { %500 = vmatpush.bf16.msrb.mxu1 %v927_v21  ;;  %603 = vmatpush.bf16.msrb.mxu0 %v947_v23  ;;  %v707_v21 = vld [vmem:[%s1294_s0 + $0x64] sm:$0xf0]  ;;  %v906_v23 = vld [vmem:[%s1294_s0 + $0x70] sm:$0xf0]  ;;  %v188_v28 = vunpack.c.h.b16 %v40_v24  ;;  %v187_v40 = vunpack.c.l.b16 %v40_v24 }
  0x23   :  { %533 = vmatpush.bf16.msrb.mxu2 %v935_v22  ;;  %574 = vmatmul.bf16.vlgmr.msra.gmra.mxu3 %v678_v33  ;;  %v721_v22 = vld [vmem:[%s1294_s0 + $0x60] sm:$0xf]  ;;  %v727_v33 = vld [vmem:[%s1294_s0 + $0x8c] sm:$0xf0] }
  0x24   :  { %495 = vmatmul.bf16.vlgmr.msra.gmra.mxu2 %v210_v26  ;;  %v710_v26 = vor.u32 %v902_v20, %v707_v21  ;;  %v722_v27 = vor.u32 %v906_v23, %v721_v22  ;;  %v213_v29 = vpack.c.b16 %v188_v28, %v188_v28  ;;  %v212_v43 = vpack.c.b16 %v187_v40, %v187_v40 }
  0x26   :  { %501 = vmatpush.bf16.msrb.mxu1 %v926_v30  ;;  %604 = vmatpush.bf16.msrb.mxu0 %v946_v32  ;;  %v733_v30 = vld [vmem:[%s1294_s0 + $0x80] sm:$0xf]  ;;  %v907_v32 = vld [vmem:[%s1294_s0 + $0x7c] sm:$0xf] }
  0x27   :  { %534 = vmatpush.bf16.msrb.mxu2 %v934_v31  ;;  %v910_v31 = vld [vmem:[%s1294_s0 + $0x90] sm:$0xf0] }
  0x2a   :  { %502 = vmatpush.bf16.msrb.mxu1 %v925_v34  ;;  %605 = vmatpush.bf16.msrb.mxu0 %v945_v36  ;;  %v741_v34 = vld [vmem:[%s1294_s0 + $0x88] sm:$0xf]  ;;  %v734_v36 = vor.u32 %v910_v31, %v733_v30 }
  0x2b   :  { %535 = vmatpush.bf16.msrb.mxu2 %v933_v35  ;;  %v911_v35 = vld [vmem:[%s1294_s0 + $0x98] sm:$0xf0] }
  0x2e   :  { %503 = vmatpush.bf16.msrb.mxu1 %v924_v37  ;;  %606 = vmatpush.bf16.msrb.mxu0 %v944_v39  ;;  %v730_v37 = vor.u32 %v907_v32, %v727_v33  ;;  %v41_v39 = vld [vmem:[%s1294_s0 + $0xb0] sm:$0xf] }
  0x2f   :  { %536 = vmatpush.bf16.msrb.mxu2 %v932_v38  ;;  %v742_v38 = vor.u32 %v911_v35, %v741_v34  ;;  %v189_v42 = vunpack.c.l.b16 %v41_v39 }
  0x31   :  { %480 = vmatmul.bf16.gmra.mxu0 %v686_v46  ;;  %490 = vmatmul.bf16.gmra.mxu1 %v726_v47 }
  0x32   :  { %504 = vmatpush.bf16.msrb.mxu1 %v923_v44  ;;  %v211_v44 = vpack.c.b16 %v186_v41, %v186_v41 }
  0x33   :  { %537 = vmatpush.bf16.msrb.mxu2 %v931_v45  ;;  %579 = vmatmul.bf16.gmra.mxu3 %v698_v52  ;;  %v214_v45 = vpack.c.b16 %v189_v42, %v189_v42 }
  0x36   :  { %505 = vmatpush.bf16.msrb.mxu1 %v922_v50 }
  0x37   :  { %538 = vmatpush.bf16.msrb.mxu2 %v930_v51 }
  0x3a   :  { %506 = vmatpush.bf16.msrb.mxu1 %v921_v53 }
  0x3b   :  { %539 = vmatpush.bf16.msrb.mxu2 %v929_v54 }
  0x3e   :  { %507 = vmatpush.bf16.msrb.mxu1 %v920_v55 }
  0x3f   :  { %540 = vmatpush.bf16.msrb.mxu2 %v928_v56 }
  0x41   :  { %508 = vmatmul.bf16.vlgmr.msrb.gmra.mxu1 %v670_v0  ;;  %887 = vmatmul.msk.bf16.vlgmr.msrb.gmra.mxu0 %vm451_vm0, %v682_v1 }
  0x42   :  { %541 = vmatmul.bf16.vlgmr.msrb.gmra.mxu2 %v674_v63 }
  0x43   :  { %584 = vmatmul.bf16.gmra.mxu3 %v718_v4 }
  0x51   :  { %513 = vmatmul.bf16.gmra.mxu1 %v690_v12  ;;  %888 = vmatmul.msk.bf16.gmra.mxu0 %vm451_vm0, %v702_v14 }
  0x52   :  { %546 = vmatmul.bf16.gmra.mxu2 %v694_v11 }
  0x53   :  { %589 = vmatmul.bf16.gmra.mxu3 %v738_v17 }
  0x61   :  { %518 = vmatmul.bf16.gmra.mxu1 %v710_v26  ;;  %889 = vmatmul.msk.bf16.gmra.mxu0 %vm451_vm0, %v722_v27 }
  0x62   :  { %551 = vmatmul.bf16.gmra.mxu2 %v714_v25 }
  0x63   :  { %594 = vmatmul.bf16.gmra.mxu3 %v213_v29 }
  0x71   :  { %523 = vmatmul.bf16.gmra.mxu1 %v730_v37  ;;  %890 = vmatmul.msk.bf16.gmra.mxu0 %vm451_vm0, %v742_v38 }
  0x72   :  { %556 = vmatmul.bf16.gmra.mxu2 %v734_v36 }
  0x81   :  { %528 = vmatmul.bf16.gmra.mxu1 %v211_v44  ;;  %891 = vmatmul.msk.bf16.gmra.mxu0 %vm451_vm0, %v214_v45 }
  0x82   :  { %561 = vmatmul.bf16.gmra.mxu2 %v212_v43 }
  0x9e   :  { %v476_v46 = vpop.f32.mrf.mxu0  ;;  %v486_v47 = vpop.f32.mrf.mxu1 }
  0x9f   :  { %v477_v61 = vadd.f32 %v1263_v58, %v476_v46  ;;  %v487_v36 = vadd.f32 %v1263_v58, %v486_v47 }
  0xa6   :  { %v478_v49 = vpop.f32.mrf.mxu0  ;;  %v488_v50 = vpop.f32.mrf.mxu1 }
  0xa7   :  { %v1254_v48 = vpop.f32.mrf.mxu2  ;;  %v575_v51 = vpop.f32.mrf.mxu3  ;;  %v479_v1 = vadd.f32 %v1263_v58, %v478_v49  ;;  %v489_v44 = vadd.f32 %v1263_v58, %v488_v50 }
  0xae   :  { %v481_v53 = vpop.f32.mrf.mxu0  ;;  %v1256_v54 = vpop.f32.mrf.mxu1 }
  0xaf   :  { %v498_v52 = vpop.f32.mrf.mxu2  ;;  %v577_v13 = vpop.f32.mrf.mxu3  ;;  %v482_v15 = vadd.f32 %v1263_v58, %v481_v53 }
  0xb6   :  { %v483_v55 = vpop.f32.mrf.mxu0  ;;  %v1258_v56 = vpop.f32.mrf.mxu1 }
  0xb7   :  { %v580_v57 = vpop.f32.mrf.mxu3  ;;  %v484_v23 = vadd.f32 %v1263_v58, %v483_v55 }
  0xbe   :  { %v509_v59 = vpop.f32.mrf.mxu1  ;;  %v608_v60 = vpop.f32.mrf.mxu0 }
  0xbf   :  { %v582_v62 = vpop.f32.mrf.mxu3  ;;  %v510_v63 = vadd.f32 %v509_v59, %v477_v61  ;;  %v492_v61 = vadd.f32 %v1263_v58, %v1256_v54 }
  0xc5   :  { %v542_v0 = vpop.f32.mrf.mxu2 }
  0xc6   :  { %v543_v2 = vadd.f32 %v542_v0, %v510_v63  ;;  %v511_v3 = vpop.f32.mrf.mxu1  ;;  %v610_v4 = vpop.f32.mrf.mxu0 }
  0xc7   :  { %v512_v5 = vadd.f32 %v511_v3, %v479_v1  ;;  %v585_v6 = vpop.f32.mrf.mxu3 }
  0xc8   :  { %v576_v7 = vadd.f32 %v575_v51, %v543_v2 }
  0xca   :  { %v609_v10 = vadd.f32 %v608_v60, %v576_v7 }
  0xcc   :  { %v632_v18 = vmax.f32 %v609_v10, 0.0 }
  0xcd   :  { %v544_v8 = vpop.f32.mrf.mxu2 }
  0xce   :  { %v545_v9 = vadd.f32 %v544_v8, %v512_v5  ;;  %v514_v12 = vpop.f32.mrf.mxu1  ;;  %v613_v14 = vpop.f32.mrf.mxu0 }
  0xcf   :  { %v587_v17 = vpop.f32.mrf.mxu3  ;;  %v515_v20 = vadd.f32 %v514_v12, %v482_v15 }
  0xd0   :  { %v578_v11 = vadd.f32 %v577_v13, %v545_v9 }
  0xd2   :  { %v611_v16 = vadd.f32 %v610_v4, %v578_v11  ;;  %v494_v4 = vadd.f32 %v1263_v58, %v1258_v56  ;;  %v497_v11 = vadd.f32 %v1263_v58, %v1254_v48 }
  0xd4   :  { %v633_v19 = vmax.f32 %v611_v16, 0.0 }
  0xd5   :  { %v547_v21 = vpop.f32.mrf.mxu2 }
  0xd6   :  { %v951_v22 = vpack.c.bf16 %v633_v19, %v632_v18  ;;  %v548_v24 = vadd.f32 %v547_v21, %v515_v20  ;;  %v516_v25 = vpop.f32.mrf.mxu1  ;;  %v615_v26 = vpop.f32.mrf.mxu0 }
  0xd7   :  { %v517_v27 = vadd.f32 %v516_v25, %v484_v23  ;;  %v590_v28 = vpop.f32.mrf.mxu3 }
  0xd8   :  { %952 = vst [vmem:[%s1295_s3] sm:$0xff] %v951_v22   ;;  %v581_v29 = vadd.f32 %v580_v57, %v548_v24 }
  0xda   :  { %v614_v32 = vadd.f32 %v613_v14, %v581_v29 }
  0xdc   :  { %v634_v39 = vmax.f32 %v614_v32, 0.0 }
  0xdd   :  { %v549_v30 = vpop.f32.mrf.mxu2 }
  0xde   :  { %v550_v31 = vadd.f32 %v549_v30, %v517_v27  ;;  %v519_v34 = vpop.f32.mrf.mxu1  ;;  %v618_v35 = vpop.f32.mrf.mxu0 }
  0xdf   :  { %v592_v38 = vpop.f32.mrf.mxu3  ;;  %v520_v41 = vadd.f32 %v519_v34, %v487_v36 }
  0xe0   :  { %v583_v33 = vadd.f32 %v582_v62, %v550_v31 }
  0xe2   :  { %v616_v37 = vadd.f32 %v615_v26, %v583_v33 }
  0xe4   :  { %v635_v40 = vmax.f32 %v616_v37, 0.0 }
  0xe5   :  { %v552_v42 = vpop.f32.mrf.mxu2 }
  0xe6   :  { %v956_v43 = vpack.c.bf16 %v635_v40, %v634_v39  ;;  %v553_v45 = vadd.f32 %v552_v42, %v520_v41  ;;  %v521_v46 = vpop.f32.mrf.mxu1  ;;  %v620_v49 = vpop.f32.mrf.mxu0 }
  0xe7   :  { %v522_v51 = vadd.f32 %v521_v46, %v489_v44  ;;  %v595_v52 = vpop.f32.mrf.mxu3 }
  0xe8   :  { %968 = vst [vmem:[%s1295_s3 + $0x8] sm:$0xff] %v956_v43   ;;  %v586_v53 = vadd.f32 %v585_v6, %v553_v45 }
  0xea   :  { %v619_v55 = vadd.f32 %v618_v35, %v586_v53 }
  0xec   :  { %v636_v63 = vmax.f32 %v619_v55, 0.0 }
  0xed   :  { %v554_v47 = vpop.f32.mrf.mxu2 }
  0xee   :  { %v555_v13 = vadd.f32 %v554_v47, %v522_v51  ;;  %v524_v59 = vpop.f32.mrf.mxu1  ;;  %v623_v60 = vpop.f32.mrf.mxu0 }
  0xef   :  { %v597_v62 = vpop.f32.mrf.mxu3  ;;  %v525_v1 = vadd.f32 %v524_v59, %v492_v61 }
  0xf0   :  { %v588_v57 = vadd.f32 %v587_v17, %v555_v13 }
  0xf2   :  { %v621_v50 = vadd.f32 %v620_v49, %v588_v57 }
  0xf4   :  { %v637_v0 = vmax.f32 %v621_v50, 0.0 }
  0xf5   :  { %v557_v2 = vpop.f32.mrf.mxu2 }
  0xf6   :  { %v961_v3 = vpack.c.bf16 %v637_v0, %v636_v63  ;;  %v558_v5 = vadd.f32 %v557_v2, %v525_v1  ;;  %v526_v6 = vpop.f32.mrf.mxu1  ;;  %v625_v7 = vpop.f32.mrf.mxu0 }
  0xf7   :  { %v527_v8 = vadd.f32 %v526_v6, %v494_v4 }
  0xf8   :  { %969 = vst [vmem:[%s1295_s3 + $0x10] sm:$0xff] %v961_v3   ;;  %v591_v9 = vadd.f32 %v590_v28, %v558_v5 }
  0xfa   :  { %v624_v12 = vadd.f32 %v623_v60, %v591_v9 }
  0xfc   :  { %v638_v18 = vmax.f32 %v624_v12, 0.0 }
  0xfd   :  { %v559_v54 = vpop.f32.mrf.mxu2 }
  0xfe   :  { %v560_v10 = vadd.f32 %v559_v54, %v527_v8  ;;  %v529_v15 = vpop.f32.mrf.mxu1  ;;  %v628_v16 = vpop.f32.mrf.mxu0 }
  0xff   :  { %v530_v56 = vadd.f32 %v529_v15, %v497_v11 }
 0x100   :  { %v593_v14 = vadd.f32 %v592_v38, %v560_v10 }
 0x102   :  { %v626_v17 = vadd.f32 %v625_v7, %v593_v14 }
 0x104   :  { %v639_v19 = vmax.f32 %v626_v17, 0.0 }
 0x105   :  { %v562_v20 = vpop.f32.mrf.mxu2 }
 0x106   :  { %v966_v21 = vpack.c.bf16 %v639_v19, %v638_v18  ;;  %v563_v22 = vadd.f32 %v562_v20, %v530_v56  ;;  %v531_v24 = vpop.f32.mrf.mxu1  ;;  %v630_v25 = vpop.f32.mrf.mxu0 }
 0x108   :  { %970 = vst [vmem:[%s1295_s3 + $0x18] sm:$0xff] %v966_v21   ;;  %v596_v23 = vadd.f32 %v595_v52, %v563_v22 }
 0x10a   :  { %v629_v26 = vadd.f32 %v628_v16, %v596_v23 }
 0x10c   :  { %v640_v48 = vmax.f32 %v629_v26, 0.0 }
 0x10d   :  { %v564_v58 = vpop.f32.mrf.mxu2 }
 0x10e   :  { %v649_v27 = vpack.c.bf16 %v640_v48, %v640_v48 }
 0x110   :  { %658 = vst [vmem:[%s1295_s3 + $0x20] sm:$0xf] %v649_v27 }

// kernel: forward.7
= control target key start
LH: loop header
LB: loop body
LE: loop exit
PB: predicated region body
PF: predicated region fallthrough
CT: control target
= control target key end

     0   :  { %s5334_s1 = inlined_call_operand.vmem [shape: bf16[4608,128], index: 1, kind: input, shape index: {}]   ;;  %s5335_s0 = inlined_call_operand.vmem [shape: bf16[8,4608], index: 0, kind: input, shape index: {}]   ;;  %s5336_s2 = inlined_call_operand.vmem [shape: f32[1,128], index: 2, kind: input, shape index: {}]   ;;  %s5337_s3 = inlined_call_operand.vmem [shape: f32[8,128], index: 3, kind: output, shape index: {}]  }
   0x1   :  { %v4099_v0 = vld [vmem:[%s5334_s1 + $0x38] sm:$0xff]  ;;  %v4098_v4 = vld [vmem:[%s5334_s1 + $0x30] sm:$0xff]  ;;  %v4097_v8 = vld [vmem:[%s5334_s1 + $0x28] sm:$0xff] }
   0x2   :  { %v4107_v1 = vld [vmem:[%s5334_s1 + $0x78] sm:$0xff]  ;;  %2466 = vmatpush.bf16.msra.mxu0 %v4099_v0  ;;  %v4106_v5 = vld [vmem:[%s5334_s1 + $0x70] sm:$0xff]  ;;  %v4105_v9 = vld [vmem:[%s5334_s1 + $0x68] sm:$0xff] }
   0x3   :  { %v4115_v2 = vld [vmem:[%s5334_s1 + $0xb8] sm:$0xff]  ;;  %2479 = vmatpush.bf16.msra.mxu1 %v4107_v1  ;;  %v4114_v6 = vld [vmem:[%s5334_s1 + $0xb0] sm:$0xff]  ;;  %v4113_v10 = vld [vmem:[%s5334_s1 + $0xa8] sm:$0xff] }
   0x4   :  { %v4123_v3 = vld [vmem:[%s5334_s1 + $0xf8] sm:$0xff]  ;;  %2492 = vmatpush.bf16.msra.mxu2 %v4115_v2  ;;  %v4122_v7 = vld [vmem:[%s5334_s1 + $0xf0] sm:$0xff]  ;;  %v4121_v11 = vld [vmem:[%s5334_s1 + $0xe8] sm:$0xff] }
   0x5   :  { %2505 = vmatpush.bf16.msra.mxu3 %v4123_v3  ;;  %v4096_v12 = vld [vmem:[%s5334_s1 + $0x20] sm:$0xff]  ;;  %v4095_v16 = vld [vmem:[%s5334_s1 + $0x18] sm:$0xff]  ;;  %v4094_v20 = vld [vmem:[%s5334_s1 + $0x10] sm:$0xff] }
   0x6   :  { %2467 = vmatpush.bf16.msra.mxu0 %v4098_v4  ;;  %v4104_v13 = vld [vmem:[%s5334_s1 + $0x60] sm:$0xff]  ;;  %v4103_v17 = vld [vmem:[%s5334_s1 + $0x58] sm:$0xff]  ;;  %v4102_v21 = vld [vmem:[%s5334_s1 + $0x50] sm:$0xff] }
   0x7   :  { %2480 = vmatpush.bf16.msra.mxu1 %v4106_v5  ;;  %v4112_v14 = vld [vmem:[%s5334_s1 + $0xa0] sm:$0xff]  ;;  %v4111_v18 = vld [vmem:[%s5334_s1 + $0x98] sm:$0xff]  ;;  %v4110_v22 = vld [vmem:[%s5334_s1 + $0x90] sm:$0xff] }
   0x8   :  { %2493 = vmatpush.bf16.msra.mxu2 %v4114_v6  ;;  %v4120_v15 = vld [vmem:[%s5334_s1 + $0xe0] sm:$0xff]  ;;  %v4119_v19 = vld [vmem:[%s5334_s1 + $0xd8] sm:$0xff]  ;;  %v4118_v23 = vld [vmem:[%s5334_s1 + $0xd0] sm:$0xff] }
   0x9   :  { %2506 = vmatpush.bf16.msra.mxu3 %v4122_v7  ;;  %v4093_v24 = vld [vmem:[%s5334_s1 + $0x8] sm:$0xff]  ;;  %v14_v29 = vld [vmem:[%s5335_s0] sm:$0xff]  ;;  %v4131_v38 = vld [vmem:[%s5334_s1 + $0x138] sm:$0xff] }
   0xa   :  { %2468 = vmatpush.bf16.msra.mxu0 %v4097_v8  ;;  %v4101_v25 = vld [vmem:[%s5334_s1 + $0x48] sm:$0xff]  ;;  %v4092_v30 = vld [vmem:[%s5334_s1] sm:$0xff]  ;;  %v630_v33 = vunpack.c.l.b16 %v14_v29  ;;  %v631_v37 = vunpack.c.h.b16 %v14_v29  ;;  %v4139_v39 = vld [vmem:[%s5334_s1 + $0x178] sm:$0xff] }
   0xb   :  { %2481 = vmatpush.bf16.msra.mxu1 %v4105_v9  ;;  %v4109_v26 = vld [vmem:[%s5334_s1 + $0x88] sm:$0xff]  ;;  %v4100_v31 = vld [vmem:[%s5334_s1 + $0x40] sm:$0xff]  ;;  %v4147_v40 = vld [vmem:[%s5334_s1 + $0x1b8] sm:$0xff] }
   0xc   :  { %2494 = vmatpush.bf16.msra.mxu2 %v4113_v10  ;;  %v4117_v27 = vld [vmem:[%s5334_s1 + $0xc8] sm:$0xff]  ;;  %v4108_v34 = vld [vmem:[%s5334_s1 + $0x80] sm:$0xff]  ;;  %v4155_v41 = vld [vmem:[%s5334_s1 + $0x1f8] sm:$0xff]  ;;  %v666_v43 = vpack.c.b16 %v630_v33, %v630_v33  ;;  %v667_v45 = vpack.c.b16 %v631_v37, %v631_v37 }
   0xd   :  { %2507 = vmatpush.bf16.msra.mxu3 %v4121_v11  ;;  %v15_v28 = vld [vmem:[%s5335_s0 + $0x8] sm:$0xff]  ;;  %v4116_v35 = vld [vmem:[%s5334_s1 + $0xc0] sm:$0xff]  ;;  %v4130_v46 = vld [vmem:[%s5334_s1 + $0x130] sm:$0xff] }
   0xe   :  { %2469 = vmatpush.bf16.msra.mxu0 %v4096_v12  ;;  %v632_v32 = vunpack.c.l.b16 %v15_v28  ;;  %v633_v36 = vunpack.c.h.b16 %v15_v28  ;;  %v4138_v47 = vld [vmem:[%s5334_s1 + $0x170] sm:$0xff]  ;;  %v4129_v50 = vld [vmem:[%s5334_s1 + $0x128] sm:$0xff]  ;;  %v4128_v54 = vld [vmem:[%s5334_s1 + $0x120] sm:$0xff] }
   0xf   :  { %2482 = vmatpush.bf16.msra.mxu1 %v4104_v13  ;;  %v4146_v48 = vld [vmem:[%s5334_s1 + $0x1b0] sm:$0xff]  ;;  %v4137_v51 = vld [vmem:[%s5334_s1 + $0x168] sm:$0xff]  ;;  %v4136_v55 = vld [vmem:[%s5334_s1 + $0x160] sm:$0xff] }
  0x10   :  { %2495 = vmatpush.bf16.msra.mxu2 %v4112_v14  ;;  %v668_v42 = vpack.c.b16 %v632_v32, %v632_v32  ;;  %v669_v44 = vpack.c.b16 %v633_v36, %v633_v36  ;;  %v4154_v49 = vld [vmem:[%s5334_s1 + $0x1f0] sm:$0xff]  ;;  %v4145_v52 = vld [vmem:[%s5334_s1 + $0x1a8] sm:$0xff]  ;;  %v4144_v56 = vld [vmem:[%s5334_s1 + $0x1a0] sm:$0xff] }
  0x11   :  { %2508 = vmatpush.bf16.msra.mxu3 %v4120_v15  ;;  %v4153_v53 = vld [vmem:[%s5334_s1 + $0x1e8] sm:$0xff]  ;;  %v4152_v57 = vld [vmem:[%s5334_s1 + $0x1e0] sm:$0xff]  ;;  %v4127_v58 = vld [vmem:[%s5334_s1 + $0x118] sm:$0xff] }
  0x12   :  { %2470 = vmatpush.bf16.msra.mxu0 %v4095_v16  ;;  %v4135_v59 = vld [vmem:[%s5334_s1 + $0x158] sm:$0xff]  ;;  %v4126_v62 = vld [vmem:[%s5334_s1 + $0x110] sm:$0xff]  ;;  %v4125_v2 = vld [vmem:[%s5334_s1 + $0x108] sm:$0xff] }
  0x13   :  { %2483 = vmatpush.bf16.msra.mxu1 %v4103_v17  ;;  %v4143_v60 = vld [vmem:[%s5334_s1 + $0x198] sm:$0xff]  ;;  %v4134_v63 = vld [vmem:[%s5334_s1 + $0x150] sm:$0xff]  ;;  %v4133_v3 = vld [vmem:[%s5334_s1 + $0x148] sm:$0xff] }
  0x14   :  { %2496 = vmatpush.bf16.msra.mxu2 %v4111_v18  ;;  %v4151_v61 = vld [vmem:[%s5334_s1 + $0x1d8] sm:$0xff]  ;;  %v4142_v0 = vld [vmem:[%s5334_s1 + $0x190] sm:$0xff]  ;;  %v4141_v4 = vld [vmem:[%s5334_s1 + $0x188] sm:$0xff] }
  0x15   :  { %2509 = vmatpush.bf16.msra.mxu3 %v4119_v19  ;;  %v4150_v1 = vld [vmem:[%s5334_s1 + $0x1d0] sm:$0xff]  ;;  %v4149_v5 = vld [vmem:[%s5334_s1 + $0x1c8] sm:$0xff]  ;;  %v17_v6 = vld [vmem:[%s5335_s0 + $0x18] sm:$0xff] }
  0x16   :  { %2471 = vmatpush.bf16.msra.mxu0 %v4094_v20  ;;  %v16_v7 = vld [vmem:[%s5335_s0 + $0x10] sm:$0xff]  ;;  %v4124_v8 = vld [vmem:[%s5334_s1 + $0x100] sm:$0xff]  ;;  %v636_v10 = vunpack.c.l.b16 %v17_v6  ;;  %v637_v14 = vunpack.c.h.b16 %v17_v6  ;;  %v4163_v16 = vld [vmem:[%s5334_s1 + $0x238] sm:$0xff] }
  0x17   :  { %2484 = vmatpush.bf16.msra.mxu1 %v4102_v21  ;;  %v4132_v9 = vld [vmem:[%s5334_s1 + $0x140] sm:$0xff]  ;;  %v634_v11 = vunpack.c.l.b16 %v16_v7  ;;  %v635_v15 = vunpack.c.h.b16 %v16_v7  ;;  %v4171_v17 = vld [vmem:[%s5334_s1 + $0x278] sm:$0xff]  ;;  %v4161_v28 = vld [vmem:[%s5334_s1 + $0x228] sm:$0xff] }
  0x18   :  { %2497 = vmatpush.bf16.msra.mxu2 %v4110_v22  ;;  %v4140_v12 = vld [vmem:[%s5334_s1 + $0x180] sm:$0xff]  ;;  %v4179_v18 = vld [vmem:[%s5334_s1 + $0x2b8] sm:$0xff]  ;;  %v672_v20 = vpack.c.b16 %v636_v10, %v636_v10  ;;  %v673_v22 = vpack.c.b16 %v637_v14, %v637_v14  ;;  %v4169_v29 = vld [vmem:[%s5334_s1 + $0x268] sm:$0xff] }
  0x19   :  { %2510 = vmatpush.bf16.msra.mxu3 %v4118_v23  ;;  %v4148_v13 = vld [vmem:[%s5334_s1 + $0x1c0] sm:$0xff]  ;;  %v4187_v19 = vld [vmem:[%s5334_s1 + $0x2f8] sm:$0xff]  ;;  %v670_v21 = vpack.c.b16 %v634_v11, %v634_v11  ;;  %v671_v23 = vpack.c.b16 %v635_v15, %v635_v15  ;;  %v4193_v6 = vld [vmem:[%s5334_s1 + $0x328] sm:$0xff] }
  0x1a   :  { %2472 = vmatpush.bf16.msra.mxu0 %v4093_v24  ;;  %v4162_v24 = vld [vmem:[%s5334_s1 + $0x230] sm:$0xff]  ;;  %v4160_v32 = vld [vmem:[%s5334_s1 + $0x220] sm:$0xff]  ;;  %v4159_v36 = vld [vmem:[%s5334_s1 + $0x218] sm:$0xff] }
  0x1b   :  { %2485 = vmatpush.bf16.msra.mxu1 %v4101_v25  ;;  %v4170_v25 = vld [vmem:[%s5334_s1 + $0x270] sm:$0xff]  ;;  %v4168_v33 = vld [vmem:[%s5334_s1 + $0x260] sm:$0xff]  ;;  %v4167_v37 = vld [vmem:[%s5334_s1 + $0x258] sm:$0xff] }
  0x1c   :  { %2498 = vmatpush.bf16.msra.mxu2 %v4109_v26  ;;  %v4178_v26 = vld [vmem:[%s5334_s1 + $0x2b0] sm:$0xff]  ;;  %v4201_v7 = vld [vmem:[%s5334_s1 + $0x368] sm:$0xff]  ;;  %v4192_v10 = vld [vmem:[%s5334_s1 + $0x320] sm:$0xff] }
  0x1d   :  { %2511 = vmatpush.bf16.msra.mxu3 %v4117_v27  ;;  %v4186_v27 = vld [vmem:[%s5334_s1 + $0x2f0] sm:$0xff]  ;;  %v4200_v11 = vld [vmem:[%s5334_s1 + $0x360] sm:$0xff]  ;;  %v4191_v14 = vld [vmem:[%s5334_s1 + $0x318] sm:$0xff] }
  0x1e   :  { %2473 = vmatpush.bf16.msra.mxu0 %v4092_v30  ;;  %v4177_v30 = vld [vmem:[%s5334_s1 + $0x2a8] sm:$0xff]  ;;  %v4199_v15 = vld [vmem:[%s5334_s1 + $0x358] sm:$0xff] }
  0x1f   :  { %2486 = vmatpush.bf16.msra.mxu1 %v4100_v31  ;;  %v4185_v31 = vld [vmem:[%s5334_s1 + $0x2e8] sm:$0xff] }
  0x20   :  { %2499 = vmatpush.bf16.msra.mxu2 %v4108_v34  ;;  %v4176_v34 = vld [vmem:[%s5334_s1 + $0x2a0] sm:$0xff] }
  0x21   :  { %2512 = vmatpush.bf16.msra.mxu3 %v4116_v35  ;;  %2474 = vmatmul.bf16.vlgmr.msra.gmra.mxu0 %v666_v43  ;;  %v4184_v35 = vld [vmem:[%s5334_s1 + $0x2e0] sm:$0xff]  ;;  %v4182_v43 = vld [vmem:[%s5334_s1 + $0x2d0] sm:$0xff] }
  0x22   :  { %2518 = vmatpush.bf16.msrb.mxu0 %v4131_v38  ;;  %2487 = vmatmul.bf16.vlgmr.msra.gmra.mxu1 %v667_v45  ;;  %v4175_v38 = vld [vmem:[%s5334_s1 + $0x298] sm:$0xff]  ;;  %v4165_v45 = vld [vmem:[%s5334_s1 + $0x248] sm:$0xff] }
  0x23   :  { %2531 = vmatpush.bf16.msrb.mxu1 %v4139_v39  ;;  %2500 = vmatmul.bf16.vlgmr.msra.gmra.mxu2 %v668_v42  ;;  %v4183_v39 = vld [vmem:[%s5334_s1 + $0x2d8] sm:$0xff]  ;;  %v4174_v42 = vld [vmem:[%s5334_s1 + $0x290] sm:$0xff] }
  0x24   :  { %2544 = vmatpush.bf16.msrb.mxu2 %v4147_v40  ;;  %2513 = vmatmul.bf16.vlgmr.msra.gmra.mxu3 %v669_v44  ;;  %v4158_v40 = vld [vmem:[%s5334_s1 + $0x210] sm:$0xff]  ;;  %v4157_v44 = vld [vmem:[%s5334_s1 + $0x208] sm:$0xff] }
  0x25   :  { %2557 = vmatpush.bf16.msrb.mxu3 %v4155_v41  ;;  %v4166_v41 = vld [vmem:[%s5334_s1 + $0x250] sm:$0xff] }
  0x26   :  { %2519 = vmatpush.bf16.msrb.mxu0 %v4130_v46  ;;  %v4173_v46 = vld [vmem:[%s5334_s1 + $0x288] sm:$0xff] }
  0x27   :  { %2532 = vmatpush.bf16.msrb.mxu1 %v4138_v47  ;;  %v4181_v47 = vld [vmem:[%s5334_s1 + $0x2c8] sm:$0xff] }
  0x28   :  { %2545 = vmatpush.bf16.msrb.mxu2 %v4146_v48  ;;  %v18_v48 = vld [vmem:[%s5335_s0 + $0x20] sm:$0xff] }
  0x29   :  { %2558 = vmatpush.bf16.msrb.mxu3 %v4154_v49  ;;  %v19_v49 = vld [vmem:[%s5335_s0 + $0x28] sm:$0xff] }
  0x2a   :  { %2520 = vmatpush.bf16.msrb.mxu0 %v4129_v50  ;;  %v4156_v50 = vld [vmem:[%s5334_s1 + $0x200] sm:$0xff] }
  0x2b   :  { %2533 = vmatpush.bf16.msrb.mxu1 %v4137_v51  ;;  %v4164_v51 = vld [vmem:[%s5334_s1 + $0x240] sm:$0xff] }
  0x2c   :  { %2546 = vmatpush.bf16.msrb.mxu2 %v4145_v52  ;;  %v638_v52 = vunpack.c.l.b16 %v18_v48 }
  0x2d   :  { %2559 = vmatpush.bf16.msrb.mxu3 %v4153_v53  ;;  %v640_v53 = vunpack.c.l.b16 %v19_v49 }
  0x2e   :  { %2521 = vmatpush.bf16.msrb.mxu0 %v4128_v54  ;;  %v4172_v54 = vld [vmem:[%s5334_s1 + $0x280] sm:$0xff] }
  0x2f   :  { %2534 = vmatpush.bf16.msrb.mxu1 %v4136_v55  ;;  %v4180_v55 = vld [vmem:[%s5334_s1 + $0x2c0] sm:$0xff] }
  0x30   :  { %2547 = vmatpush.bf16.msrb.mxu2 %v4144_v56  ;;  %v639_v56 = vunpack.c.h.b16 %v18_v48  ;;  %v4225_v48 = vld [vmem:[%s5334_s1 + $0x428] sm:$0xff] }
  0x31   :  { %2560 = vmatpush.bf16.msrb.mxu3 %v4152_v57  ;;  %v641_v57 = vunpack.c.h.b16 %v19_v49  ;;  %v4233_v49 = vld [vmem:[%s5334_s1 + $0x468] sm:$0xff] }
  0x32   :  { %2522 = vmatpush.bf16.msrb.mxu0 %v4127_v58  ;;  %v4195_v58 = vld [vmem:[%s5334_s1 + $0x338] sm:$0xff] }
  0x33   :  { %2535 = vmatpush.bf16.msrb.mxu1 %v4135_v59  ;;  %v4203_v59 = vld [vmem:[%s5334_s1 + $0x378] sm:$0xff] }
  0x34   :  { %2548 = vmatpush.bf16.msrb.mxu2 %v4143_v60  ;;  %v4211_v60 = vld [vmem:[%s5334_s1 + $0x3b8] sm:$0xff] }
  0x35   :  { %2561 = vmatpush.bf16.msrb.mxu3 %v4151_v61  ;;  %v4219_v61 = vld [vmem:[%s5334_s1 + $0x3f8] sm:$0xff] }
  0x36   :  { %2523 = vmatpush.bf16.msrb.mxu0 %v4126_v62  ;;  %v674_v62 = vpack.c.b16 %v638_v52, %v638_v52  ;;  %v4224_v52 = vld [vmem:[%s5334_s1 + $0x420] sm:$0xff] }
  0x37   :  { %2536 = vmatpush.bf16.msrb.mxu1 %v4134_v63  ;;  %v676_v63 = vpack.c.b16 %v640_v53, %v640_v53  ;;  %v4232_v53 = vld [vmem:[%s5334_s1 + $0x460] sm:$0xff] }
  0x38   :  { %2549 = vmatpush.bf16.msrb.mxu2 %v4142_v0  ;;  %v675_v0 = vpack.c.b16 %v639_v56, %v639_v56  ;;  %v4223_v56 = vld [vmem:[%s5334_s1 + $0x418] sm:$0xff] }
  0x39   :  { %2562 = vmatpush.bf16.msrb.mxu3 %v4150_v1  ;;  %v677_v1 = vpack.c.b16 %v641_v57, %v641_v57  ;;  %v4231_v57 = vld [vmem:[%s5334_s1 + $0x458] sm:$0xff] }
  0x3a   :  { %2524 = vmatpush.bf16.msrb.mxu0 %v4125_v2  ;;  %v4194_v2 = vld [vmem:[%s5334_s1 + $0x330] sm:$0xff] }
  0x3b   :  { %2537 = vmatpush.bf16.msrb.mxu1 %v4133_v3  ;;  %v4202_v3 = vld [vmem:[%s5334_s1 + $0x370] sm:$0xff] }
  0x3c   :  { %2550 = vmatpush.bf16.msrb.mxu2 %v4141_v4  ;;  %v4210_v4 = vld [vmem:[%s5334_s1 + $0x3b0] sm:$0xff] }
  0x3d   :  { %2563 = vmatpush.bf16.msrb.mxu3 %v4149_v5  ;;  %v4218_v5 = vld [vmem:[%s5334_s1 + $0x3f0] sm:$0xff] }
  0x3e   :  { %2525 = vmatpush.bf16.msrb.mxu0 %v4124_v8  ;;  %v4209_v8 = vld [vmem:[%s5334_s1 + $0x3a8] sm:$0xff] }
  0x3f   :  { %2538 = vmatpush.bf16.msrb.mxu1 %v4132_v9  ;;  %v4217_v9 = vld [vmem:[%s5334_s1 + $0x3e8] sm:$0xff] }
  0x40   :  { %2551 = vmatpush.bf16.msrb.mxu2 %v4140_v12  ;;  %v4208_v12 = vld [vmem:[%s5334_s1 + $0x3a0] sm:$0xff] }
  0x41   :  { %2564 = vmatpush.bf16.msrb.mxu3 %v4148_v13  ;;  %2526 = vmatmul.bf16.vlgmr.msrb.gmra.mxu0 %v670_v21  ;;  %v4216_v13 = vld [vmem:[%s5334_s1 + $0x3e0] sm:$0xff]  ;;  %v4214_v21 = vld [vmem:[%s5334_s1 + $0x3d0] sm:$0xff] }
  0x42   :  { %2570 = vmatpush.bf16.msra.mxu0 %v4163_v16  ;;  %2539 = vmatmul.bf16.vlgmr.msrb.gmra.mxu1 %v671_v23  ;;  %v4207_v16 = vld [vmem:[%s5334_s1 + $0x398] sm:$0xff]  ;;  %v4197_v23 = vld [vmem:[%s5334_s1 + $0x348] sm:$0xff] }
  0x43   :  { %2583 = vmatpush.bf16.msra.mxu1 %v4171_v17  ;;  %2552 = vmatmul.bf16.vlgmr.msrb.gmra.mxu2 %v672_v20  ;;  %v4215_v17 = vld [vmem:[%s5334_s1 + $0x3d8] sm:$0xff]  ;;  %v4206_v20 = vld [vmem:[%s5334_s1 + $0x390] sm:$0xff] }
  0x44   :  { %2596 = vmatpush.bf16.msra.mxu2 %v4179_v18  ;;  %2565 = vmatmul.bf16.vlgmr.msrb.gmra.mxu3 %v673_v22  ;;  %v4190_v18 = vld [vmem:[%s5334_s1 + $0x310] sm:$0xff]  ;;  %v4189_v22 = vld [vmem:[%s5334_s1 + $0x308] sm:$0xff] }
  0x45   :  { %2609 = vmatpush.bf16.msra.mxu3 %v4187_v19  ;;  %v4198_v19 = vld [vmem:[%s5334_s1 + $0x350] sm:$0xff] }
  0x46   :  { %2571 = vmatpush.bf16.msra.mxu0 %v4162_v24  ;;  %v4205_v24 = vld [vmem:[%s5334_s1 + $0x388] sm:$0xff] }
  0x47   :  { %2584 = vmatpush.bf16.msra.mxu1 %v4170_v25  ;;  %v4213_v25 = vld [vmem:[%s5334_s1 + $0x3c8] sm:$0xff] }
  0x48   :  { %2597 = vmatpush.bf16.msra.mxu2 %v4178_v26  ;;  %v20_v26 = vld [vmem:[%s5335_s0 + $0x30] sm:$0xff] }
  0x49   :  { %2610 = vmatpush.bf16.msra.mxu3 %v4186_v27  ;;  %v21_v27 = vld [vmem:[%s5335_s0 + $0x38] sm:$0xff] }
  0x4a   :  { %2572 = vmatpush.bf16.msra.mxu0 %v4161_v28  ;;  %v4188_v28 = vld [vmem:[%s5334_s1 + $0x300] sm:$0xff] }
  0x4b   :  { %2585 = vmatpush.bf16.msra.mxu1 %v4169_v29  ;;  %v4196_v29 = vld [vmem:[%s5334_s1 + $0x340] sm:$0xff] }
  0x4c   :  { %2598 = vmatpush.bf16.msra.mxu2 %v4177_v30  ;;  %v642_v30 = vunpack.c.l.b16 %v20_v26 }
  0x4d   :  { %2611 = vmatpush.bf16.msra.mxu3 %v4185_v31  ;;  %v644_v31 = vunpack.c.l.b16 %v21_v27 }
  0x4e   :  { %2573 = vmatpush.bf16.msra.mxu0 %v4160_v32  ;;  %v4204_v32 = vld [vmem:[%s5334_s1 + $0x380] sm:$0xff] }
  0x4f   :  { %2586 = vmatpush.bf16.msra.mxu1 %v4168_v33  ;;  %v4212_v33 = vld [vmem:[%s5334_s1 + $0x3c0] sm:$0xff] }
  0x50   :  { %2599 = vmatpush.bf16.msra.mxu2 %v4176_v34  ;;  %v643_v34 = vunpack.c.h.b16 %v20_v26  ;;  %v4257_v26 = vld [vmem:[%s5334_s1 + $0x528] sm:$0xff] }
  0x51   :  { %2612 = vmatpush.bf16.msra.mxu3 %v4184_v35  ;;  %v645_v35 = vunpack.c.h.b16 %v21_v27  ;;  %v4265_v27 = vld [vmem:[%s5334_s1 + $0x568] sm:$0xff] }
  0x52   :  { %2574 = vmatpush.bf16.msra.mxu0 %v4159_v36  ;;  %v4227_v36 = vld [vmem:[%s5334_s1 + $0x438] sm:$0xff] }
  0x53   :  { %2587 = vmatpush.bf16.msra.mxu1 %v4167_v37  ;;  %v4235_v37 = vld [vmem:[%s5334_s1 + $0x478] sm:$0xff] }
  0x54   :  { %2600 = vmatpush.bf16.msra.mxu2 %v4175_v38  ;;  %v4243_v38 = vld [vmem:[%s5334_s1 + $0x4b8] sm:$0xff] }
  0x55   :  { %2613 = vmatpush.bf16.msra.mxu3 %v4183_v39  ;;  %v4251_v39 = vld [vmem:[%s5334_s1 + $0x4f8] sm:$0xff] }
  0x56   :  { %2575 = vmatpush.bf16.msra.mxu0 %v4158_v40  ;;  %v678_v40 = vpack.c.b16 %v642_v30, %v642_v30  ;;  %v4281_v30 = vld [vmem:[%s5334_s1 + $0x5e8] sm:$0xff] }
  0x57   :  { %2588 = vmatpush.bf16.msra.mxu1 %v4166_v41  ;;  %v680_v41 = vpack.c.b16 %v644_v31, %v644_v31 }
  0x58   :  { %2601 = vmatpush.bf16.msra.mxu2 %v4174_v42  ;;  %v679_v42 = vpack.c.b16 %v643_v34, %v643_v34 }
  0x59   :  { %2614 = vmatpush.bf16.msra.mxu3 %v4182_v43  ;;  %v681_v43 = vpack.c.b16 %v645_v35, %v645_v35 }
  0x5a   :  { %2576 = vmatpush.bf16.msra.mxu0 %v4157_v44  ;;  %v4226_v44 = vld [vmem:[%s5334_s1 + $0x430] sm:$0xff] }
  0x5b   :  { %2589 = vmatpush.bf16.msra.mxu1 %v4165_v45  ;;  %v4234_v45 = vld [vmem:[%s5334_s1 + $0x470] sm:$0xff] }
  0x5c   :  { %2602 = vmatpush.bf16.msra.mxu2 %v4173_v46  ;;  %v4242_v46 = vld [vmem:[%s5334_s1 + $0x4b0] sm:$0xff] }
  0x5d   :  { %2615 = vmatpush.bf16.msra.mxu3 %v4181_v47  ;;  %v4250_v47 = vld [vmem:[%s5334_s1 + $0x4f0] sm:$0xff] }
  0x5e   :  { %2577 = vmatpush.bf16.msra.mxu0 %v4156_v50  ;;  %v4241_v50 = vld [vmem:[%s5334_s1 + $0x4a8] sm:$0xff] }
  0x5f   :  { %2590 = vmatpush.bf16.msra.mxu1 %v4164_v51  ;;  %v4249_v51 = vld [vmem:[%s5334_s1 + $0x4e8] sm:$0xff] }
  0x60   :  { %2603 = vmatpush.bf16.msra.mxu2 %v4172_v54  ;;  %v4240_v54 = vld [vmem:[%s5334_s1 + $0x4a0] sm:$0xff] }
  0x61   :  { %2616 = vmatpush.bf16.msra.mxu3 %v4180_v55  ;;  %2578 = vmatmul.bf16.vlgmr.msra.gmra.mxu0 %v674_v62  ;;  %v4248_v55 = vld [vmem:[%s5334_s1 + $0x4e0] sm:$0xff]  ;;  %v4238_v62 = vld [vmem:[%s5334_s1 + $0x490] sm:$0xff] }
  0x62   :  { %2622 = vmatpush.bf16.msrb.mxu0 %v4195_v58  ;;  %2591 = vmatmul.bf16.vlgmr.msra.gmra.mxu1 %v675_v0  ;;  %v4239_v58 = vld [vmem:[%s5334_s1 + $0x498] sm:$0xff]  ;;  %v4221_v0 = vld [vmem:[%s5334_s1 + $0x408] sm:$0xff] }
  0x63   :  { %2635 = vmatpush.bf16.msrb.mxu1 %v4203_v59  ;;  %2604 = vmatmul.bf16.vlgmr.msra.gmra.mxu2 %v676_v63  ;;  %v4247_v59 = vld [vmem:[%s5334_s1 + $0x4d8] sm:$0xff]  ;;  %v4246_v63 = vld [vmem:[%s5334_s1 + $0x4d0] sm:$0xff] }
  0x64   :  { %2648 = vmatpush.bf16.msrb.mxu2 %v4211_v60  ;;  %2617 = vmatmul.bf16.vlgmr.msra.gmra.mxu3 %v677_v1  ;;  %v4222_v60 = vld [vmem:[%s5334_s1 + $0x410] sm:$0xff]  ;;  %v4229_v1 = vld [vmem:[%s5334_s1 + $0x448] sm:$0xff] }
  0x65   :  { %2661 = vmatpush.bf16.msrb.mxu3 %v4219_v61  ;;  %v4230_v61 = vld [vmem:[%s5334_s1 + $0x450] sm:$0xff] }
  0x66   :  { %2623 = vmatpush.bf16.msrb.mxu0 %v4194_v2  ;;  %v4237_v2 = vld [vmem:[%s5334_s1 + $0x488] sm:$0xff] }
  0x67   :  { %2636 = vmatpush.bf16.msrb.mxu1 %v4202_v3  ;;  %v4245_v3 = vld [vmem:[%s5334_s1 + $0x4c8] sm:$0xff] }
  0x68   :  { %2649 = vmatpush.bf16.msrb.mxu2 %v4210_v4  ;;  %v22_v4 = vld [vmem:[%s5335_s0 + $0x40] sm:$0xff] }
  0x69   :  { %2662 = vmatpush.bf16.msrb.mxu3 %v4218_v5  ;;  %v23_v5 = vld [vmem:[%s5335_s0 + $0x48] sm:$0xff] }
  0x6a   :  { %2624 = vmatpush.bf16.msrb.mxu0 %v4193_v6  ;;  %v4220_v6 = vld [vmem:[%s5334_s1 + $0x400] sm:$0xff] }
  0x6b   :  { %2637 = vmatpush.bf16.msrb.mxu1 %v4201_v7  ;;  %v4228_v7 = vld [vmem:[%s5334_s1 + $0x440] sm:$0xff] }
  0x6c   :  { %2650 = vmatpush.bf16.msrb.mxu2 %v4209_v8  ;;  %v646_v8 = vunpack.c.l.b16 %v22_v4 }
  0x6d   :  { %2663 = vmatpush.bf16.msrb.mxu3 %v4217_v9  ;;  %v648_v9 = vunpack.c.l.b16 %v23_v5 }
  0x6e   :  { %2625 = vmatpush.bf16.msrb.mxu0 %v4192_v10  ;;  %v4236_v10 = vld [vmem:[%s5334_s1 + $0x480] sm:$0xff] }
  0x6f   :  { %2638 = vmatpush.bf16.msrb.mxu1 %v4200_v11  ;;  %v4244_v11 = vld [vmem:[%s5334_s1 + $0x4c0] sm:$0xff] }
  0x70   :  { %2651 = vmatpush.bf16.msrb.mxu2 %v4208_v12  ;;  %v647_v12 = vunpack.c.h.b16 %v22_v4 }
  0x71   :  { %2664 = vmatpush.bf16.msrb.mxu3 %v4216_v13  ;;  %v649_v13 = vunpack.c.h.b16 %v23_v5  ;;  %v4291_v5 = vld [vmem:[%s5334_s1 + $0x638] sm:$0xff] }
  0x72   :  { %2626 = vmatpush.bf16.msrb.mxu0 %v4191_v14  ;;  %v4259_v14 = vld [vmem:[%s5334_s1 + $0x538] sm:$0xff] }
  0x73   :  { %2639 = vmatpush.bf16.msrb.mxu1 %v4199_v15  ;;  %v4267_v15 = vld [vmem:[%s5334_s1 + $0x578] sm:$0xff] }
  0x74   :  { %2652 = vmatpush.bf16.msrb.mxu2 %v4207_v16  ;;  %v4275_v16 = vld [vmem:[%s5334_s1 + $0x5b8] sm:$0xff] }
  0x75   :  { %2665 = vmatpush.bf16.msrb.mxu3 %v4215_v17  ;;  %v4283_v17 = vld [vmem:[%s5334_s1 + $0x5f8] sm:$0xff] }
  0x76   :  { %2627 = vmatpush.bf16.msrb.mxu0 %v4190_v18  ;;  %v682_v18 = vpack.c.b16 %v646_v8, %v646_v8  ;;  %v4315_v8 = vld [vmem:[%s5334_s1 + $0x6f8] sm:$0xff] }
  0x77   :  { %2640 = vmatpush.bf16.msrb.mxu1 %v4198_v19  ;;  %v684_v19 = vpack.c.b16 %v648_v9, %v648_v9 }
  0x78   :  { %2653 = vmatpush.bf16.msrb.mxu2 %v4206_v20  ;;  %v683_v20 = vpack.c.b16 %v647_v12, %v647_v12 }
  0x79   :  { %2666 = vmatpush.bf16.msrb.mxu3 %v4214_v21  ;;  %v685_v21 = vpack.c.b16 %v649_v13, %v649_v13  ;;  %v4290_v13 = vld [vmem:[%s5334_s1 + $0x630] sm:$0xff] }
  0x7a   :  { %2628 = vmatpush.bf16.msrb.mxu0 %v4189_v22  ;;  %v4258_v22 = vld [vmem:[%s5334_s1 + $0x530] sm:$0xff] }
  0x7b   :  { %2641 = vmatpush.bf16.msrb.mxu1 %v4197_v23  ;;  %v4266_v23 = vld [vmem:[%s5334_s1 + $0x570] sm:$0xff] }
  0x7c   :  { %2654 = vmatpush.bf16.msrb.mxu2 %v4205_v24  ;;  %v4274_v24 = vld [vmem:[%s5334_s1 + $0x5b0] sm:$0xff] }
  0x7d   :  { %2667 = vmatpush.bf16.msrb.mxu3 %v4213_v25  ;;  %v4282_v25 = vld [vmem:[%s5334_s1 + $0x5f0] sm:$0xff] }
  0x7e   :  { %2629 = vmatpush.bf16.msrb.mxu0 %v4188_v28  ;;  %v4380_v28 = vld [vmem:[%s5336_s2] ss:$0 sm:$0xff] }
  0x7f   :  { %2642 = vmatpush.bf16.msrb.mxu1 %v4196_v29  ;;  %v4273_v29 = vld [vmem:[%s5334_s1 + $0x5a8] sm:$0xff] }
  0x80   :  { %2655 = vmatpush.bf16.msrb.mxu2 %v4204_v32  ;;  %v4256_v32 = vld [vmem:[%s5334_s1 + $0x520] sm:$0xff] }
  0x81   :  { %2668 = vmatpush.bf16.msrb.mxu3 %v4212_v33  ;;  %2630 = vmatmul.bf16.vlgmr.msrb.gmra.mxu0 %v678_v40  ;;  %v4264_v33 = vld [vmem:[%s5334_s1 + $0x560] sm:$0xff]  ;;  %v4263_v40 = vld [vmem:[%s5334_s1 + $0x558] sm:$0xff] }
  0x82   :  { %2674 = vmatpush.bf16.msra.mxu0 %v4227_v36  ;;  %2643 = vmatmul.bf16.vlgmr.msrb.gmra.mxu1 %v679_v42  ;;  %v4272_v36 = vld [vmem:[%s5334_s1 + $0x5a0] sm:$0xff]  ;;  %v4279_v42 = vld [vmem:[%s5334_s1 + $0x5d8] sm:$0xff] }
  0x83   :  { %2687 = vmatpush.bf16.msra.mxu1 %v4235_v37  ;;  %2656 = vmatmul.bf16.vlgmr.msrb.gmra.mxu2 %v680_v41  ;;  %v4280_v37 = vld [vmem:[%s5334_s1 + $0x5e0] sm:$0xff]  ;;  %v4271_v41 = vld [vmem:[%s5334_s1 + $0x598] sm:$0xff] }
  0x84   :  { %2700 = vmatpush.bf16.msra.mxu2 %v4243_v38  ;;  %2669 = vmatmul.bf16.vlgmr.msrb.gmra.mxu3 %v681_v43 }
  0x85   :  { %2713 = vmatpush.bf16.msra.mxu3 %v4251_v39  ;;  %v4255_v39 = vld [vmem:[%s5334_s1 + $0x518] sm:$0xff] }
  0x86   :  { %2675 = vmatpush.bf16.msra.mxu0 %v4226_v44 }
  0x87   :  { %2688 = vmatpush.bf16.msra.mxu1 %v4234_v45 }
  0x88   :  { %2701 = vmatpush.bf16.msra.mxu2 %v4242_v46 }
  0x89   :  { %2714 = vmatpush.bf16.msra.mxu3 %v4250_v47  ;;  %v4254_v47 = vld [vmem:[%s5334_s1 + $0x510] sm:$0xff] }
  0x8a   :  { %2676 = vmatpush.bf16.msra.mxu0 %v4225_v48  ;;  %v4262_v48 = vld [vmem:[%s5334_s1 + $0x550] sm:$0xff] }
  0x8b   :  { %2689 = vmatpush.bf16.msra.mxu1 %v4233_v49 }
  0x8c   :  { %2702 = vmatpush.bf16.msra.mxu2 %v4241_v50 }
  0x8d   :  { %2715 = vmatpush.bf16.msra.mxu3 %v4249_v51  ;;  %v4270_v51 = vld [vmem:[%s5334_s1 + $0x590] sm:$0xff] }
  0x8e   :  { %2677 = vmatpush.bf16.msra.mxu0 %v4224_v52  ;;  %v4278_v52 = vld [vmem:[%s5334_s1 + $0x5d0] sm:$0xff] }
  0x8f   :  { %2690 = vmatpush.bf16.msra.mxu1 %v4232_v53  ;;  %v4253_v53 = vld [vmem:[%s5334_s1 + $0x508] sm:$0xff] }
  0x90   :  { %2703 = vmatpush.bf16.msra.mxu2 %v4240_v54  ;;  %v4261_v54 = vld [vmem:[%s5334_s1 + $0x548] sm:$0xff] }
  0x91   :  { %2716 = vmatpush.bf16.msra.mxu3 %v4248_v55  ;;  %v4269_v55 = vld [vmem:[%s5334_s1 + $0x588] sm:$0xff] }
  0x92   :  { %2678 = vmatpush.bf16.msra.mxu0 %v4223_v56  ;;  %v4277_v56 = vld [vmem:[%s5334_s1 + $0x5c8] sm:$0xff] }
  0x93   :  { %2691 = vmatpush.bf16.msra.mxu1 %v4231_v57  ;;  %v24_v57 = vld [vmem:[%s5335_s0 + $0x50] sm:$0xff] }
  0x94   :  { %2704 = vmatpush.bf16.msra.mxu2 %v4239_v58  ;;  %v25_v58 = vld [vmem:[%s5335_s0 + $0x58] sm:$0xff] }
  0x95   :  { %2717 = vmatpush.bf16.msra.mxu3 %v4247_v59  ;;  %v653_v4 = vunpack.c.h.b16 %v25_v58 }
  0x96   :  { %2679 = vmatpush.bf16.msra.mxu0 %v4222_v60 }
  0x97   :  { %2692 = vmatpush.bf16.msra.mxu1 %v4230_v61  ;;  %v4252_v61 = vld [vmem:[%s5334_s1 + $0x500] sm:$0xff]  ;;  %v689_v12 = vpack.c.b16 %v653_v4, %v653_v4  ;;  %v4330_v4 = vld [vmem:[%s5334_s1 + $0x770] sm:$0xff] }
  0x98   :  { %2705 = vmatpush.bf16.msra.mxu2 %v4238_v62  ;;  %v4260_v62 = vld [vmem:[%s5334_s1 + $0x540] sm:$0xff] }
  0x99   :  { %2718 = vmatpush.bf16.msra.mxu3 %v4246_v63  ;;  %v650_v63 = vunpack.c.l.b16 %v24_v57 }
  0x9a   :  { %2680 = vmatpush.bf16.msra.mxu0 %v4221_v0  ;;  %v652_v0 = vunpack.c.l.b16 %v25_v58 }
  0x9b   :  { %2693 = vmatpush.bf16.msra.mxu1 %v4229_v1  ;;  %v4268_v1 = vld [vmem:[%s5334_s1 + $0x580] sm:$0xff]  ;;  %v686_v9 = vpack.c.b16 %v650_v63, %v650_v63 }
  0x9c   :  { %2706 = vmatpush.bf16.msra.mxu2 %v4237_v2  ;;  %v4276_v2 = vld [vmem:[%s5334_s1 + $0x5c0] sm:$0xff] }
  0x9d   :  { %2719 = vmatpush.bf16.msra.mxu3 %v4245_v3  ;;  %v651_v3 = vunpack.c.h.b16 %v24_v57 }
  0x9e   :  { %2681 = vmatpush.bf16.msra.mxu0 %v4220_v6  ;;  %v2475_v31 = vpop.f32.mrf.mxu0  ;;  %v4299_v6 = vld [vmem:[%s5334_s1 + $0x678] sm:$0xff] }
  0x9f   :  { %2694 = vmatpush.bf16.msra.mxu1 %v4228_v7  ;;  %v2476_v34 = vadd.f32 %v4380_v28, %v2475_v31  ;;  %v2488_v35 = vpop.f32.mrf.mxu1  ;;  %v4307_v7 = vld [vmem:[%s5334_s1 + $0x6b8] sm:$0xff] }
  0xa0   :  { %2707 = vmatpush.bf16.msra.mxu2 %v4236_v10  ;;  %v688_v10 = vpack.c.b16 %v652_v0, %v652_v0  ;;  %v4303_v31 = vld [vmem:[%s5334_s1 + $0x698] sm:$0xff] }
  0xa1   :  { %2720 = vmatpush.bf16.msra.mxu3 %v4244_v11  ;;  %2682 = vmatmul.bf16.vlgmr.msra.gmra.mxu0 %v682_v18  ;;  %v2489_v38 = vadd.f32 %v2488_v35, %v2476_v34  ;;  %v687_v11 = vpack.c.b16 %v651_v3, %v651_v3  ;;  %v4297_v18 = vld [vmem:[%s5334_s1 + $0x668] sm:$0xff]  ;;  %v4322_v3 = vld [vmem:[%s5334_s1 + $0x730] sm:$0xff] }
  0xa2   :  { %2726 = vmatpush.bf16.msrb.mxu0 %v4259_v14  ;;  %2695 = vmatmul.bf16.vlgmr.msra.gmra.mxu1 %v683_v20  ;;  %v4298_v14 = vld [vmem:[%s5334_s1 + $0x670] sm:$0xff]  ;;  %v4313_v20 = vld [vmem:[%s5334_s1 + $0x6e8] sm:$0xff] }
  0xa3   :  { %2739 = vmatpush.bf16.msrb.mxu1 %v4267_v15  ;;  %2708 = vmatmul.bf16.vlgmr.msra.gmra.mxu2 %v684_v19  ;;  %v4306_v15 = vld [vmem:[%s5334_s1 + $0x6b0] sm:$0xff]  ;;  %v4305_v19 = vld [vmem:[%s5334_s1 + $0x6a8] sm:$0xff] }
  0xa4   :  { %2752 = vmatpush.bf16.msrb.mxu2 %v4275_v16  ;;  %2721 = vmatmul.bf16.vlgmr.msra.gmra.mxu3 %v685_v21  ;;  %v4314_v16 = vld [vmem:[%s5334_s1 + $0x6f0] sm:$0xff] }
  0xa5   :  { %2765 = vmatpush.bf16.msrb.mxu3 %v4283_v17  ;;  %v4289_v17 = vld [vmem:[%s5334_s1 + $0x628] sm:$0xff] }
  0xa6   :  { %2727 = vmatpush.bf16.msrb.mxu0 %v4258_v22  ;;  %v2501_v43 = vpop.f32.mrf.mxu2  ;;  %v2477_v46 = vpop.f32.mrf.mxu0  ;;  %v4288_v22 = vld [vmem:[%s5334_s1 + $0x620] sm:$0xff] }
  0xa7   :  { %2740 = vmatpush.bf16.msrb.mxu1 %v4266_v23  ;;  %v2502_v44 = vadd.f32 %v2501_v43, %v2489_v38  ;;  %v2514_v45 = vpop.f32.mrf.mxu3  ;;  %v2490_v50 = vpop.f32.mrf.mxu1  ;;  %v4296_v23 = vld [vmem:[%s5334_s1 + $0x660] sm:$0xff]  ;;  %v4294_v38 = vld [vmem:[%s5334_s1 + $0x650] sm:$0xff]  ;;  %v4285_v43 = vld [vmem:[%s5334_s1 + $0x608] sm:$0xff] }
  0xa8   :  { %2753 = vmatpush.bf16.msrb.mxu2 %v4274_v24  ;;  %v4309_v46 = vld [vmem:[%s5334_s1 + $0x6c8] sm:$0xff] }
  0xa9   :  { %2766 = vmatpush.bf16.msrb.mxu3 %v4282_v25  ;;  %v4980_v49 = vadd.f32 %v2514_v45, %v2502_v44  ;;  %v4293_v44 = vld [vmem:[%s5334_s1 + $0x648] sm:$0xff] }
  0xaa   :  { %2728 = vmatpush.bf16.msrb.mxu0 %v4257_v26  ;;  %v4304_v26 = vld [vmem:[%s5334_s1 + $0x6a0] sm:$0xff]  ;;  %v4301_v45 = vld [vmem:[%s5334_s1 + $0x688] sm:$0xff] }
  0xab   :  { %2741 = vmatpush.bf16.msrb.mxu1 %v4265_v27  ;;  %v4312_v27 = vld [vmem:[%s5334_s1 + $0x6e0] sm:$0xff] }
  0xac   :  { %2754 = vmatpush.bf16.msrb.mxu2 %v4273_v29  ;;  %v4287_v29 = vld [vmem:[%s5334_s1 + $0x618] sm:$0xff] }
  0xad   :  { %2767 = vmatpush.bf16.msrb.mxu3 %v4281_v30  ;;  %v4295_v30 = vld [vmem:[%s5334_s1 + $0x658] sm:$0xff] }
  0xae   :  { %2729 = vmatpush.bf16.msrb.mxu0 %v4256_v32  ;;  %v2503_v59 = vpop.f32.mrf.mxu2  ;;  %v4311_v32 = vld [vmem:[%s5334_s1 + $0x6d8] sm:$0xff] }
  0xaf   :  { %2742 = vmatpush.bf16.msrb.mxu1 %v4264_v33  ;;  %v2516_v60 = vpop.f32.mrf.mxu3  ;;  %v4323_v59 = vld [vmem:[%s5334_s1 + $0x738] sm:$0xff] }
  0xb0   :  { %2755 = vmatpush.bf16.msrb.mxu2 %v4272_v36  ;;  %v4331_v60 = vld [vmem:[%s5334_s1 + $0x778] sm:$0xff] }
  0xb1   :  { %2768 = vmatpush.bf16.msrb.mxu3 %v4280_v37  ;;  %v4286_v37 = vld [vmem:[%s5334_s1 + $0x610] sm:$0xff] }
  0xb2   :  { %2730 = vmatpush.bf16.msrb.mxu0 %v4255_v39 }
  0xb3   :  { %2743 = vmatpush.bf16.msrb.mxu1 %v4263_v40 }
  0xb4   :  { %2756 = vmatpush.bf16.msrb.mxu2 %v4271_v41  ;;  %v4302_v41 = vld [vmem:[%s5334_s1 + $0x690] sm:$0xff] }
  0xb5   :  { %2769 = vmatpush.bf16.msrb.mxu3 %v4279_v42  ;;  %v4310_v42 = vld [vmem:[%s5334_s1 + $0x6d0] sm:$0xff] }
  0xb6   :  { %2731 = vmatpush.bf16.msrb.mxu0 %v4254_v47  ;;  %v26_v47 = vld [vmem:[%s5335_s0 + $0x60] sm:$0xff] }
  0xb7   :  { %2744 = vmatpush.bf16.msrb.mxu1 %v4262_v48  ;;  %v27_v48 = vld [vmem:[%s5335_s0 + $0x68] sm:$0xff]  ;;  %v655_v57 = vunpack.c.h.b16 %v26_v47 }
  0xb8   :  { %2757 = vmatpush.bf16.msrb.mxu2 %v4270_v51  ;;  %v4284_v51 = vld [vmem:[%s5334_s1 + $0x600] sm:$0xff]  ;;  %v657_v58 = vunpack.c.h.b16 %v27_v48 }
  0xb9   :  { %2770 = vmatpush.bf16.msrb.mxu3 %v4278_v52  ;;  %v4292_v52 = vld [vmem:[%s5334_s1 + $0x640] sm:$0xff] }
  0xba   :  { %2732 = vmatpush.bf16.msrb.mxu0 %v4253_v53  ;;  %v654_v53 = vunpack.c.l.b16 %v26_v47 }
  0xbb   :  { %2745 = vmatpush.bf16.msrb.mxu1 %v4261_v54  ;;  %v656_v54 = vunpack.c.l.b16 %v27_v48 }
  0xbc   :  { %2758 = vmatpush.bf16.msrb.mxu2 %v4269_v55  ;;  %v4300_v55 = vld [vmem:[%s5334_s1 + $0x680] sm:$0xff]  ;;  %v690_v63 = vpack.c.b16 %v654_v53, %v654_v53 }
  0xbd   :  { %2771 = vmatpush.bf16.msrb.mxu3 %v4277_v56  ;;  %v4308_v56 = vld [vmem:[%s5334_s1 + $0x6c0] sm:$0xff]  ;;  %v692_v0 = vpack.c.b16 %v656_v54, %v656_v54 }
  0xbe   :  { %2733 = vmatpush.bf16.msrb.mxu0 %v4252_v61  ;;  %v2527_v21 = vpop.f32.mrf.mxu0  ;;  %v4339_v61 = vld [vmem:[%s5334_s1 + $0x7b8] sm:$0xff] }
  0xbf   :  { %2746 = vmatpush.bf16.msrb.mxu1 %v4260_v62  ;;  %v2528_v24 = vadd.f32 %v2527_v21, %v4980_v49  ;;  %v2540_v25 = vpop.f32.mrf.mxu1  ;;  %v4347_v62 = vld [vmem:[%s5334_s1 + $0x7f8] sm:$0xff] }
  0xc0   :  { %2759 = vmatpush.bf16.msrb.mxu2 %v4268_v1  ;;  %v691_v1 = vpack.c.b16 %v655_v57, %v655_v57  ;;  %v4335_v21 = vld [vmem:[%s5334_s1 + $0x798] sm:$0xff]  ;;  %v4354_v57 = vld [vmem:[%s5334_s1 + $0x830] sm:$0xff] }
  0xc1   :  { %2772 = vmatpush.bf16.msrb.mxu3 %v4276_v2  ;;  %2734 = vmatmul.bf16.vlgmr.msrb.gmra.mxu0 %v686_v9  ;;  %v2541_v28 = vadd.f32 %v2540_v25, %v2528_v24  ;;  %v693_v2 = vpack.c.b16 %v657_v58, %v657_v58  ;;  %v4337_v9 = vld [vmem:[%s5334_s1 + $0x7a8] sm:$0xff]  ;;  %v4362_v58 = vld [vmem:[%s5334_s1 + $0x870] sm:$0xff] }
  0xc2   :  { %2778 = vmatpush.bf16.msra.mxu0 %v4291_v5  ;;  %2747 = vmatmul.bf16.vlgmr.msrb.gmra.mxu1 %v687_v11  ;;  %v4338_v5 = vld [vmem:[%s5334_s1 + $0x7b0] sm:$0xff] }
  0xc3   :  { %2791 = vmatpush.bf16.msra.mxu1 %v4299_v6  ;;  %2760 = vmatmul.bf16.vlgmr.msrb.gmra.mxu2 %v688_v10  ;;  %v4346_v6 = vld [vmem:[%s5334_s1 + $0x7f0] sm:$0xff]  ;;  %v4345_v10 = vld [vmem:[%s5334_s1 + $0x7e8] sm:$0xff] }
  0xc4   :  { %2804 = vmatpush.bf16.msra.mxu2 %v4307_v7  ;;  %2773 = vmatmul.bf16.vlgmr.msrb.gmra.mxu3 %v689_v12  ;;  %v4321_v7 = vld [vmem:[%s5334_s1 + $0x728] sm:$0xff] }
  0xc5   :  { %2817 = vmatpush.bf16.msra.mxu3 %v4315_v8  ;;  %v4329_v8 = vld [vmem:[%s5334_s1 + $0x768] sm:$0xff] }
  0xc6   :  { %2779 = vmatpush.bf16.msra.mxu0 %v4290_v13  ;;  %v2553_v33 = vpop.f32.mrf.mxu2  ;;  %v2529_v36 = vpop.f32.mrf.mxu0  ;;  %v4320_v13 = vld [vmem:[%s5334_s1 + $0x720] sm:$0xff] }
  0xc7   :  { %2792 = vmatpush.bf16.msra.mxu1 %v4298_v14  ;;  %v2554_v34 = vadd.f32 %v2553_v33, %v2541_v28  ;;  %v2566_v35 = vpop.f32.mrf.mxu3  ;;  %v2542_v40 = vpop.f32.mrf.mxu1  ;;  %v4328_v14 = vld [vmem:[%s5334_s1 + $0x760] sm:$0xff]  ;;  %v4318_v28 = vld [vmem:[%s5334_s1 + $0x710] sm:$0xff]  ;;  %v4317_v33 = vld [vmem:[%s5334_s1 + $0x708] sm:$0xff] }
  0xc8   :  { %2805 = vmatpush.bf16.msra.mxu2 %v4306_v15  ;;  %v4341_v36 = vld [vmem:[%s5334_s1 + $0x7c8] sm:$0xff] }
  0xc9   :  { %2818 = vmatpush.bf16.msra.mxu3 %v4314_v16  ;;  %v5085_v39 = vadd.f32 %v2566_v35, %v2554_v34  ;;  %v4336_v16 = vld [vmem:[%s5334_s1 + $0x7a0] sm:$0xff]  ;;  %v4325_v34 = vld [vmem:[%s5334_s1 + $0x748] sm:$0xff] }
  0xca   :  { %2780 = vmatpush.bf16.msra.mxu0 %v4289_v17  ;;  %v4344_v17 = vld [vmem:[%s5334_s1 + $0x7e0] sm:$0xff]  ;;  %v4333_v35 = vld [vmem:[%s5334_s1 + $0x788] sm:$0xff] }
  0xcb   :  { %2793 = vmatpush.bf16.msra.mxu1 %v4297_v18 }
  0xcc   :  { %2806 = vmatpush.bf16.msra.mxu2 %v4305_v19  ;;  %v4319_v19 = vld [vmem:[%s5334_s1 + $0x718] sm:$0xff] }
  0xcd   :  { %2819 = vmatpush.bf16.msra.mxu3 %v4313_v20  ;;  %v4327_v20 = vld [vmem:[%s5334_s1 + $0x758] sm:$0xff] }
  0xce   :  { %2781 = vmatpush.bf16.msra.mxu0 %v4288_v22  ;;  %v2555_v49 = vpop.f32.mrf.mxu2  ;;  %v4343_v22 = vld [vmem:[%s5334_s1 + $0x7d8] sm:$0xff] }
  0xcf   :  { %2794 = vmatpush.bf16.msra.mxu1 %v4296_v23  ;;  %v2568_v50 = vpop.f32.mrf.mxu3  ;;  %v4355_v49 = vld [vmem:[%s5334_s1 + $0x838] sm:$0xff] }
  0xd0   :  { %2807 = vmatpush.bf16.msra.mxu2 %v4304_v26  ;;  %v4363_v50 = vld [vmem:[%s5334_s1 + $0x878] sm:$0xff] }
  0xd1   :  { %2820 = vmatpush.bf16.msra.mxu3 %v4312_v27 }
  0xd2   :  { %2782 = vmatpush.bf16.msra.mxu0 %v4287_v29  ;;  %v4326_v29 = vld [vmem:[%s5334_s1 + $0x750] sm:$0xff] }
  0xd3   :  { %2795 = vmatpush.bf16.msra.mxu1 %v4295_v30 }
  0xd4   :  { %2808 = vmatpush.bf16.msra.mxu2 %v4303_v31  ;;  %v4334_v31 = vld [vmem:[%s5334_s1 + $0x790] sm:$0xff] }
  0xd5   :  { %2821 = vmatpush.bf16.msra.mxu3 %v4311_v32  ;;  %v4342_v32 = vld [vmem:[%s5334_s1 + $0x7d0] sm:$0xff] }
  0xd6   :  { %2783 = vmatpush.bf16.msra.mxu0 %v4286_v37  ;;  %v28_v37 = vld [vmem:[%s5335_s0 + $0x70] sm:$0xff] }
  0xd7   :  { %2796 = vmatpush.bf16.msra.mxu1 %v4294_v38  ;;  %v29_v38 = vld [vmem:[%s5335_s0 + $0x78] sm:$0xff]  ;;  %v659_v47 = vunpack.c.h.b16 %v28_v37 }
  0xd8   :  { %2809 = vmatpush.bf16.msra.mxu2 %v4302_v41  ;;  %v4316_v41 = vld [vmem:[%s5334_s1 + $0x700] sm:$0xff]  ;;  %v661_v48 = vunpack.c.h.b16 %v29_v38 }
  0xd9   :  { %2822 = vmatpush.bf16.msra.mxu3 %v4310_v42  ;;  %v4324_v42 = vld [vmem:[%s5334_s1 + $0x740] sm:$0xff] }
  0xda   :  { %2784 = vmatpush.bf16.msra.mxu0 %v4285_v43  ;;  %v658_v43 = vunpack.c.l.b16 %v28_v37  ;;  %v4364_v37 = vld [vmem:[%s5334_s1 + $0x880] sm:$0xff] }
  0xdb   :  { %2797 = vmatpush.bf16.msra.mxu1 %v4293_v44  ;;  %v660_v44 = vunpack.c.l.b16 %v29_v38  ;;  %v4372_v38 = vld [vmem:[%s5334_s1 + $0x8c0] sm:$0xff] }
  0xdc   :  { %2810 = vmatpush.bf16.msra.mxu2 %v4301_v45  ;;  %v4332_v45 = vld [vmem:[%s5334_s1 + $0x780] sm:$0xff]  ;;  %v694_v53 = vpack.c.b16 %v658_v43, %v658_v43 }
  0xdd   :  { %2823 = vmatpush.bf16.msra.mxu3 %v4309_v46  ;;  %v4340_v46 = vld [vmem:[%s5334_s1 + $0x7c0] sm:$0xff]  ;;  %v696_v54 = vpack.c.b16 %v660_v44, %v660_v44 }
  0xde   :  { %2785 = vmatpush.bf16.msra.mxu0 %v4284_v51  ;;  %v2579_v11 = vpop.f32.mrf.mxu0  ;;  %v4371_v51 = vld [vmem:[%s5334_s1 + $0x8b8] sm:$0xff] }
  0xdf   :  { %2798 = vmatpush.bf16.msra.mxu1 %v4292_v52  ;;  %v2580_v12 = vadd.f32 %v2579_v11, %v5085_v39  ;;  %v2592_v15 = vpop.f32.mrf.mxu1  ;;  %v4379_v52 = vld [vmem:[%s5334_s1 + $0x8f8] sm:$0xff] }
  0xe0   :  { %2811 = vmatpush.bf16.msra.mxu2 %v4300_v55  ;;  %v695_v55 = vpack.c.b16 %v659_v47, %v659_v47  ;;  %v4367_v11 = vld [vmem:[%s5334_s1 + $0x898] sm:$0xff] }
  0xe1   :  { %2824 = vmatpush.bf16.msra.mxu3 %v4308_v56  ;;  %2786 = vmatmul.bf16.vlgmr.msra.gmra.mxu0 %v690_v63  ;;  %v2593_v18 = vadd.f32 %v2592_v15, %v2580_v12  ;;  %v697_v56 = vpack.c.b16 %v661_v48, %v661_v48  ;;  %v4369_v63 = vld [vmem:[%s5334_s1 + $0x8a8] sm:$0xff]  ;;  %v4375_v12 = vld [vmem:[%s5334_s1 + $0x8d8] sm:$0xff] }
  0xe2   :  { %2830 = vmatpush.bf16.msrb.mxu0 %v4323_v59  ;;  %2799 = vmatmul.bf16.vlgmr.msra.gmra.mxu1 %v691_v1  ;;  %v4370_v59 = vld [vmem:[%s5334_s1 + $0x8b0] sm:$0xff] }
  0xe3   :  { %2843 = vmatpush.bf16.msrb.mxu1 %v4331_v60  ;;  %2812 = vmatmul.bf16.vlgmr.msra.gmra.mxu2 %v692_v0  ;;  %v4378_v60 = vld [vmem:[%s5334_s1 + $0x8f0] sm:$0xff]  ;;  %v4377_v0 = vld [vmem:[%s5334_s1 + $0x8e8] sm:$0xff] }
  0xe4   :  { %2856 = vmatpush.bf16.msrb.mxu2 %v4339_v61  ;;  %2825 = vmatmul.bf16.vlgmr.msra.gmra.mxu3 %v693_v2  ;;  %v4353_v61 = vld [vmem:[%s5334_s1 + $0x828] sm:$0xff] }
  0xe5   :  { %2869 = vmatpush.bf16.msrb.mxu3 %v4347_v62  ;;  %v4361_v62 = vld [vmem:[%s5334_s1 + $0x868] sm:$0xff] }
  0xe6   :  { %2831 = vmatpush.bf16.msrb.mxu0 %v4322_v3  ;;  %v2605_v23 = vpop.f32.mrf.mxu2  ;;  %v2581_v26 = vpop.f32.mrf.mxu0  ;;  %v4352_v3 = vld [vmem:[%s5334_s1 + $0x820] sm:$0xff] }
  0xe7   :  { %2844 = vmatpush.bf16.msrb.mxu1 %v4330_v4  ;;  %v2606_v24 = vadd.f32 %v2605_v23, %v2593_v18  ;;  %v2618_v25 = vpop.f32.mrf.mxu3  ;;  %v2594_v30 = vpop.f32.mrf.mxu1  ;;  %v4360_v4 = vld [vmem:[%s5334_s1 + $0x860] sm:$0xff]  ;;  %v4350_v18 = vld [vmem:[%s5334_s1 + $0x810] sm:$0xff]  ;;  %v4349_v23 = vld [vmem:[%s5334_s1 + $0x808] sm:$0xff] }
  0xe8   :  { %2857 = vmatpush.bf16.msrb.mxu2 %v4338_v5  ;;  %v4365_v26 = vld [vmem:[%s5334_s1 + $0x888] sm:$0xff] }
  0xe9   :  { %2870 = vmatpush.bf16.msrb.mxu3 %v4346_v6  ;;  %v5184_v27 = vadd.f32 %v2618_v25, %v2606_v24  ;;  %v4368_v6 = vld [vmem:[%s5334_s1 + $0x8a0] sm:$0xff]  ;;  %v4357_v24 = vld [vmem:[%s5334_s1 + $0x848] sm:$0xff] }
  0xea   :  { %2832 = vmatpush.bf16.msrb.mxu0 %v4321_v7  ;;  %v4376_v7 = vld [vmem:[%s5334_s1 + $0x8e0] sm:$0xff] }
  0xeb   :  { %2845 = vmatpush.bf16.msrb.mxu1 %v4329_v8  ;;  %v30_v25 = vld [vmem:[%s5335_s0 + $0x80] sm:$0xff] }
  0xec   :  { %2858 = vmatpush.bf16.msrb.mxu2 %v4337_v9  ;;  %v4351_v9 = vld [vmem:[%s5334_s1 + $0x818] sm:$0xff] }
  0xed   :  { %2871 = vmatpush.bf16.msrb.mxu3 %v4345_v10  ;;  %v4359_v10 = vld [vmem:[%s5334_s1 + $0x858] sm:$0xff] }
  0xee   :  { %2833 = vmatpush.bf16.msrb.mxu0 %v4320_v13  ;;  %v2607_v39 = vpop.f32.mrf.mxu2 }
  0xef   :  { %2846 = vmatpush.bf16.msrb.mxu1 %v4328_v14  ;;  %v2620_v40 = vpop.f32.mrf.mxu3 }
  0xf0   :  { %2859 = vmatpush.bf16.msrb.mxu2 %v4336_v16 }
  0xf1   :  { %2872 = vmatpush.bf16.msrb.mxu3 %v4344_v17 }
  0xf2   :  { %2834 = vmatpush.bf16.msrb.mxu0 %v4319_v19  ;;  %v4358_v19 = vld [vmem:[%s5334_s1 + $0x850] sm:$0xff] }
  0xf3   :  { %2847 = vmatpush.bf16.msrb.mxu1 %v4327_v20 }
  0xf4   :  { %2860 = vmatpush.bf16.msrb.mxu2 %v4335_v21  ;;  %v4366_v21 = vld [vmem:[%s5334_s1 + $0x890] sm:$0xff] }
  0xf5   :  { %2873 = vmatpush.bf16.msrb.mxu3 %v4343_v22  ;;  %v4374_v22 = vld [vmem:[%s5334_s1 + $0x8d0] sm:$0xff] }
  0xf6   :  { %2835 = vmatpush.bf16.msrb.mxu0 %v4318_v28  ;;  %v31_v28 = vld [vmem:[%s5335_s0 + $0x88] sm:$0xff] }
  0xf7   :  { %2848 = vmatpush.bf16.msrb.mxu1 %v4326_v29 }
  0xf8   :  { %2861 = vmatpush.bf16.msrb.mxu2 %v4334_v31  ;;  %v662_v31 = vunpack.c.l.b16 %v30_v25 }
  0xf9   :  { %2874 = vmatpush.bf16.msrb.mxu3 %v4342_v32  ;;  %v663_v32 = vunpack.c.h.b16 %v30_v25 }
  0xfa   :  { %2836 = vmatpush.bf16.msrb.mxu0 %v4317_v33  ;;  %v4348_v33 = vld [vmem:[%s5334_s1 + $0x800] sm:$0xff]  ;;  %v698_v39 = vpack.c.b16 %v662_v31, %v662_v31 }
  0xfb   :  { %2849 = vmatpush.bf16.msrb.mxu1 %v4325_v34  ;;  %v4356_v34 = vld [vmem:[%s5334_s1 + $0x840] sm:$0xff]  ;;  %v699_v40 = vpack.c.b16 %v663_v32, %v663_v32 }
  0xfc   :  { %2862 = vmatpush.bf16.msrb.mxu2 %v4333_v35  ;;  %v664_v35 = vunpack.c.l.b16 %v31_v28 }
  0xfd   :  { %2875 = vmatpush.bf16.msrb.mxu3 %v4341_v36  ;;  %v665_v36 = vunpack.c.h.b16 %v31_v28 }
  0xfe   :  { %2837 = vmatpush.bf16.msrb.mxu0 %v4316_v41  ;;  %v2631_v1 = vpop.f32.mrf.mxu0  ;;  %v700_v41 = vpack.c.b16 %v664_v35, %v664_v35 }
  0xff   :  { %2850 = vmatpush.bf16.msrb.mxu1 %v4324_v42  ;;  %v2632_v2 = vadd.f32 %v2631_v1, %v5184_v27  ;;  %v2644_v5 = vpop.f32.mrf.mxu1  ;;  %v4373_v27 = vld [vmem:[%s5334_s1 + $0x8c8] sm:$0xff]  ;;  %v701_v42 = vpack.c.b16 %v665_v36, %v665_v36 }
 0x100   :  { %2863 = vmatpush.bf16.msrb.mxu2 %v4332_v45 }
 0x101   :  { %2876 = vmatpush.bf16.msrb.mxu3 %v4340_v46  ;;  %2838 = vmatmul.bf16.vlgmr.msrb.gmra.mxu0 %v694_v53  ;;  %v2645_v8 = vadd.f32 %v2644_v5, %v2632_v2 }
 0x102   :  { %2882 = vmatpush.bf16.msra.mxu0 %v4355_v49  ;;  %2851 = vmatmul.bf16.vlgmr.msrb.gmra.mxu1 %v695_v55 }
 0x103   :  { %2895 = vmatpush.bf16.msra.mxu1 %v4363_v50  ;;  %2864 = vmatmul.bf16.vlgmr.msrb.gmra.mxu2 %v696_v54 }
 0x104   :  { %2908 = vmatpush.bf16.msra.mxu2 %v4371_v51  ;;  %2877 = vmatmul.bf16.vlgmr.msrb.gmra.mxu3 %v697_v56 }
 0x105   :  { %2921 = vmatpush.bf16.msra.mxu3 %v4379_v52 }
 0x106   :  { %2883 = vmatpush.bf16.msra.mxu0 %v4354_v57  ;;  %v2657_v13 = vpop.f32.mrf.mxu2  ;;  %v2633_v16 = vpop.f32.mrf.mxu0 }
 0x107   :  { %2896 = vmatpush.bf16.msra.mxu1 %v4362_v58  ;;  %v2658_v14 = vadd.f32 %v2657_v13, %v2645_v8  ;;  %v2670_v15 = vpop.f32.mrf.mxu3  ;;  %v2646_v20 = vpop.f32.mrf.mxu1 }
 0x108   :  { %2909 = vmatpush.bf16.msra.mxu2 %v4370_v59 }
 0x109   :  { %2922 = vmatpush.bf16.msra.mxu3 %v4378_v60  ;;  %v2671_v17 = vadd.f32 %v2670_v15, %v2658_v14 }
 0x10a   :  { %2884 = vmatpush.bf16.msra.mxu0 %v4353_v61 }
 0x10b   :  { %2897 = vmatpush.bf16.msra.mxu1 %v4361_v62 }
 0x10c   :  { %2910 = vmatpush.bf16.msra.mxu2 %v4369_v63 }
 0x10d   :  { %2923 = vmatpush.bf16.msra.mxu3 %v4377_v0 }
 0x10e   :  { %2885 = vmatpush.bf16.msra.mxu0 %v4352_v3  ;;  %v2659_v29 = vpop.f32.mrf.mxu2 }
 0x10f   :  { %2898 = vmatpush.bf16.msra.mxu1 %v4360_v4  ;;  %v2672_v30 = vpop.f32.mrf.mxu3 }
 0x110   :  { %2911 = vmatpush.bf16.msra.mxu2 %v4368_v6 }
 0x111   :  { %2924 = vmatpush.bf16.msra.mxu3 %v4376_v7 }
 0x112   :  { %2886 = vmatpush.bf16.msra.mxu0 %v4351_v9 }
 0x113   :  { %2899 = vmatpush.bf16.msra.mxu1 %v4359_v10 }
 0x114   :  { %2912 = vmatpush.bf16.msra.mxu2 %v4367_v11 }
 0x115   :  { %2925 = vmatpush.bf16.msra.mxu3 %v4375_v12 }
 0x116   :  { %2887 = vmatpush.bf16.msra.mxu0 %v4350_v18 }
 0x117   :  { %2900 = vmatpush.bf16.msra.mxu1 %v4358_v19 }
 0x118   :  { %2913 = vmatpush.bf16.msra.mxu2 %v4366_v21 }
 0x119   :  { %2926 = vmatpush.bf16.msra.mxu3 %v4374_v22 }
 0x11a   :  { %2888 = vmatpush.bf16.msra.mxu0 %v4349_v23 }
 0x11b   :  { %2901 = vmatpush.bf16.msra.mxu1 %v4357_v24 }
 0x11c   :  { %2914 = vmatpush.bf16.msra.mxu2 %v4365_v26 }
 0x11d   :  { %2927 = vmatpush.bf16.msra.mxu3 %v4373_v27 }
 0x11e   :  { %2889 = vmatpush.bf16.msra.mxu0 %v4348_v33  ;;  %v2683_v43 = vpop.f32.mrf.mxu0 }
 0x11f   :  { %2902 = vmatpush.bf16.msra.mxu1 %v4356_v34  ;;  %v2684_v44 = vadd.f32 %v2683_v43, %v2671_v17  ;;  %v2696_v45 = vpop.f32.mrf.mxu1 }
 0x120   :  { %2915 = vmatpush.bf16.msra.mxu2 %v4364_v37 }
 0x121   :  { %2928 = vmatpush.bf16.msra.mxu3 %v4372_v38  ;;  %2890 = vmatmul.bf16.vlgmr.msra.gmra.mxu0 %v698_v39  ;;  %v2697_v46 = vadd.f32 %v2696_v45, %v2684_v44 }
 0x122   :  { %2903 = vmatmul.bf16.vlgmr.msra.gmra.mxu1 %v699_v40 }
 0x123   :  { %2916 = vmatmul.bf16.vlgmr.msra.gmra.mxu2 %v700_v41 }
 0x124   :  { %2929 = vmatmul.bf16.vlgmr.msra.gmra.mxu3 %v701_v42 }
 0x126   :  { %v2709_v47 = vpop.f32.mrf.mxu2  ;;  %v2685_v50 = vpop.f32.mrf.mxu0 }
 0x127   :  { %v2710_v48 = vadd.f32 %v2709_v47, %v2697_v46  ;;  %v2722_v49 = vpop.f32.mrf.mxu3  ;;  %v2698_v52 = vpop.f32.mrf.mxu1 }
 0x129   :  { %v2723_v51 = vadd.f32 %v2722_v49, %v2710_v48 }
 0x12e   :  { %v2711_v53 = vpop.f32.mrf.mxu2 }
 0x12f   :  { %v2724_v54 = vpop.f32.mrf.mxu3 }
 0x13e   :  { %v2735_v55 = vpop.f32.mrf.mxu0 }
 0x13f   :  { %v2736_v56 = vadd.f32 %v2735_v55, %v2723_v51  ;;  %v2748_v57 = vpop.f32.mrf.mxu1 }
 0x141   :  { %v2749_v58 = vadd.f32 %v2748_v57, %v2736_v56 }
 0x146   :  { %v2761_v59 = vpop.f32.mrf.mxu2  ;;  %v2737_v62 = vpop.f32.mrf.mxu0 }
 0x147   :  { %v2762_v60 = vadd.f32 %v2761_v59, %v2749_v58  ;;  %v2774_v61 = vpop.f32.mrf.mxu3  ;;  %v2750_v0 = vpop.f32.mrf.mxu1 }
 0x149   :  { %v2775_v63 = vadd.f32 %v2774_v61, %v2762_v60 }
 0x14e   :  { %v2763_v1 = vpop.f32.mrf.mxu2 }
 0x14f   :  { %v2776_v2 = vpop.f32.mrf.mxu3 }
 0x15e   :  { %v2787_v3 = vpop.f32.mrf.mxu0 }
 0x15f   :  { %v2800_v4 = vpop.f32.mrf.mxu1  ;;  %v2788_v14 = vadd.f32 %v2787_v3, %v2775_v63 }
 0x161   :  { %v2801_v18 = vadd.f32 %v2800_v4, %v2788_v14 }
 0x166   :  { %v2813_v5 = vpop.f32.mrf.mxu2  ;;  %v2789_v7 = vpop.f32.mrf.mxu0 }
 0x167   :  { %v2826_v6 = vpop.f32.mrf.mxu3  ;;  %v2802_v8 = vpop.f32.mrf.mxu1  ;;  %v2814_v19 = vadd.f32 %v2813_v5, %v2801_v18 }
 0x169   :  { %v2827_v22 = vadd.f32 %v2826_v6, %v2814_v19 }
 0x16e   :  { %v2815_v9 = vpop.f32.mrf.mxu2 }
 0x16f   :  { %v2828_v10 = vpop.f32.mrf.mxu3 }
 0x17e   :  { %v2839_v11 = vpop.f32.mrf.mxu0 }
 0x17f   :  { %v2852_v12 = vpop.f32.mrf.mxu1  ;;  %v2840_v23 = vadd.f32 %v2839_v11, %v2827_v22 }
 0x181   :  { %v2853_v24 = vadd.f32 %v2852_v12, %v2840_v23 }
 0x186   :  { %v2865_v13 = vpop.f32.mrf.mxu2  ;;  %v2841_v16 = vpop.f32.mrf.mxu0 }
 0x187   :  { %v2878_v15 = vpop.f32.mrf.mxu3  ;;  %v2854_v17 = vpop.f32.mrf.mxu1  ;;  %v2866_v25 = vadd.f32 %v2865_v13, %v2853_v24 }
 0x189   :  { %v2879_v26 = vadd.f32 %v2878_v15, %v2866_v25 }
 0x18e   :  { %v2867_v20 = vpop.f32.mrf.mxu2 }
 0x18f   :  { %v2880_v21 = vpop.f32.mrf.mxu3 }
 0x19e   :  { %v2891_v27 = vpop.f32.mrf.mxu0 }
 0x19f   :  { %v2904_v28 = vpop.f32.mrf.mxu1  ;;  %v2892_v29 = vadd.f32 %v2891_v27, %v2879_v26 }
 0x1a1   :  { %v2905_v30 = vadd.f32 %v2904_v28, %v2892_v29 }
 0x1a6   :  { %v2917_v31 = vpop.f32.mrf.mxu2  ;;  %v2893_v34 = vpop.f32.mrf.mxu0 }
 0x1a7   :  { %v2930_v32 = vpop.f32.mrf.mxu3  ;;  %v2918_v33 = vadd.f32 %v2917_v31, %v2905_v30  ;;  %v2906_v35 = vpop.f32.mrf.mxu1 }
 0x1a9   :  { %v2931_v36 = vadd.f32 %v2930_v32, %v2918_v33 }
 0x1ab   :  { %v2934_v37 = vmax.f32 %v2931_v36, 0.0 }
 0x1ad   :  { %2935 = vst [vmem:[%s5337_s3] sm:$0xff] %v2934_v37 }
 0x1ae   :  { %v2919_v38 = vpop.f32.mrf.mxu2 }
 0x1af   :  { %v2932_v39 = vpop.f32.mrf.mxu3 }

</bundles_post_ra>
